<compile_context>
chip_gen: v7x
topology: tpu7x:2x2x1
jax: 0.10.0
libtpu: 0.0.40
codegen_flags: <defaults>
</compile_context>

<pallas_src>
import functools

import jax
import jax.numpy as jnp
from jax.experimental import pallas as pl
from jax.experimental.pallas import tpu as pltpu

_EPS = 1e-5
_LANE = 128
_TAPS = tuple((dy, dx) for dy in range(3) for dx in range(3))


def _round_up(x, m):
    return (x + m - 1) // m * m


def _vmem_limit_bytes():
    try:
        kind = jax.devices()[0].device_kind.lower()
    except Exception:
        kind = ""
    if "v5e" in kind or "v5 lite" in kind or "v6" in kind:
        return 96 * 1024 * 1024        # v5e/v6e: 128 MiB physical VMEM
    return 48 * 1024 * 1024            # v7x: 64 MiB per TC (and safe default)


def _pick_pack(N, Ho, Wo):
    """Images per grid step: keep MXU M >= ~256 while keeping >= 2 grid steps."""
    k_max = max(1, 256 // max(1, Ho * Wo))
    divisors = [d for d in range(1, N + 1) if N % d == 0]
    cands = [d for d in divisors if d <= k_max and N // d >= 2]
    if not cands:
        cands = [d for d in divisors if d <= k_max] or [1]
    return max(cands)


def _tap_rows(x_ref, dy, dx, Ho, Wo, stride):
    """One 3x3 tap from a (k, Hp, Wp, C) ref, flattened to (k*Ho*Wo, C)."""
    k = x_ref.shape[0]
    C = x_ref.shape[-1]
    if stride == 1:
        t = x_ref[:, dy:dy + Ho, dx:dx + Wo, :]
    else:
        # TODO(synk): use strided Ref reads (pl.ds(..., stride=stride)) for
        # downsampling blocks; contiguous ref slice + value-level strided
        # slice kept here for lowering safety.
        t = x_ref[:, dy:dy + stride * (Ho - 1) + 1,
                  dx:dx + stride * (Wo - 1) + 1, :]
        t = jax.lax.slice(t, (0, 0, 0, 0), t.shape, (1, stride, stride, 1))
    return t.reshape(k * Ho * Wo, C)


def _conv3x3_acc(x_ref, w_ref, Ho, Wo, stride):
    """Nine per-tap (k*Ho*Wo, C) x (C, Cout) matmuls, accumulated in f32."""
    acc = None
    for idx, (dy, dx) in enumerate(_TAPS):
        rows = _tap_rows(x_ref, dy, dx, Ho, Wo, stride)
        part = jnp.dot(rows, w_ref[idx], preferred_element_type=jnp.float32)
        acc = part if acc is None else acc + part
    return acc


def _store_with_stats(acc_f32, y_ref, s_ref, k, Ho, Wo):
    # Round to bf16 first so the stored activations and the statistics used
    # to normalize them in the next pass are exactly consistent.
    C = acc_f32.shape[-1]
    y = acc_f32.astype(jnp.bfloat16)
    y_ref[...] = y.reshape(k, Ho, Wo, C)
    yf = y.astype(jnp.float32)
    # NOTE: variance is later formed as E[x^2]-E[x]^2 from these f32 sums;
    # fine for the bounded activations of this block, revisit (Welford) if
    # this kernel is reused deep in training with large activation means.
    s_ref[0] = jnp.concatenate(
        [jnp.sum(yf, axis=0, keepdims=True),
         jnp.sum(yf * yf, axis=0, keepdims=True)], axis=0)


# ---------------- pass 1: conv1 (+ optional 1x1 shortcut) + partial stats ----
def _conv1_kernel(*refs, k, Ho, Wo, stride, has_shortcut):
    if has_shortcut:
        xpad_ref, w1_ref, ws_ref, y1_ref, s1_ref, ysc_ref, ssc_ref = refs
    else:
        xpad_ref, w1_ref, y1_ref, s1_ref = refs

    acc = _conv3x3_acc(xpad_ref, w1_ref, Ho, Wo, stride)
    _store_with_stats(acc, y1_ref, s1_ref, k, Ho, Wo)

    if has_shortcut:
        # 1x1 stride-s shortcut conv == the (dy,dx)=(1,1) tap of the padded x.
        rows = _tap_rows(xpad_ref, 1, 1, Ho, Wo, stride)
        acc_s = jnp.dot(rows, ws_ref[...], preferred_element_type=jnp.float32)
        _store_with_stats(acc_s, ysc_ref, ssc_ref, k, Ho, Wo)


# ---------------- pass 2: bn1 + sigmoid + conv2 + partial stats --------------
def _conv2_kernel(y1_ref, scale1_ref, bias1_ref, w2_ref,
                  y2_ref, s2_ref, hpad_ref, *, k, Ho, Wo):
    Cpo = y1_ref.shape[-1]
    M = k * Ho * Wo
    y1 = y1_ref[...].astype(jnp.float32).reshape(M, Cpo)
    # NOTE: padded channel lanes come out of this sigmoid as 0.5, not 0;
    # conv2 stays correct only because w2's padded input-channel rows are 0.
    h = jax.nn.sigmoid(y1 * scale1_ref[...] + bias1_ref[...])
    h = h.astype(jnp.bfloat16).reshape(k, Ho, Wo, Cpo)

    # Re-zero only the 1-pixel border of the scratch each step (never "only
    # at step 0": unsafe under megacore splitting of the parallel batch axis).
    zrow = jnp.zeros((k, 1, Wo + 2, Cpo), jnp.bfloat16)
    zcol = jnp.zeros((k, Ho, 1, Cpo), jnp.bfloat16)
    hpad_ref[:, 0:1, :, :] = zrow
    hpad_ref[:, Ho + 1:Ho + 2, :, :] = zrow
    hpad_ref[:, 1:Ho + 1, 0:1, :] = zcol
    hpad_ref[:, 1:Ho + 1, Wo + 1:Wo + 2, :] = zcol
    hpad_ref[:, 1:Ho + 1, 1:Wo + 1, :] = h

    acc = _conv3x3_acc(hpad_ref, w2_ref, Ho, Wo, 1)
    _store_with_stats(acc, y2_ref, s2_ref, k, Ho, Wo)


# ---------------- pass 3: bn2 + shortcut add + final sigmoid -----------------
def _finalize_kernel(*refs, k, Ho, Wo, has_shortcut):
    if has_shortcut:
        (y2_ref, scale2_ref, bias2_ref,
         ysc_ref, scale_s_ref, bias_s_ref, out_ref) = refs
    else:
        y2_ref, scale2_ref, bias2_ref, x_ref, out_ref = refs

    Cpo = y2_ref.shape[-1]
    M = k * Ho * Wo
    main = (y2_ref[...].astype(jnp.float32).reshape(M, Cpo)
            * scale2_ref[...] + bias2_ref[...])
    if has_shortcut:
        sc = (ysc_ref[...].astype(jnp.float32).reshape(M, Cpo)
              * scale_s_ref[...] + bias_s_ref[...])
    else:
        sc = x_ref[...].astype(jnp.float32).reshape(M, Cpo)
    out = jax.nn.sigmoid(main + sc)
    out_ref[...] = out.astype(out_ref.dtype).reshape(k, Ho, Wo, Cpo)


# ---------------- wrapper -----------------------------------------------------
def basic_block_forward(x_nchw, params, stride):
    """Runs the BasicBlock Pallas kernels. x_nchw: (N, Cin, H, W) float32."""
    N, Cin, H, W = x_nchw.shape
    Cout = params["w1"].shape[0]
    has_shortcut = (stride != 1) or (Cin != Cout)
    Ho = (H - 1) // stride + 1
    Wo = (W - 1) // stride + 1
    Cpi = _round_up(Cin, _LANE)
    Cpo = _round_up(Cout, _LANE)
    f32, bf16 = jnp.float32, jnp.bfloat16

    k = _pick_pack(N, Ho, Wo)      # images packed per grid step
    G = N // k                     # grid steps

    # NCHW -> NHWC, channel pad to a lane-dense multiple of 128, bf16 for MXU.
    x_nhwc = jnp.transpose(x_nchw, (0, 2, 3, 1)).astype(f32)
    x_nhwc = jnp.pad(x_nhwc, ((0, 0), (0, 0), (0, 0), (0, Cpi - Cin)))
    xpad = jnp.pad(x_nhwc, ((0, 0), (1, 1), (1, 1), (0, 0))).astype(bf16)

    def prep_w3x3(w, ci, cpi):
        # OIHW -> (9, cpi, Cpo) per-tap weights. Zero-padding of the input
        # channel rows is REQUIRED for correctness (padded activation lanes
        # hold 0.5 after bn+sigmoid and must be killed by these zero rows).
        co = w.shape[0]
        w = jnp.transpose(w, (2, 3, 1, 0)).astype(f32)          # (3,3,ci,co)
        w = jnp.pad(w, ((0, 0), (0, 0), (0, cpi - ci), (0, Cpo - co)))
        return w.reshape(9, cpi, Cpo).astype(bf16)

    w1 = prep_w3x3(params["w1"], Cin, Cpi)
    w2 = prep_w3x3(params["w2"], Cout, Cpo)

    count = float(N * Ho * Wo)

    def finalize_stats(partials, gamma, beta):
        tot = jnp.sum(partials, axis=0)                          # (2, Cpo)
        mean = tot[0] / count
        var = jnp.maximum(tot[1] / count - mean * mean, 0.0)
        g = jnp.pad(gamma.astype(f32).reshape(-1), (0, Cpo - Cout))
        b = jnp.pad(beta.astype(f32).reshape(-1), (0, Cpo - Cout))
        scale = g * jax.lax.rsqrt(var + _EPS)
        bias = b - mean * scale
        return scale.reshape(1, Cpo), bias.reshape(1, Cpo)

    grid = (G,)
    img_in_spec = pl.BlockSpec((k, H + 2, W + 2, Cpi), lambda n: (n, 0, 0, 0))
    img_out_spec = pl.BlockSpec((k, Ho, Wo, Cpo), lambda n: (n, 0, 0, 0))
    stat_spec = pl.BlockSpec((1, 2, Cpo), lambda n: (n, 0, 0))
    vec_spec = pl.BlockSpec((1, Cpo), lambda n: (0, 0))
    # TODO(synk): single-buffer the grid-invariant weight/vector blocks
    # (pipeline_mode=pl.Buffered(1)) to save VMEM under v7x's 64 MiB budget.
    w1_spec = pl.BlockSpec((9, Cpi, Cpo), lambda n: (0, 0, 0))
    w2_spec = pl.BlockSpec((9, Cpo, Cpo), lambda n: (0, 0, 0))
    ws_spec = pl.BlockSpec((Cpi, Cpo), lambda n: (0, 0))

    cp = pltpu.CompilerParams(dimension_semantics=("parallel",),
                              vmem_limit_bytes=_vmem_limit_bytes())

    y_shape = jax.ShapeDtypeStruct((N, Ho, Wo, Cpo), bf16)
    stat_shape = jax.ShapeDtypeStruct((G, 2, Cpo), f32)

    # ---- pass 1: conv1 (+ optional 1x1 shortcut conv) + partial stats ----
    if has_shortcut:
        ws = jnp.transpose(params["ws"][:, :, 0, 0], (1, 0)).astype(f32)
        ws = jnp.pad(ws, ((0, Cpi - Cin), (0, Cpo - Cout))).astype(bf16)
        k1 = functools.partial(_conv1_kernel, k=k, Ho=Ho, Wo=Wo, stride=stride,
                               has_shortcut=True)
        y1, s1, ysc, ssc = pl.pallas_call(
            k1, grid=grid,
            in_specs=[img_in_spec, w1_spec, ws_spec],
            out_specs=(img_out_spec, stat_spec, img_out_spec, stat_spec),
            out_shape=(y_shape, stat_shape, y_shape, stat_shape),
            compiler_params=cp,
        )(xpad, w1, ws)
    else:
        k1 = functools.partial(_conv1_kernel, k=k, Ho=Ho, Wo=Wo, stride=stride,
                               has_shortcut=False)
        y1, s1 = pl.pallas_call(
            k1, grid=grid,
            in_specs=[img_in_spec, w1_spec],
            out_specs=(img_out_spec, stat_spec),
            out_shape=(y_shape, stat_shape),
            compiler_params=cp,
        )(xpad, w1)

    scale1, bias1 = finalize_stats(s1, params["g1"], params["b1"])

    # ---- pass 2: bn1 + sigmoid + conv2 + partial stats ----
    k2 = functools.partial(_conv2_kernel, k=k, Ho=Ho, Wo=Wo)
    y2, s2 = pl.pallas_call(
        k2, grid=grid,
        in_specs=[img_out_spec, vec_spec, vec_spec, w2_spec],
        out_specs=(img_out_spec, stat_spec),
        out_shape=(y_shape, stat_shape),
        scratch_shapes=[pltpu.VMEM((k, Ho + 2, Wo + 2, Cpo), bf16)],
        compiler_params=cp,
    )(y1, scale1, bias1, w2)

    scale2, bias2 = finalize_stats(s2, params["g2"], params["b2"])

    # ---- pass 3: bn2 + shortcut add + final sigmoid (bf16, mem-bound) ----
    out_shape = jax.ShapeDtypeStruct((N, Ho, Wo, Cpo), bf16)
    if has_shortcut:
        scale_s, bias_s = finalize_stats(ssc, params["gs"], params["bs"])
        k3 = functools.partial(_finalize_kernel, k=k, Ho=Ho, Wo=Wo,
                               has_shortcut=True)
        out = pl.pallas_call(
            k3, grid=grid,
            in_specs=[img_out_spec, vec_spec, vec_spec,
                      img_out_spec, vec_spec, vec_spec],
            out_specs=img_out_spec,
            out_shape=out_shape,
            compiler_params=cp,
        )(y2, scale2, bias2, ysc, scale_s, bias_s)
    else:
        # Identity shortcut: read the spatially-unpadded x (no border DMA).
        x_id = x_nhwc.astype(bf16)
        x_id_spec = pl.BlockSpec((k, H, W, Cpi), lambda n: (n, 0, 0, 0))
        k3 = functools.partial(_finalize_kernel, k=k, Ho=Ho, Wo=Wo,
                               has_shortcut=False)
        out = pl.pallas_call(
            k3, grid=grid,
            in_specs=[img_out_spec, vec_spec, vec_spec, x_id_spec],
            out_specs=img_out_spec,
            out_shape=out_shape,
            compiler_params=cp,
        )(y2, scale2, bias2, x_id)

    # Drop channel padding, NHWC -> NCHW, back to f32 at the block boundary.
    return jnp.transpose(out[..., :Cout], (0, 3, 1, 2)).astype(f32)


# ---------------- pure-JAX reference (correctness check) ---------------------
def _reference(x_nchw, params, stride):
    def conv(x, w, s, pad):
        return jax.lax.conv_general_dilated(
            x, w, window_strides=(s, s), padding=((pad, pad), (pad, pad)),
            dimension_numbers=("NCHW", "OIHW", "NCHW"))

    def bn(x, g, b):
        mean = jnp.mean(x, axis=(0, 2, 3), keepdims=True)
        var = jnp.mean((x - mean) ** 2, axis=(0, 2, 3), keepdims=True)
        return ((x - mean) * jax.lax.rsqrt(var + _EPS)
                * g.reshape(1, -1, 1, 1) + b.reshape(1, -1, 1, 1))

    Cin = x_nchw.shape[1]
    Cout = params["w1"].shape[0]
    out = jax.nn.sigmoid(bn(conv(x_nchw, params["w1"], stride, 1),
                            params["g1"], params["b1"]))
    out = bn(conv(out, params["w2"], 1, 1), params["g2"], params["b2"])
    if stride != 1 or Cin != Cout:
        sc = bn(conv(x_nchw, params["ws"], stride, 0), params["gs"], params["bs"])
    else:
        sc = x_nchw
    return jax.nn.sigmoid(out + sc)


if __name__ == "__main__":
    key = jax.random.PRNGKey(0)
    N, Cin, H, W = 2, 4, 16, 16
    planes = 8
    stride = 1  # Cin != planes -> conv1x1 + bn shortcut path is exercised

    ks = jax.random.split(key, 10)
    params = {
        "w1": jax.random.normal(ks[0], (planes, Cin, 3, 3), jnp.float32) * 0.2,
        "g1": jax.random.uniform(ks[1], (planes,), jnp.float32, 0.5, 1.5),
        "b1": jax.random.normal(ks[2], (planes,), jnp.float32) * 0.1,
        "w2": jax.random.normal(ks[3], (planes, planes, 3, 3), jnp.float32) * 0.2,
        "g2": jax.random.uniform(ks[4], (planes,), jnp.float32, 0.5, 1.5),
        "b2": jax.random.normal(ks[5], (planes,), jnp.float32) * 0.1,
        "ws": jax.random.normal(ks[6], (planes, Cin, 1, 1), jnp.float32) * 0.3,
        "gs": jax.random.uniform(ks[7], (planes,), jnp.float32, 0.5, 1.5),
        "bs": jax.random.normal(ks[8], (planes,), jnp.float32) * 0.1,
    }
    x = jax.random.normal(ks[9], (N, Cin, H, W), jnp.float32)

    out = basic_block_forward(x, params, stride)
    out = jax.block_until_ready(out)

    ref = _reference(x, params, stride)
    assert out.shape == ref.shape == (N, planes, H // stride, W // stride)
    max_err = float(jnp.max(jnp.abs(out - ref)))
    # Tolerance loosened vs pure-f32 because MXU dots use bf16 inputs (f32
    # accumulation) and pass 3 now stores bf16; BN/sigmoid math stays f32.
    assert max_err < 2e-2, f"max abs err {max_err}"

    print("KERNEL_OK")
</pallas_src>

<mosaic_0001>
module attributes {stable_mosaic.version = 11 : i64} {
  func.func @_conv1_kernel(%arg0: i32, %arg1: memref<1x18x18x128xbf16, #tpu.memory_space<vmem>>, %arg2: memref<9x128x128xbf16, #tpu.memory_space<vmem>>, %arg3: memref<128x128xbf16, #tpu.memory_space<vmem>>, %arg4: memref<1x16x16x128xbf16, #tpu.memory_space<vmem>>, %arg5: memref<1x2x128xf32, #tpu.memory_space<vmem>>, %arg6: memref<1x16x16x128xbf16, #tpu.memory_space<vmem>>, %arg7: memref<1x2x128xf32, #tpu.memory_space<vmem>>) attributes {dimension_semantics = [#tpu.dimension_semantics<parallel>], iteration_bounds = array<i64: 2>, scalar_prefetch = 0 : i64, scratch_operands = 0 : i64, tpu.core_type = #tpu.core_type<tc>, window_params = [{transform_indices = @transform_0, window_bounds = array<i64: 1, 18, 18, 128>}, {pipeline_mode = #tpu.pipeline_mode<synchronous>, transform_indices = @transform_1, window_bounds = array<i64: 9, 128, 128>}, {pipeline_mode = #tpu.pipeline_mode<synchronous>, transform_indices = @transform_2, window_bounds = array<i64: 128, 128>}, {transform_indices = @transform_3, window_bounds = array<i64: 1, 16, 16, 128>}, {transform_indices = @transform_4, window_bounds = array<i64: 1, 2, 128>}, {transform_indices = @transform_5, window_bounds = array<i64: 1, 16, 16, 128>}, {transform_indices = @transform_6, window_bounds = array<i64: 1, 2, 128>}]} {
    %c0 = arith.constant 0 : index
    %c0_0 = arith.constant 0 : index
    %c0_1 = arith.constant 0 : index
    %c0_2 = arith.constant 0 : index
    %0 = vector.load %arg1[%c0, %c0_0, %c0_1, %c0_2] : memref<1x18x18x128xbf16, #tpu.memory_space<vmem>>, vector<1x16x16x128xbf16>
    %1 = vector.shape_cast %0 : vector<1x16x16x128xbf16> to vector<256x128xbf16>
    %c0_3 = arith.constant 0 : index
    %c0_4 = arith.constant 0 : index
    %c0_5 = arith.constant 0 : index
    %2 = vector.load %arg2[%c0_3, %c0_4, %c0_5] : memref<9x128x128xbf16, #tpu.memory_space<vmem>>, vector<1x128x128xbf16>
    %3 = vector.shape_cast %2 : vector<1x128x128xbf16> to vector<128x128xbf16>
    %cst = arith.constant dense<0.000000e+00> : vector<256x128xf32>
    %4 = tpu.matmul %1, %3, %cst {dimension_numbers = #tpu.dot_dimension_numbers<[1], [0], [0], [1], [0, 0, 1, 1], [], []>} : vector<256x128xbf16>, vector<128x128xbf16>, vector<256x128xf32> -> vector<256x128xf32>
    %c0_6 = arith.constant 0 : index
    %c0_7 = arith.constant 0 : index
    %c1 = arith.constant 1 : index
    %c0_8 = arith.constant 0 : index
    %5 = vector.load %arg1[%c0_6, %c0_7, %c1, %c0_8] : memref<1x18x18x128xbf16, #tpu.memory_space<vmem>>, vector<1x16x16x128xbf16>
    %6 = vector.shape_cast %5 : vector<1x16x16x128xbf16> to vector<256x128xbf16>
    %c1_9 = arith.constant 1 : index
    %c0_10 = arith.constant 0 : index
    %c0_11 = arith.constant 0 : index
    %7 = vector.load %arg2[%c1_9, %c0_10, %c0_11] : memref<9x128x128xbf16, #tpu.memory_space<vmem>>, vector<1x128x128xbf16>
    %8 = vector.shape_cast %7 : vector<1x128x128xbf16> to vector<128x128xbf16>
    %cst_12 = arith.constant dense<0.000000e+00> : vector<256x128xf32>
    %9 = tpu.matmul %6, %8, %cst_12 {dimension_numbers = #tpu.dot_dimension_numbers<[1], [0], [0], [1], [0, 0, 1, 1], [], []>} : vector<256x128xbf16>, vector<128x128xbf16>, vector<256x128xf32> -> vector<256x128xf32>
    %10 = arith.addf %4, %9 : vector<256x128xf32>
    %c0_13 = arith.constant 0 : index
    %c0_14 = arith.constant 0 : index
    %c2 = arith.constant 2 : index
    %c0_15 = arith.constant 0 : index
    %11 = vector.load %arg1[%c0_13, %c0_14, %c2, %c0_15] : memref<1x18x18x128xbf16, #tpu.memory_space<vmem>>, vector<1x16x16x128xbf16>
    %12 = vector.shape_cast %11 : vector<1x16x16x128xbf16> to vector<256x128xbf16>
    %c2_16 = arith.constant 2 : index
    %c0_17 = arith.constant 0 : index
    %c0_18 = arith.constant 0 : index
    %13 = vector.load %arg2[%c2_16, %c0_17, %c0_18] : memref<9x128x128xbf16, #tpu.memory_space<vmem>>, vector<1x128x128xbf16>
    %14 = vector.shape_cast %13 : vector<1x128x128xbf16> to vector<128x128xbf16>
    %cst_19 = arith.constant dense<0.000000e+00> : vector<256x128xf32>
    %15 = tpu.matmul %12, %14, %cst_19 {dimension_numbers = #tpu.dot_dimension_numbers<[1], [0], [0], [1], [0, 0, 1, 1], [], []>} : vector<256x128xbf16>, vector<128x128xbf16>, vector<256x128xf32> -> vector<256x128xf32>
    %16 = arith.addf %10, %15 : vector<256x128xf32>
    %c0_20 = arith.constant 0 : index
    %c1_21 = arith.constant 1 : index
    %c0_22 = arith.constant 0 : index
    %c0_23 = arith.constant 0 : index
    %17 = vector.load %arg1[%c0_20, %c1_21, %c0_22, %c0_23] : memref<1x18x18x128xbf16, #tpu.memory_space<vmem>>, vector<1x16x16x128xbf16>
    %18 = vector.shape_cast %17 : vector<1x16x16x128xbf16> to vector<256x128xbf16>
    %c3 = arith.constant 3 : index
    %c0_24 = arith.constant 0 : index
    %c0_25 = arith.constant 0 : index
    %19 = vector.load %arg2[%c3, %c0_24, %c0_25] : memref<9x128x128xbf16, #tpu.memory_space<vmem>>, vector<1x128x128xbf16>
    %20 = vector.shape_cast %19 : vector<1x128x128xbf16> to vector<128x128xbf16>
    %cst_26 = arith.constant dense<0.000000e+00> : vector<256x128xf32>
    %21 = tpu.matmul %18, %20, %cst_26 {dimension_numbers = #tpu.dot_dimension_numbers<[1], [0], [0], [1], [0, 0, 1, 1], [], []>} : vector<256x128xbf16>, vector<128x128xbf16>, vector<256x128xf32> -> vector<256x128xf32>
    %22 = arith.addf %16, %21 : vector<256x128xf32>
    %c0_27 = arith.constant 0 : index
    %c1_28 = arith.constant 1 : index
    %c1_29 = arith.constant 1 : index
    %c0_30 = arith.constant 0 : index
    %23 = vector.load %arg1[%c0_27, %c1_28, %c1_29, %c0_30] : memref<1x18x18x128xbf16, #tpu.memory_space<vmem>>, vector<1x16x16x128xbf16>
    %24 = vector.shape_cast %23 : vector<1x16x16x128xbf16> to vector<256x128xbf16>
    %c4 = arith.constant 4 : index
    %c0_31 = arith.constant 0 : index
    %c0_32 = arith.constant 0 : index
    %25 = vector.load %arg2[%c4, %c0_31, %c0_32] : memref<9x128x128xbf16, #tpu.memory_space<vmem>>, vector<1x128x128xbf16>
    %26 = vector.shape_cast %25 : vector<1x128x128xbf16> to vector<128x128xbf16>
    %cst_33 = arith.constant dense<0.000000e+00> : vector<256x128xf32>
    %27 = tpu.matmul %24, %26, %cst_33 {dimension_numbers = #tpu.dot_dimension_numbers<[1], [0], [0], [1], [0, 0, 1, 1], [], []>} : vector<256x128xbf16>, vector<128x128xbf16>, vector<256x128xf32> -> vector<256x128xf32>
    %28 = arith.addf %22, %27 : vector<256x128xf32>
    %c0_34 = arith.constant 0 : index
    %c1_35 = arith.constant 1 : index
    %c2_36 = arith.constant 2 : index
    %c0_37 = arith.constant 0 : index
    %29 = vector.load %arg1[%c0_34, %c1_35, %c2_36, %c0_37] : memref<1x18x18x128xbf16, #tpu.memory_space<vmem>>, vector<1x16x16x128xbf16>
    %30 = vector.shape_cast %29 : vector<1x16x16x128xbf16> to vector<256x128xbf16>
    %c5 = arith.constant 5 : index
    %c0_38 = arith.constant 0 : index
    %c0_39 = arith.constant 0 : index
    %31 = vector.load %arg2[%c5, %c0_38, %c0_39] : memref<9x128x128xbf16, #tpu.memory_space<vmem>>, vector<1x128x128xbf16>
    %32 = vector.shape_cast %31 : vector<1x128x128xbf16> to vector<128x128xbf16>
    %cst_40 = arith.constant dense<0.000000e+00> : vector<256x128xf32>
    %33 = tpu.matmul %30, %32, %cst_40 {dimension_numbers = #tpu.dot_dimension_numbers<[1], [0], [0], [1], [0, 0, 1, 1], [], []>} : vector<256x128xbf16>, vector<128x128xbf16>, vector<256x128xf32> -> vector<256x128xf32>
    %34 = arith.addf %28, %33 : vector<256x128xf32>
    %c0_41 = arith.constant 0 : index
    %c2_42 = arith.constant 2 : index
    %c0_43 = arith.constant 0 : index
    %c0_44 = arith.constant 0 : index
    %35 = vector.load %arg1[%c0_41, %c2_42, %c0_43, %c0_44] : memref<1x18x18x128xbf16, #tpu.memory_space<vmem>>, vector<1x16x16x128xbf16>
    %36 = vector.shape_cast %35 : vector<1x16x16x128xbf16> to vector<256x128xbf16>
    %c6 = arith.constant 6 : index
    %c0_45 = arith.constant 0 : index
    %c0_46 = arith.constant 0 : index
    %37 = vector.load %arg2[%c6, %c0_45, %c0_46] : memref<9x128x128xbf16, #tpu.memory_space<vmem>>, vector<1x128x128xbf16>
    %38 = vector.shape_cast %37 : vector<1x128x128xbf16> to vector<128x128xbf16>
    %cst_47 = arith.constant dense<0.000000e+00> : vector<256x128xf32>
    %39 = tpu.matmul %36, %38, %cst_47 {dimension_numbers = #tpu.dot_dimension_numbers<[1], [0], [0], [1], [0, 0, 1, 1], [], []>} : vector<256x128xbf16>, vector<128x128xbf16>, vector<256x128xf32> -> vector<256x128xf32>
    %40 = arith.addf %34, %39 : vector<256x128xf32>
    %c0_48 = arith.constant 0 : index
    %c2_49 = arith.constant 2 : index
    %c1_50 = arith.constant 1 : index
    %c0_51 = arith.constant 0 : index
    %41 = vector.load %arg1[%c0_48, %c2_49, %c1_50, %c0_51] : memref<1x18x18x128xbf16, #tpu.memory_space<vmem>>, vector<1x16x16x128xbf16>
    %42 = vector.shape_cast %41 : vector<1x16x16x128xbf16> to vector<256x128xbf16>
    %c7 = arith.constant 7 : index
    %c0_52 = arith.constant 0 : index
    %c0_53 = arith.constant 0 : index
    %43 = vector.load %arg2[%c7, %c0_52, %c0_53] : memref<9x128x128xbf16, #tpu.memory_space<vmem>>, vector<1x128x128xbf16>
    %44 = vector.shape_cast %43 : vector<1x128x128xbf16> to vector<128x128xbf16>
    %cst_54 = arith.constant dense<0.000000e+00> : vector<256x128xf32>
    %45 = tpu.matmul %42, %44, %cst_54 {dimension_numbers = #tpu.dot_dimension_numbers<[1], [0], [0], [1], [0, 0, 1, 1], [], []>} : vector<256x128xbf16>, vector<128x128xbf16>, vector<256x128xf32> -> vector<256x128xf32>
    %46 = arith.addf %40, %45 : vector<256x128xf32>
    %c0_55 = arith.constant 0 : index
    %c2_56 = arith.constant 2 : index
    %c2_57 = arith.constant 2 : index
    %c0_58 = arith.constant 0 : index
    %47 = vector.load %arg1[%c0_55, %c2_56, %c2_57, %c0_58] : memref<1x18x18x128xbf16, #tpu.memory_space<vmem>>, vector<1x16x16x128xbf16>
    %48 = vector.shape_cast %47 : vector<1x16x16x128xbf16> to vector<256x128xbf16>
    %c8 = arith.constant 8 : index
    %c0_59 = arith.constant 0 : index
    %c0_60 = arith.constant 0 : index
    %49 = vector.load %arg2[%c8, %c0_59, %c0_60] : memref<9x128x128xbf16, #tpu.memory_space<vmem>>, vector<1x128x128xbf16>
    %50 = vector.shape_cast %49 : vector<1x128x128xbf16> to vector<128x128xbf16>
    %cst_61 = arith.constant dense<0.000000e+00> : vector<256x128xf32>
    %51 = tpu.matmul %48, %50, %cst_61 {dimension_numbers = #tpu.dot_dimension_numbers<[1], [0], [0], [1], [0, 0, 1, 1], [], []>} : vector<256x128xbf16>, vector<128x128xbf16>, vector<256x128xf32> -> vector<256x128xf32>
    %52 = arith.addf %46, %51 : vector<256x128xf32>
    %53 = arith.truncf %52 : vector<256x128xf32> to vector<256x128xbf16>
    %54 = vector.shape_cast %53 : vector<256x128xbf16> to vector<1x16x16x128xbf16>
    %c0_62 = arith.constant 0 : index
    %c0_63 = arith.constant 0 : index
    %c0_64 = arith.constant 0 : index
    %c0_65 = arith.constant 0 : index
    %55 = vector.load %arg4[%c0_62, %c0_63, %c0_64, %c0_65] : memref<1x16x16x128xbf16, #tpu.memory_space<vmem>>, vector<1x16x16x128xbf16>
    tpu.vector_store %arg4[%c0_62, %c0_63, %c0_64, %c0_65], %54 {strides = array<i32>} : memref<1x16x16x128xbf16, #tpu.memory_space<vmem>>, vector<1x16x16x128xbf16>,
    %56 = arith.extf %53 : vector<256x128xbf16> to vector<256x128xf32>
    %cst_66 = arith.constant dense<0.000000e+00> : vector<128xf32>
    %57 = vector.multi_reduction <add>, %56, %cst_66 [0] : vector<256x128xf32> to vector<128xf32>
    %58 = vector.shape_cast %57 : vector<128xf32> to vector<1x128xf32>
    %59 = arith.mulf %56, %56 : vector<256x128xf32>
    %cst_67 = arith.constant dense<0.000000e+00> : vector<128xf32>
    %60 = vector.multi_reduction <add>, %59, %cst_67 [0] : vector<256x128xf32> to vector<128xf32>
    %61 = vector.shape_cast %60 : vector<128xf32> to vector<1x128xf32>
    %62 = tpu.concatenate %58, %61 in 0 : vector<1x128xf32>, vector<1x128xf32> -> vector<2x128xf32>
    %c0_68 = arith.constant 0 : index
    %c0_69 = arith.constant 0 : index
    %c0_70 = arith.constant 0 : index
    %63 = vector.load %arg5[%c0_68, %c0_69, %c0_70] : memref<1x2x128xf32, #tpu.memory_space<vmem>>, vector<1x2x128xf32>
    %64 = vector.shape_cast %63 : vector<1x2x128xf32> to vector<2x128xf32>
    %65 = vector.shape_cast %62 : vector<2x128xf32> to vector<1x2x128xf32>
    tpu.vector_store %arg5[%c0_68, %c0_69, %c0_70], %65 {strides = array<i32>} : memref<1x2x128xf32, #tpu.memory_space<vmem>>, vector<1x2x128xf32>,
    %c0_71 = arith.constant 0 : index
    %c1_72 = arith.constant 1 : index
    %c1_73 = arith.constant 1 : index
    %c0_74 = arith.constant 0 : index
    %66 = vector.load %arg1[%c0_71, %c1_72, %c1_73, %c0_74] : memref<1x18x18x128xbf16, #tpu.memory_space<vmem>>, vector<1x16x16x128xbf16>
    %67 = vector.shape_cast %66 : vector<1x16x16x128xbf16> to vector<256x128xbf16>
    %c0_75 = arith.constant 0 : index
    %c0_76 = arith.constant 0 : index
    %68 = vector.load %arg3[%c0_75, %c0_76] : memref<128x128xbf16, #tpu.memory_space<vmem>>, vector<128x128xbf16>
    %cst_77 = arith.constant dense<0.000000e+00> : vector<256x128xf32>
    %69 = tpu.matmul %67, %68, %cst_77 {dimension_numbers = #tpu.dot_dimension_numbers<[1], [0], [0], [1], [0, 0, 1, 1], [], []>} : vector<256x128xbf16>, vector<128x128xbf16>, vector<256x128xf32> -> vector<256x128xf32>
    %70 = arith.truncf %69 : vector<256x128xf32> to vector<256x128xbf16>
    %71 = vector.shape_cast %70 : vector<256x128xbf16> to vector<1x16x16x128xbf16>
    %c0_78 = arith.constant 0 : index
    %c0_79 = arith.constant 0 : index
    %c0_80 = arith.constant 0 : index
    %c0_81 = arith.constant 0 : index
    %72 = vector.load %arg6[%c0_78, %c0_79, %c0_80, %c0_81] : memref<1x16x16x128xbf16, #tpu.memory_space<vmem>>, vector<1x16x16x128xbf16>
    tpu.vector_store %arg6[%c0_78, %c0_79, %c0_80, %c0_81], %71 {strides = array<i32>} : memref<1x16x16x128xbf16, #tpu.memory_space<vmem>>, vector<1x16x16x128xbf16>,
    %73 = arith.extf %70 : vector<256x128xbf16> to vector<256x128xf32>
    %cst_82 = arith.constant dense<0.000000e+00> : vector<128xf32>
    %74 = vector.multi_reduction <add>, %73, %cst_82 [0] : vector<256x128xf32> to vector<128xf32>
    %75 = vector.shape_cast %74 : vector<128xf32> to vector<1x128xf32>
    %76 = arith.mulf %73, %73 : vector<256x128xf32>
    %cst_83 = arith.constant dense<0.000000e+00> : vector<128xf32>
    %77 = vector.multi_reduction <add>, %76, %cst_83 [0] : vector<256x128xf32> to vector<128xf32>
    %78 = vector.shape_cast %77 : vector<128xf32> to vector<1x128xf32>
    %79 = tpu.concatenate %75, %78 in 0 : vector<1x128xf32>, vector<1x128xf32> -> vector<2x128xf32>
    %c0_84 = arith.constant 0 : index
    %c0_85 = arith.constant 0 : index
    %c0_86 = arith.constant 0 : index
    %80 = vector.load %arg7[%c0_84, %c0_85, %c0_86] : memref<1x2x128xf32, #tpu.memory_space<vmem>>, vector<1x2x128xf32>
    %81 = vector.shape_cast %80 : vector<1x2x128xf32> to vector<2x128xf32>
    %82 = vector.shape_cast %79 : vector<2x128xf32> to vector<1x2x128xf32>
    tpu.vector_store %arg7[%c0_84, %c0_85, %c0_86], %82 {strides = array<i32>} : memref<1x2x128xf32, #tpu.memory_space<vmem>>, vector<1x2x128xf32>,
    return
  }
  func.func @transform_0(%arg0: i32) -> (i32, i32, i32, i32) {
    %c0_i32 = arith.constant 0 : i32
    %c0_i32_0 = arith.constant 0 : i32
    %c0_i32_1 = arith.constant 0 : i32
    %c0_i32_2 = arith.constant 0 : i32
    return %arg0, %c0_i32, %c0_i32_0, %c0_i32_1 : i32, i32, i32, i32
  }
  func.func @transform_1(%arg0: i32) -> (i32, i32, i32) {
    %c0_i32 = arith.constant 0 : i32
    %c0_i32_0 = arith.constant 0 : i32
    %c0_i32_1 = arith.constant 0 : i32
    %c0_i32_2 = arith.constant 0 : i32
    return %c0_i32, %c0_i32_0, %c0_i32_1 : i32, i32, i32
  }
  func.func @transform_2(%arg0: i32) -> (i32, i32) {
    %c0_i32 = arith.constant 0 : i32
    %c0_i32_0 = arith.constant 0 : i32
    %c0_i32_1 = arith.constant 0 : i32
    return %c0_i32, %c0_i32_0 : i32, i32
  }
  func.func @transform_3(%arg0: i32) -> (i32, i32, i32, i32) {
    %c0_i32 = arith.constant 0 : i32
    %c0_i32_0 = arith.constant 0 : i32
    %c0_i32_1 = arith.constant 0 : i32
    %c0_i32_2 = arith.constant 0 : i32
    return %arg0, %c0_i32, %c0_i32_0, %c0_i32_1 : i32, i32, i32, i32
  }
  func.func @transform_4(%arg0: i32) -> (i32, i32, i32) {
    %c0_i32 = arith.constant 0 : i32
    %c0_i32_0 = arith.constant 0 : i32
    %c0_i32_1 = arith.constant 0 : i32
    return %arg0, %c0_i32, %c0_i32_0 : i32, i32, i32
  }
  func.func @transform_5(%arg0: i32) -> (i32, i32, i32, i32) {
    %c0_i32 = arith.constant 0 : i32
    %c0_i32_0 = arith.constant 0 : i32
    %c0_i32_1 = arith.constant 0 : i32
    %c0_i32_2 = arith.constant 0 : i32
    return %arg0, %c0_i32, %c0_i32_0, %c0_i32_1 : i32, i32, i32, i32
  }
  func.func @transform_6(%arg0: i32) -> (i32, i32, i32) {
    %c0_i32 = arith.constant 0 : i32
    %c0_i32_0 = arith.constant 0 : i32
    %c0_i32_1 = arith.constant 0 : i32
    return %arg0, %c0_i32, %c0_i32_0 : i32, i32, i32
  }
}

</mosaic_0001>

<bundles_post_ra>
// kernel: tpu_custom_call.1
= control target key start
LH: loop header
LB: loop body
LE: loop exit
PB: predicated region body
PF: predicated region fallthrough
CT: control target
= control target key end

     0   :  { %s11440_s0 = inlined_call_operand.vmem [shape: bf16[2,18,18,128], index: 0, kind: input, shape index: {}]   ;;  %s11441_s1 = inlined_call_operand.vmem [shape: bf16[9,128,128], index: 1, kind: input, shape index: {}]   ;;  %s11442_s2 = inlined_call_operand.vmem [shape: bf16[128,128], index: 2, kind: input, shape index: {}]   ;;  %s11443_s3 = inlined_call_operand.hbm [shape: bf16[2,16,16,128], index: 3, kind: output, shape index: {0}]   ;;  %s11444_s4 = inlined_call_operand.hbm [shape: f32[2,2,128], index: 4, kind: output, shape index: {1}]   ;;  %s11445_s5 = inlined_call_operand.hbm [shape: bf16[2,16,16,128], index: 5, kind: output, shape index: {2}]   ;;  %s11446_s6 = inlined_call_operand.hbm [shape: f32[2,2,128], index: 6, kind: output, shape index: {3}]  }
   0x1   :  { %11450 = sst [smem:[#allocation12_spill]] %s11440_s0 }
   0x2   :  { %11451 = sst [smem:[#allocation13_spill]] %s11441_s1 }
   0x3   :  { %12 = vsyncpa [#allocation3], 0 }
   0x4   :  { %14 = vsyncpa [#allocation3 + $0x1], 0 }
   0x5   :  { %15 = vsyncpa [#allocation5], 0 }
   0x6   :  { %17 = vsyncpa [#allocation5 + $0x1], 0 }
   0x7   :  { %18 = vsyncpa [#allocation8], 0 }
   0x8   :  { %20 = vsyncpa [#allocation8 + $0x1], 0  ;;  %s9079_s21 = smov 0   ;;  %s9081_s22 = smov 0  }
   0x9   :  { %s9083_s23 = smov 0   ;;  %s9085_s24 = smov 0  }
   0xa LB: > { %s9100_s25 = sadd.s32 4294967295, %s9036_s24   ;;  %s11447_s26 = sadd.s32 4294967294, %s9036_s24   ;;  %s9036_s24 = sphi %s9085_s24, %s11476_s24   ;;  %s9032_s23 = sphi %s9083_s23, %s11475_s23   ;;  %s9028_s22 = sphi %s9081_s22, %s11474_s22   ;;  %s9024_s21 = sphi %s9079_s21, %s11473_s21  }
   0xb   : > { %s9104_s27 = sadd.s32 1, %s9036_s24   ;;  %s101_s28 = sadd.s32 1, %s9032_s23 }
   0xc   : > { %s98_s29 = ssub.s32 %s9036_s24, %s9104_s27  ;;  %p111_p0 = scmp.ne.s32.totalorder %s9032_s23, %s9028_s22 }
   0xd   : > { %p99_p1 = scmp.eq.s32.totalorder %s98_s29, 0  ;;  %p112_p2 = scmp.eq.s32.totalorder %s9100_s25, 1 }
   0xe   : > { %p117_p3 = scmp.ne.s32.totalorder %s9028_s22, %s9024_s21  ;;  %p118_p4 = scmp.eq.s32.totalorder %s11447_s26, 1 }
   0xf   : > { %s9117_s30 = scalar_select %p99_p1, %s9032_s23, %s101_s28  }
  0x10   : > { %p9119_p5 = por %p112_p2, %p111_p0  ;;  %p9123_p6 = por %p118_p4, %p117_p3 }
  0x11   : > { %p6639_p7 = scmp.ge.s32.totalorder %s9036_s24, 1  ;;  %p228_p8 = scmp.lt.s32.totalorder %s9036_s24, 3 }
  0x13   : > { %p229_p9 = pnand %p6639_p7, %p228_p8 }
  0x14   : > { %s11454_s1 = sld [smem:[#allocation13_spill]] (!%p229_p9)  ;;  %p273_p10 = scmp.lt.s32.totalorder (!%p229_p9), %s9100_s25, 1  ;;  %vm343_vm0 = vsmask.f32 (!%p229_p9), 3328  ;;  %vm344_vm1 = vsmask.f32 (!%p229_p9), 7440 }
  0x15   : > { %232 = sbr.rel (%p229_p9) target bundleno = 761 (0x2f9), region = 32  ;;  %s11455_s0 = sld [smem:[#allocation12_spill]] (!%p229_p9)  ;;  %vm9189_vm2 = vmor (!%p229_p9), %vm343_vm0, %vm344_vm1  ;;  %vm1373_vm3 = vcmask (!%p229_p9), 1042432   ;;  %vm1374_vm4 = vcmask (!%p229_p9), 1046532  }
  0x16   : > { %vm9563_vm5 = vmor (!%p229_p9), %vm1373_vm3, %vm1374_vm4  ;;  %s7441_s10 = sshll.u32 (!%p229_p9), %s9100_s25, 11  ;;  %s9038_s17 = smov (!%p229_p9), [#allocation2]  }
  0x17   : > { %s11284_s14 = scalar_lea.hbm (!%p229_p9), %s11443_s3, %s7441_s10  ;;  %s8886_s18 = sshll.u32 (!%p229_p9), %s9038_s17, 4  ;;  %s8887_s18 = int_to_ptr.vmem [resolvable:$false] %s8886_s18 }
  0x18   : > { %s8888_s20 = scalar_lea.vmem (!%p229_p9), %s8887_s18, 4096 }
  0x1a   : > { %v8666_v0 = vld [vmem:[%s11454_s1 + $0x40] sm:$0xff] (!%p229_p9)   ;;  %v8668_v2 = vld [vmem:[%s11454_s1 + $0x48] sm:$0xff] (!%p229_p9)   ;;  %v8670_v4 = vld [vmem:[%s11454_s1 + $0x50] sm:$0xff] (!%p229_p9)  }
  0x1b   : > { %v8667_v1 = vld [vmem:[%s11454_s1 + $0x100] sm:$0xff] (!%p229_p9)   ;;  %7873 = vmatprep.subr.bf16.mxu1 (!%p229_p9), %v8666_v0  ;;  %v8669_v3 = vld [vmem:[%s11454_s1 + $0x108] sm:$0xff] (!%p229_p9)   ;;  %v8671_v5 = vld [vmem:[%s11454_s1 + $0x110] sm:$0xff] (!%p229_p9)  }
  0x1c   : > { %8065 = vmatprep.subr.bf16.mxu0 %v8667_v1  ;;  %7874 = vmatpush3.bf16.msra.mxu1 %v8666_v0  ;;  %s274_s28 = scalar_select %p273_p10, %s9100_s25, 1  ;;  %v8672_v6 = vld [vmem:[%s11454_s1 + $0x58] sm:$0xff]   ;;  %v8674_v8 = vld [vmem:[%s11454_s1 + $0x60] sm:$0xff]   ;;  %v8676_v10 = vld [vmem:[%s11454_s1 + $0x68] sm:$0xff]  }
  0x1d   : > { %8066 = vmatpush3.bf16.msra.mxu0 %v8667_v1  ;;  %7875 = vmatprep.subr.bf16.mxu1 %v8668_v2  ;;  %v8673_v7 = vld [vmem:[%s11454_s1 + $0x118] sm:$0xff]   ;;  %v8675_v9 = vld [vmem:[%s11454_s1 + $0x120] sm:$0xff]   ;;  %v8677_v11 = vld [vmem:[%s11454_s1 + $0x128] sm:$0xff]  }
  0x1e   : > { %8067 = vmatprep.subr.bf16.mxu0 %v8669_v3  ;;  %s8609_s12 = smul.u32 216, %s274_s28  ;;  %v8678_v25 = vld [vmem:[%s11454_s1 + $0x70] sm:$0xff]   ;;  %v8680_v42 = vld [vmem:[%s11454_s1 + $0x78] sm:$0xff]  }
  0x1f   : > { %v8679_v30 = vld [vmem:[%s11454_s1 + $0x130] sm:$0xff]   ;;  %v8681_v52 = vld [vmem:[%s11454_s1 + $0x138] sm:$0xff]  }
  0x20   : > { %7876 = vmatpush3.bf16.msra.mxu1 %v8668_v2  ;;  %s9164_s19 = scalar_lea.vmem %s11455_s0, %s8609_s12 }
  0x21   : > { %8068 = vmatpush3.bf16.msra.mxu0 %v8669_v3  ;;  %7877 = vmatprep.subr.bf16.mxu1 %v8670_v4  ;;  %v279_v12 = vld [vmem:[%s9164_s19] sm:$0xf]  ;;  %v280_v13 = vld [vmem:[%s9164_s19 + $0x4] sm:$0xf]  ;;  %v327_v14 = vld [vmem:[%s9164_s19 + $0x8] sm:$0x1] }
  0x22   : > { %8069 = vmatprep.subr.bf16.mxu0 %v8671_v5  ;;  %v347_v15 = vshrl.u32 %v279_v12, 16  ;;  %v350_v16 = vshll.u32 %v279_v12, 16  ;;  %v356_v17 = vshll.u32 %v280_v13, 16  ;;  %v360_v18 = vshrl.u32 %v280_v13, 16  ;;  %v6837_v20 = vld [vmem:[%s9164_s19 + $0xc] sm:$0xf] }
  0x23   : > { %v366_v19 = vshll.u32 %v327_v14, 16  ;;  %v6838_v23 = vld [vmem:[%s9164_s19 + $0x10] sm:$0xf]  ;;  %v9178_v24 = vld [vmem:[%s9164_s19 + $0x14] sm:$0x1]  ;;  %v2246_v29 = vshrl.u32 %v6837_v20, 16 }
  0x24   : > { %7878 = vmatpush3.bf16.msra.mxu1 %v8670_v4  ;;  %v349_v21 = vrot.slane %v347_v15, 4  ;;  %v352_v22 = vrot.slane %v350_v16, 5  ;;  %v358_v26 = vrot.slane %v356_v17, 5  ;;  %v362_v27 = vrot.slane %v360_v18, 4  ;;  %v281_v35 = vld [vmem:[%s9164_s19 + $0xc] sm:$0xf] }
  0x25   : > { %8070 = vmatpush3.bf16.msra.mxu0 %v8671_v5  ;;  %7879 = vmatprep.subr.bf16.mxu1 %v8672_v6  ;;  %v368_v28 = vrot.slane %v366_v19, 5  ;;  %v2249_v32 = vshll.u32 %v6837_v20, 16  ;;  %v2255_v33 = vshll.u32 %v6838_v23, 16  ;;  %v2259_v34 = vshrl.u32 %v6838_v23, 16  ;;  %v282_v41 = vld [vmem:[%s9164_s19 + $0x10] sm:$0xf] }
  0x26   : > { %8071 = vmatprep.subr.bf16.mxu0 %v8673_v7  ;;  %v353_v31 = vor.u32 %v352_v22, %v349_v21  ;;  %v363_v37 = vor.u32 %v362_v27, %v358_v26  ;;  %v2248_v38 = vrot.slane %v2246_v29, 4  ;;  %v2265_v39 = vshll.u32 %v9178_v24, 16  ;;  %v328_v49 = vld [vmem:[%s9164_s19 + $0x14] sm:$0x1]  ;;  %v6840_v57 = vld [vmem:[%s9164_s19 + $0x18] sm:$0xf] }
  0x27   : > { %v3020_v40 = vrot.slane %v9178_v24, 5  ;;  %v2251_v44 = vrot.slane %v2249_v32, 5  ;;  %v2257_v45 = vrot.slane %v2255_v33, 5  ;;  %v2261_v46 = vrot.slane %v2259_v34, 4  ;;  %v9209_v5 = vld [vmem:[%s9164_s19 + $0x1c] sm:$0xf] }
  0x28   : > { %7880 = vmatpush3.bf16.msra.mxu1 %v8672_v6  ;;  %v354_v43 = vrot.slane %v353_v31, 4  ;;  %v364_v47 = vrot.slane %v363_v37, 4  ;;  %v2267_v48 = vrot.slane %v2265_v39, 5  ;;  %v371_v50 = vshrl.u32 %v281_v35, 16  ;;  %v8683_v12 = vld [vmem:[%s11454_s1] sm:$0xff]  }
  0x29   : > { %8072 = vmatpush3.bf16.msra.mxu0 %v8673_v7  ;;  %7881 = vmatprep.subr.bf16.mxu1 %v8674_v8  ;;  %v374_v51 = vshll.u32 %v281_v35, 16  ;;  %v2252_v54 = vor.u32 %v2251_v44, %v2248_v38  ;;  %v2262_v55 = vor.u32 %v2261_v46, %v2257_v45  ;;  %v380_v56 = vshll.u32 %v282_v41, 16  ;;  %v283_v21 = vld [vmem:[%s9164_s19 + $0x18] sm:$0xf]  ;;  %v284_v27 = vld [vmem:[%s9164_s19 + $0x1c] sm:$0xf] }
  0x2a   : > { %8073 = vmatprep.subr.bf16.mxu0 %v8675_v9  ;;  %v359_v53 = vsel %vm9189_vm2, %v354_v43, %v358_v26  ;;  %v369_v58 = vsel %vm9189_vm2, %v364_v47, %v368_v28  ;;  %v373_v59 = vrot.slane %v371_v50, 4  ;;  %v384_v61 = vshrl.u32 %v282_v41, 16  ;;  %v329_v32 = vld [vmem:[%s9164_s19 + $0x20] sm:$0x1]  ;;  %v6843_v38 = vld [vmem:[%s9164_s19 + $0x24] sm:$0xf] }
  0x2b   : > { %v376_v60 = vrot.slane %v374_v51, 5  ;;  %v6661_v62 = vcombine.low %v359_v53, %v369_v58  ;;  %v2253_v63 = vrot.slane %v2252_v54, 4  ;;  %v2263_v0 = vrot.slane %v2262_v55, 4  ;;  %v6844_v44 = vld [vmem:[%s9164_s19 + $0x28] sm:$0xf] }
  0x2c   : > { %7882 = vmatpush3.bf16.msra.mxu1 %v8674_v8  ;;  %v382_v1 = vrot.slane %v380_v56, 5  ;;  %v386_v3 = vrot.slane %v384_v61, 4  ;;  %v390_v4 = vshll.u32 %v328_v49, 16  ;;  %v9216_v8 = vld [vmem:[%s9164_s19 + $0x20] sm:$0x1]  ;;  %v2279_v19 = vshll.u32 %v9209_v5, 16 }
  0x2d   : > { %8074 = vmatpush3.bf16.msra.mxu0 %v8675_v9  ;;  %7883 = vmatprep.subr.bf16.mxu1 %v8676_v10  ;;  %v377_v2 = vor.u32 %v376_v60, %v373_v59  ;;  %v2258_v6 = vsel %vm9189_vm2, %v2253_v63, %v2257_v45  ;;  %v2268_v7 = vsel %vm9189_vm2, %v2263_v0, %v2267_v48  ;;  %v2270_v9 = vshrl.u32 %v6840_v57, 16  ;;  %v8685_v45 = vld [vmem:[%s11454_s1 + $0x8] sm:$0xff]   ;;  %v285_v55 = vld [vmem:[%s9164_s19 + $0x24] sm:$0xf]  ;;  %v8687_v56 = vld [vmem:[%s11454_s1 + $0x10] sm:$0xff]  }
  0x2e   : > { %8075 = vmatprep.subr.bf16.mxu0 %v8677_v11  ;;  %7889 = vmatprep.mubr.bf16.mxu1 %v6661_v62  ;;  %v6901_v13 = vcombine.low %v2258_v6, %v2268_v7  ;;  %v387_v15 = vor.u32 %v386_v3, %v382_v1  ;;  %v392_v16 = vrot.slane %v390_v4, 5  ;;  %v2283_v20 = vshrl.u32 %v9209_v5, 16  ;;  %v6845_v50 = vld [vmem:[%s9164_s19 + $0x2c] sm:$0x1]  ;;  %v286_v7 = vld [vmem:[%s9164_s19 + $0x28] sm:$0xf] }
  0x2f   : > { %v378_v14 = vrot.slane %v377_v2, 4  ;;  %v2272_v17 = vrot.slane %v2270_v9, 4  ;;  %v3024_v26 = vrot.slane %v9209_v5, 5  ;;  %v2281_v29 = vrot.slane %v2279_v19, 5  ;;  %v8684_v61 = vld [vmem:[%s11454_s1 + $0x148] sm:$0xff]  }
  0x30   : > { %7884 = vmatpush3.bf16.msra.mxu1 %v8676_v10  ;;  %v2273_v10 = vshll.u32 %v6840_v57, 16  ;;  %8081 = vmatprep.mubr.bf16.mxu0 %v6901_v13  ;;  %v388_v23 = vrot.slane %v387_v15, 4  ;;  %v3027_v31 = vrot.slane %v9216_v8, 5  ;;  %v395_v37 = vshrl.u32 %v283_v21, 16  ;;  %v8798_v5 = vld [vmem:[%s9164_s19 + $0x2c] sm:$0x1] }
  0x31   : > { %8076 = vmatpush3.bf16.msra.mxu0 %v8677_v11  ;;  %7885 = vmatprep.subr.bf16.mxu1 %v8678_v25  ;;  %v9221_v11 = vld [vmem:[%s11454_s1 + $0x140] sm:$0xff]   ;;  %v383_v22 = vsel %vm9189_vm2, %v378_v14, %v382_v1  ;;  %v9241_v35 = vrot.slane %v3024_v26, 4  ;;  %v398_v43 = vshll.u32 %v283_v21, 16  ;;  %v404_v47 = vshll.u32 %v284_v27, 16 }
  0x32   : > { %8077 = vmatprep.subr.bf16.mxu0 %v8679_v30  ;;  %v2275_v18 = vrot.slane %v2273_v10, 5  ;;  %v393_v33 = vsel %vm9189_vm2, %v388_v23, %v392_v16  ;;  %v397_v46 = vrot.slane %v395_v37, 4  ;;  %v408_v48 = vshrl.u32 %v284_v27, 16  ;;  %v6846_v23 = vld [vmem:[%s9164_s19 + $0x30] sm:$0xf] }
  0x33   : > { %v6662_v39 = vcombine.low %v383_v22, %v393_v33  ;;  %v414_v49 = vshll.u32 %v329_v32, 16  ;;  %v400_v53 = vrot.slane %v398_v43, 5  ;;  %v2294_v54 = vshrl.u32 %v6843_v38, 16  ;;  %v8689_v32 = vld [vmem:[%s11454_s1 + $0x18] sm:$0xff]  }
  0x34   : > { %7886 = vmatpush3.bf16.msra.mxu1 %v8678_v25  ;;  %v2289_v25 = vshll.u32 %v9216_v8, 16  ;;  %v2276_v28 = vor.u32 %v2275_v18, %v2272_v17  ;;  %v406_v57 = vrot.slane %v404_v47, 5  ;;  %v410_v58 = vrot.slane %v408_v48, 4  ;;  %v330_v17 = vld [vmem:[%s9164_s19 + $0x2c] sm:$0x1] }
  0x35   : > { %8078 = vmatpush3.bf16.msra.mxu0 %v8679_v30  ;;  %7887 = vmatprep.subr.bf16.mxu1 %v8680_v42  ;;  %v2285_v30 = vrot.slane %v2283_v20, 4  ;;  %v416_v59 = vrot.slane %v414_v49, 5  ;;  %v2297_v60 = vshll.u32 %v6843_v38, 16  ;;  %v401_v63 = vor.u32 %v400_v53, %v397_v46  ;;  %v6848_v43 = vld [vmem:[%s9164_s19 + $0x38] sm:$0x1] }
  0x36   : > { %8079 = vmatprep.subr.bf16.mxu0 %v8681_v52  ;;  %v2291_v34 = vrot.slane %v2289_v25, 5  ;;  %v2277_v41 = vrot.slane %v2276_v28, 4  ;;  %v2296_v0 = vrot.slane %v2294_v54, 4  ;;  %v2303_v1 = vshll.u32 %v6844_v44, 16 }
  0x37   : > { %v411_v3 = vor.u32 %v410_v58, %v406_v57  ;;  %v2299_v4 = vrot.slane %v2297_v60, 5  ;;  %v2307_v6 = vshrl.u32 %v6844_v44, 16  ;;  %v402_v9 = vrot.slane %v401_v63, 4 }
  0x38   : > { %7888 = vmatpush3.bf16.msra.mxu1 %v8680_v42  ;;  %v2286_v42 = vor.u32 %v2285_v30, %v2281_v29  ;;  %v2282_v51 = vsel %vm9189_vm2, %v2277_v41, %v2281_v29  ;;  %v2305_v10 = vrot.slane %v2303_v1, 5  ;;  %v419_v13 = vshrl.u32 %v285_v55, 16  ;;  %v6847_v30 = vld [vmem:[%s9164_s19 + $0x34] sm:$0xf] }
  0x39   : > { %8080 = vmatpush3.bf16.msra.mxu0 %v8681_v52  ;;  %7921 = vmatprep.subr.bf16.mxu1 %v8683_v12  ;;  %v412_v14 = vrot.slane %v411_v3, 4  ;;  %v2300_v15 = vor.u32 %v2299_v4, %v2296_v0  ;;  %v2309_v16 = vrot.slane %v2307_v6, 4  ;;  %v422_v18 = vshll.u32 %v285_v55, 16  ;;  %v288_v55 = vld [vmem:[%s9164_s19 + $0x34] sm:$0xf] }
  0x3a   : > { %8113 = vmatprep.subr.bf16.mxu0 %v9221_v11  ;;  %v2287_v52 = vrot.slane %v2286_v42, 4  ;;  %v407_v19 = vsel %vm9189_vm2, %v402_v9, %v406_v57  ;;  %v421_v21 = vrot.slane %v419_v13, 4  ;;  %v428_v22 = vshll.u32 %v286_v7, 16  ;;  %v8693_v9 = vld [vmem:[%s11454_s1 + $0x28] sm:$0xff]  }
  0x3b   : > { %7890 = vmatmul.mubr.bf16.vlgmr.msra.gmra.mrb[0].mxu1 %v6662_v39  ;;  %v417_v25 = vsel %vm9189_vm2, %v412_v14, %v416_v59  ;;  %v2301_v27 = vrot.slane %v2300_v15, 4  ;;  %v2310_v28 = vor.u32 %v2309_v16, %v2305_v10  ;;  %v424_v29 = vrot.slane %v422_v18, 5  ;;  %v8690_v15 = vld [vmem:[%s11454_s1 + $0x160] sm:$0xff]  }
  0x3c   : > { %7922 = vmatpush3.bf16.msra.mxu1 %v8683_v12  ;;  %v2292_v62 = vsel %vm9189_vm2, %v2287_v52, %v2291_v34  ;;  %v2313_v12 = vshll.u32 %v6845_v50, 16  ;;  %v6663_v33 = vcombine.low %v407_v19, %v417_v25  ;;  %v430_v34 = vrot.slane %v428_v22, 5  ;;  %v287_v50 = vld [vmem:[%s9164_s19 + $0x30] sm:$0xf] }
  0x3d   : > { %7923 = vmatprep.subr.bf16.mxu1 %v8685_v45  ;;  %v6902_v2 = vcombine.low %v2282_v51, %v2292_v62  ;;  %v432_v37 = vshrl.u32 %v286_v7, 16  ;;  %v438_v38 = vshll.u32 %v330_v17, 16  ;;  %v2306_v39 = vsel %vm9189_vm2, %v2301_v27, %v2305_v10 }
  0x3e   : > { %v2315_v20 = vrot.slane %v2313_v12, 5  ;;  %v2311_v41 = vrot.slane %v2310_v28, 4  ;;  %v425_v42 = vor.u32 %v424_v29, %v421_v21  ;;  %v2318_v44 = vshrl.u32 %v6846_v23, 16  ;;  %7893 = vmatprep.mubr.bf16.mxu1 %v6663_v33  ;;  %v6851_v29 = vld [vmem:[%s9164_s19 + $0x44] sm:$0x1] }
  0x3f   : > { %8082 = vmatmul.mubr.bf16.vlgmr.msra.gmra.mrb[0].mxu0 %v6902_v2  ;;  %v434_v46 = vrot.slane %v432_v37, 4  ;;  %v440_v47 = vrot.slane %v438_v38, 5  ;;  %v2321_v48 = vshll.u32 %v6846_v23, 16  ;;  %v2327_v49 = vshll.u32 %v6847_v30, 16  ;;  %v6849_v2 = vld [vmem:[%s9164_s19 + $0x3c] sm:$0xf] }
  0x40   : > { %7924 = vmatpush3.bf16.msra.mxu1 %v8685_v45  ;;  %8114 = vmatpush3.bf16.msra.mxu0 %v9221_v11  ;;  %v8686_v11 = vld [vmem:[%s11454_s1 + $0x150] sm:$0xff]   ;;  %v8688_v45 = vld [vmem:[%s11454_s1 + $0x158] sm:$0xff]   ;;  %v2316_v51 = vsel %vm9189_vm2, %v2311_v41, %v2315_v20  ;;  %v426_v52 = vrot.slane %v425_v42, 4  ;;  %v2320_v53 = vrot.slane %v2318_v44, 4  ;;  %v2331_v54 = vshrl.u32 %v6847_v30, 16 }
  0x41   : > { %7925 = vmatprep.subr.bf16.mxu1 %v8687_v56  ;;  %8115 = vmatprep.subr.bf16.mxu0 %v8684_v61  ;;  %v6903_v57 = vcombine.low %v2306_v39, %v2316_v51  ;;  %v435_v58 = vor.u32 %v434_v46, %v430_v34  ;;  %v2323_v59 = vrot.slane %v2321_v48, 5  ;;  %v2329_v60 = vrot.slane %v2327_v49, 5  ;;  %v6850_v20 = vld [vmem:[%s9164_s19 + $0x40] sm:$0xf]  ;;  %v289_v39 = vld [vmem:[%s9164_s19 + $0x3c] sm:$0xf] }
  0x42   : > { %v431_v62 = vsel %vm9189_vm2, %v426_v52, %v430_v34  ;;  %v2333_v63 = vrot.slane %v2331_v54, 4  ;;  %v2337_v0 = vshll.u32 %v6848_v43, 16  ;;  %v443_v1 = vshrl.u32 %v287_v50, 16  ;;  %v8692_v46 = vld [vmem:[%s11454_s1 + $0x168] sm:$0xff]   ;;  %v332_v51 = vld [vmem:[%s9164_s19 + $0x44] sm:$0x1] }
  0x43   : > { %8085 = vmatprep.mubr.bf16.mxu0 %v6903_v57  ;;  %v436_v3 = vrot.slane %v435_v58, 4  ;;  %v2324_v4 = vor.u32 %v2323_v59, %v2320_v53  ;;  %v446_v6 = vshll.u32 %v287_v50, 16  ;;  %v452_v7 = vshll.u32 %v288_v55, 16  ;;  %v8697_v57 = vld [vmem:[%s11454_s1 + $0x38] sm:$0xff]  }
  0x44   : > { %7926 = vmatpush3.bf16.msra.mxu1 %v8687_v56  ;;  %8116 = vmatpush3.bf16.msra.mxu0 %v8684_v61  ;;  %v8691_v56 = vld [vmem:[%s11454_s1 + $0x20] sm:$0xff]   ;;  %v331_v61 = vld [vmem:[%s9164_s19 + $0x38] sm:$0x1]  ;;  %v2334_v10 = vor.u32 %v2333_v63, %v2329_v60  ;;  %v2339_v12 = vrot.slane %v2337_v0, 5  ;;  %v445_v13 = vrot.slane %v443_v1, 4  ;;  %v456_v14 = vshrl.u32 %v288_v55, 16 }
  0x45   : > { %8117 = vmatprep.subr.bf16.mxu0 %v8686_v11  ;;  %7927 = vmatprep.subr.bf16.mxu1 %v8689_v32  ;;  %v441_v16 = vsel %vm9189_vm2, %v436_v3, %v440_v47  ;;  %v2325_v17 = vrot.slane %v2324_v4, 4  ;;  %v448_v18 = vrot.slane %v446_v6, 5  ;;  %v454_v19 = vrot.slane %v452_v7, 5  ;;  %v6854_v3 = vld [vmem:[%s9164_s19 + $0x50] sm:$0x1] }
  0x46   : > { %v6664_v21 = vcombine.low %v431_v62, %v441_v16  ;;  %v2335_v22 = vrot.slane %v2334_v10, 4  ;;  %v458_v23 = vrot.slane %v456_v14, 4  ;;  %v462_v25 = vshll.u32 %v331_v61, 16  ;;  %v6853_v62 = vld [vmem:[%s9164_s19 + $0x4c] sm:$0xf]  ;;  %v8694_v4 = vld [vmem:[%s11454_s1 + $0x170] sm:$0xff]  }
  0x47   : > { %v2330_v27 = vsel %vm9189_vm2, %v2325_v17, %v2329_v60  ;;  %v449_v28 = vor.u32 %v448_v18, %v445_v13  ;;  %v2342_v30 = vshrl.u32 %v6849_v2, 16  ;;  %v2351_v38 = vshll.u32 %v6850_v20, 16  ;;  %v8696_v17 = vld [vmem:[%s11454_s1 + $0x178] sm:$0xff]  }
  0x48   : > { %7928 = vmatpush3.bf16.msra.mxu1 %v8689_v32  ;;  %8118 = vmatpush3.bf16.msra.mxu0 %v8686_v11  ;;  %v2345_v11 = vshll.u32 %v6849_v2, 16  ;;  %v8695_v32 = vld [vmem:[%s11454_s1 + $0x30] sm:$0xff]   ;;  %v2340_v33 = vsel %vm9189_vm2, %v2335_v22, %v2339_v12  ;;  %v459_v34 = vor.u32 %v458_v23, %v454_v19  ;;  %v464_v37 = vrot.slane %v462_v25, 5  ;;  %v8701_v12 = vld [vmem:[%s11454_s1 + $0x80] sm:$0xff]  }
  0x49   : > { %8119 = vmatprep.subr.bf16.mxu0 %v8688_v45  ;;  %7929 = vmatprep.subr.bf16.mxu1 %v8691_v56  ;;  %v6904_v41 = vcombine.low %v2330_v27, %v2340_v33  ;;  %v450_v42 = vrot.slane %v449_v28, 4  ;;  %v2344_v43 = vrot.slane %v2342_v30, 4  ;;  %v2353_v48 = vrot.slane %v2351_v38, 5  ;;  %v291_v28 = vld [vmem:[%s9164_s19 + $0x48] sm:$0xf] }
  0x4a   : > { %7894 = vmatmul.mubr.bf16.gmra.mrb[4].mxu1 %v6664_v21  ;;  %v2347_v44 = vrot.slane %v2345_v11, 5  ;;  %v460_v47 = vrot.slane %v459_v34, 4  ;;  %v2355_v49 = vshrl.u32 %v6850_v20, 16  ;;  %v2361_v50 = vshll.u32 %v6851_v29, 16  ;;  %v292_v33 = vld [vmem:[%s9164_s19 + $0x4c] sm:$0xf] }
  0x4b   : > { %8086 = vmatmul.mubr.bf16.gmra.mrb[4].mxu0 %v6904_v41  ;;  %v455_v52 = vsel %vm9189_vm2, %v450_v42, %v454_v19  ;;  %v467_v54 = vshrl.u32 %v289_v39, 16  ;;  %v470_v55 = vshll.u32 %v289_v39, 16  ;;  %v486_v10 = vshll.u32 %v332_v51, 16  ;;  %v333_v41 = vld [vmem:[%s9164_s19 + $0x50] sm:$0x1]  ;;  %v8700_v51 = vld [vmem:[%s11454_s1 + $0x180] sm:$0xff]  }
  0x4c   : > { %7930 = vmatpush3.bf16.msra.mxu1 %v8691_v56  ;;  %8120 = vmatpush3.bf16.msra.mxu0 %v8688_v45  ;;  %v290_v45 = vld [vmem:[%s9164_s19 + $0x40] sm:$0xf]  ;;  %v2348_v53 = vor.u32 %v2347_v44, %v2344_v43  ;;  %v6852_v56 = vld [vmem:[%s9164_s19 + $0x48] sm:$0xf]  ;;  %v465_v58 = vsel %vm9189_vm2, %v460_v47, %v464_v37  ;;  %v2357_v59 = vrot.slane %v2355_v49, 4  ;;  %v2363_v60 = vrot.slane %v2361_v50, 5 }
  0x4d   : > { %7931 = vmatprep.subr.bf16.mxu1 %v8693_v9  ;;  %8121 = vmatprep.subr.bf16.mxu0 %v8690_v15  ;;  %v476_v61 = vshll.u32 %v290_v45, 16  ;;  %v6665_v63 = vcombine.low %v455_v52, %v465_v58  ;;  %v469_v1 = vrot.slane %v467_v54, 4  ;;  %v472_v2 = vrot.slane %v470_v55, 5  ;;  %v6855_v50 = vld [vmem:[%s9164_s19 + $0x54] sm:$0xf] }
  0x4e   : > { %v2349_v0 = vrot.slane %v2348_v53, 4  ;;  %v2358_v6 = vor.u32 %v2357_v59, %v2353_v48  ;;  %v2369_v16 = vshll.u32 %v6852_v56, 16  ;;  %v488_v20 = vrot.slane %v486_v10, 5 }
  0x4f   : > { %v478_v7 = vrot.slane %v476_v61, 5  ;;  %7897 = vmatprep.mubr.bf16.mxu1 %v6665_v63  ;;  %v473_v14 = vor.u32 %v472_v2, %v469_v1  ;;  %v2375_v21 = vshll.u32 %v6853_v62, 16  ;;  %v2379_v27 = vshrl.u32 %v6853_v62, 16  ;;  %v6857_v61 = vld [vmem:[%s9164_s19 + $0x5c] sm:$0x1] }
  0x50   : > { %7932 = vmatpush3.bf16.msra.mxu1 %v8693_v9  ;;  %8122 = vmatpush3.bf16.msra.mxu0 %v8690_v15  ;;  %v480_v9 = vshrl.u32 %v290_v45, 16  ;;  %v2354_v13 = vsel %vm9189_vm2, %v2349_v0, %v2353_v48  ;;  %v2366_v15 = vshrl.u32 %v6852_v56, 16  ;;  %v2359_v18 = vrot.slane %v2358_v6, 4  ;;  %v6856_v56 = vld [vmem:[%s9164_s19 + $0x58] sm:$0xf] }
  0x51   : > { %7933 = vmatprep.subr.bf16.mxu1 %v8695_v32  ;;  %8123 = vmatprep.subr.bf16.mxu0 %v8692_v46  ;;  %v474_v22 = vrot.slane %v473_v14, 4  ;;  %v2371_v25 = vrot.slane %v2369_v16, 5  ;;  %v2377_v11 = vrot.slane %v2375_v21, 5  ;;  %v2381_v39 = vrot.slane %v2379_v27, 4  ;;  %v293_v2 = vld [vmem:[%s9164_s19 + $0x54] sm:$0xf] }
  0x52   : > { %v482_v19 = vrot.slane %v480_v9, 4  ;;  %v2368_v23 = vrot.slane %v2366_v15, 4  ;;  %v2364_v29 = vsel %vm9189_vm2, %v2359_v18, %v2363_v60  ;;  %v491_v44 = vshrl.u32 %v291_v28, 16  ;;  %v294_v9 = vld [vmem:[%s9164_s19 + $0x58] sm:$0xf] }
  0x53   : > { %v6905_v34 = vcombine.low %v2354_v13, %v2364_v29  ;;  %v479_v37 = vsel %vm9189_vm2, %v474_v22, %v478_v7  ;;  %v494_v45 = vshll.u32 %v291_v28, 16  ;;  %v2382_v47 = vor.u32 %v2381_v39, %v2377_v11  ;;  %v334_v28 = vld [vmem:[%s9164_s19 + $0x5c] sm:$0x1] }
  0x54   : > { %7934 = vmatpush3.bf16.msra.mxu1 %v8695_v32  ;;  %8124 = vmatpush3.bf16.msra.mxu0 %v8692_v46  ;;  %v483_v30 = vor.u32 %v482_v19, %v478_v7  ;;  %v2385_v32 = vshll.u32 %v6854_v3, 16  ;;  %v2372_v38 = vor.u32 %v2371_v25, %v2368_v23  ;;  %v500_v48 = vshll.u32 %v292_v33, 16 }
  0x55   : > { %7935 = vmatprep.subr.bf16.mxu1 %v8697_v57  ;;  %8125 = vmatprep.subr.bf16.mxu0 %v8694_v4  ;;  %v504_v49 = vshrl.u32 %v292_v33, 16  ;;  %v493_v53 = vrot.slane %v491_v44, 4  ;;  %v496_v54 = vrot.slane %v494_v45, 5  ;;  %v510_v55 = vshll.u32 %v333_v41, 16 }
  0x56   : > { %v484_v42 = vrot.slane %v483_v30, 4  ;;  %v2387_v43 = vrot.slane %v2385_v32, 5  ;;  %8089 = vmatprep.mubr.bf16.mxu0 %v6905_v34  ;;  %v2373_v46 = vrot.slane %v2372_v38, 4  ;;  %v2383_v59 = vrot.slane %v2382_v47, 4  ;;  %v6858_v30 = vld [vmem:[%s9164_s19 + $0x60] sm:$0xf] }
  0x57   : > { %v502_v60 = vrot.slane %v500_v48, 5  ;;  %v497_v62 = vor.u32 %v496_v54, %v493_v53  ;;  %v506_v63 = vrot.slane %v504_v49, 4  ;;  %v512_v0 = vrot.slane %v510_v55, 5  ;;  %v6860_v49 = vld [vmem:[%s9164_s19 + $0x68] sm:$0x1] }
  0x58   : > { %7936 = vmatpush3.bf16.msra.mxu1 %v8697_v57  ;;  %8126 = vmatpush3.bf16.msra.mxu0 %v8694_v4  ;;  %v489_v52 = vsel %vm9189_vm2, %v484_v42, %v488_v20  ;;  %v2378_v58 = vsel %vm9189_vm2, %v2373_v46, %v2377_v11  ;;  %v2390_v1 = vshrl.u32 %v6855_v50, 16  ;;  %v2388_v3 = vsel %vm9189_vm2, %v2383_v59, %v2387_v43 }
  0x59   : > { %7969 = vmatprep.subr.bf16.mxu1 %v8701_v12  ;;  %8127 = vmatprep.subr.bf16.mxu0 %v8696_v17  ;;  %v6666_v57 = vcombine.low %v479_v37, %v489_v52  ;;  %v2393_v4 = vshll.u32 %v6855_v50, 16  ;;  %v2399_v6 = vshll.u32 %v6856_v56, 16  ;;  %v2403_v7 = vshrl.u32 %v6856_v56, 16  ;;  %v6859_v37 = vld [vmem:[%s9164_s19 + $0x64] sm:$0xf] }
  0x5a   : > { %v6906_v10 = vcombine.low %v2378_v58, %v2388_v3  ;;  %v498_v12 = vrot.slane %v497_v62, 4  ;;  %v507_v13 = vor.u32 %v506_v63, %v502_v60  ;;  %v2392_v14 = vrot.slane %v2390_v1, 4  ;;  %v295_v52 = vld [vmem:[%s9164_s19 + $0x60] sm:$0xf]  ;;  %v335_v62 = vld [vmem:[%s9164_s19 + $0x68] sm:$0x1] }
  0x5b   : > { %7898 = vmatmul.mubr.bf16.gmra.mrb[8].mxu1 %v6666_v57  ;;  %v2395_v15 = vrot.slane %v2393_v4, 5  ;;  %v2401_v16 = vrot.slane %v2399_v6, 5  ;;  %v2405_v18 = vrot.slane %v2403_v7, 4  ;;  %v2409_v19 = vshll.u32 %v6857_v61, 16  ;;  %v296_v57 = vld [vmem:[%s9164_s19 + $0x64] sm:$0xf] }
  0x5c   : > { %8128 = vmatpush3.bf16.msra.mxu0 %v8696_v17  ;;  %v503_v17 = vsel %vm9189_vm2, %v498_v12, %v502_v60  ;;  %v508_v20 = vrot.slane %v507_v13, 4  ;;  %v515_v21 = vshrl.u32 %v293_v2, 16  ;;  %v518_v22 = vshll.u32 %v293_v2, 16  ;;  %v6861_v3 = vld [vmem:[%s9164_s19 + $0x6c] sm:$0xf] }
  0x5d   : > { %8161 = vmatprep.subr.bf16.mxu0 %v8700_v51  ;;  %8090 = vmatmul.mubr.bf16.gmra.mrb[8].mxu0 %v6906_v10  ;;  %v2396_v23 = vor.u32 %v2395_v15, %v2392_v14  ;;  %v2406_v25 = vor.u32 %v2405_v18, %v2401_v16  ;;  %v2411_v27 = vrot.slane %v2409_v19, 5  ;;  %v524_v29 = vshll.u32 %v294_v9, 16  ;;  %v6862_v10 = vld [vmem:[%s9164_s19 + $0x70] sm:$0xf] }
  0x5e   : > { %v513_v11 = vsel %vm9189_vm2, %v508_v20, %v512_v0  ;;  %v517_v32 = vrot.slane %v515_v21, 4  ;;  %v520_v33 = vrot.slane %v518_v22, 5  ;;  %v528_v34 = vshrl.u32 %v294_v9, 16 }
  0x5f   : > { %v6667_v38 = vcombine.low %v503_v17, %v513_v11  ;;  %v2397_v39 = vrot.slane %v2396_v23, 4  ;;  %v2407_v41 = vrot.slane %v2406_v25, 4  ;;  %v526_v42 = vrot.slane %v524_v29, 5  ;;  %v6863_v29 = vld [vmem:[%s9164_s19 + $0x74] sm:$0x1] }
  0x60   : > { %v521_v43 = vor.u32 %v520_v33, %v517_v32  ;;  %v530_v44 = vrot.slane %v528_v34, 4  ;;  %v534_v45 = vshll.u32 %v334_v28, 16  ;;  %v2414_v46 = vshrl.u32 %v6858_v30, 16 }
  0x61   : > { %7901 = vmatprep.mubr.bf16.mxu1 %v6667_v38  ;;  %v2402_v47 = vsel %vm9189_vm2, %v2397_v39, %v2401_v16  ;;  %v2412_v48 = vsel %vm9189_vm2, %v2407_v41, %v2411_v27  ;;  %v2417_v50 = vshll.u32 %v6858_v30, 16  ;;  %v2423_v51 = vshll.u32 %v6859_v37, 16 }
  0x62   : > { %v6907_v53 = vcombine.low %v2402_v47, %v2412_v48  ;;  %v522_v54 = vrot.slane %v521_v43, 4  ;;  %v531_v55 = vor.u32 %v530_v44, %v526_v42  ;;  %v536_v56 = vrot.slane %v534_v45, 5  ;;  %v298_v43 = vld [vmem:[%s9164_s19 + $0x70] sm:$0xf] }
  0x63   : > { %v2416_v58 = vrot.slane %v2414_v46, 4  ;;  %v2419_v59 = vrot.slane %v2417_v50, 5  ;;  %v2425_v60 = vrot.slane %v2423_v51, 5  ;;  %v2427_v61 = vshrl.u32 %v6859_v37, 16  ;;  %v297_v37 = vld [vmem:[%s9164_s19 + $0x6c] sm:$0xf] }
  0x64   : > { %8093 = vmatprep.mubr.bf16.mxu0 %v6907_v53  ;;  %v527_v63 = vsel %vm9189_vm2, %v522_v54, %v526_v42  ;;  %v532_v0 = vrot.slane %v531_v55, 4  ;;  %v2433_v1 = vshll.u32 %v6860_v49, 16  ;;  %v539_v2 = vshrl.u32 %v295_v52, 16  ;;  %v336_v51 = vld [vmem:[%s9164_s19 + $0x74] sm:$0x1] }
  0x65   : > { %v2420_v4 = vor.u32 %v2419_v59, %v2416_v58  ;;  %v2429_v6 = vrot.slane %v2427_v61, 4  ;;  %v542_v7 = vshll.u32 %v295_v52, 16  ;;  %v548_v9 = vshll.u32 %v296_v57, 16 }
  0x66   : > { %v537_v12 = vsel %vm9189_vm2, %v532_v0, %v536_v56  ;;  %v2435_v13 = vrot.slane %v2433_v1, 5  ;;  %v541_v14 = vrot.slane %v539_v2, 4  ;;  %v552_v15 = vshrl.u32 %v296_v57, 16  ;;  %v6864_v57 = vld [vmem:[%s9164_s19 + $0x78] sm:$0xf] }
  0x67   : > { %v6668_v16 = vcombine.low %v527_v63, %v537_v12  ;;  %v2421_v18 = vrot.slane %v2420_v4, 4  ;;  %v2430_v19 = vor.u32 %v2429_v6, %v2425_v60  ;;  %v544_v17 = vrot.slane %v542_v7, 5  ;;  %v299_v4 = vld [vmem:[%s9164_s19 + $0x78] sm:$0xf]  ;;  %v300_v12 = vld [vmem:[%s9164_s19 + $0x7c] sm:$0xf] }
  0x68   : > { %v550_v20 = vrot.slane %v548_v9, 5  ;;  %v554_v21 = vrot.slane %v552_v15, 4  ;;  %v558_v22 = vshll.u32 %v335_v62, 16  ;;  %v2438_v23 = vshrl.u32 %v6861_v3, 16  ;;  %v6865_v62 = vld [vmem:[%s9164_s19 + $0x7c] sm:$0xf] }
  0x69   : > { %7902 = vmatmul.mubr.bf16.gmra.mrb[12].mxu1 %v6668_v16  ;;  %v2426_v25 = vsel %vm9189_vm2, %v2421_v18, %v2425_v60  ;;  %v2431_v27 = vrot.slane %v2430_v19, 4  ;;  %v545_v28 = vor.u32 %v544_v17, %v541_v14  ;;  %v2441_v30 = vshll.u32 %v6861_v3, 16  ;;  %v6866_v3 = vld [vmem:[%s9164_s19 + $0x80] sm:$0x1] }
  0x6a   : > { %v555_v11 = vor.u32 %v554_v21, %v550_v20  ;;  %v560_v32 = vrot.slane %v558_v22, 5  ;;  %v2440_v33 = vrot.slane %v2438_v23, 4  ;;  %v2447_v34 = vshll.u32 %v6862_v10, 16 }
  0x6b   : > { %v2436_v38 = vsel %vm9189_vm2, %v2431_v27, %v2435_v13  ;;  %v546_v39 = vrot.slane %v545_v28, 4  ;;  %v2443_v41 = vrot.slane %v2441_v30, 5  ;;  %v2451_v42 = vshrl.u32 %v6862_v10, 16 }
  0x6c   : > { %v6908_v44 = vcombine.low %v2426_v25, %v2436_v38  ;;  %v556_v45 = vrot.slane %v555_v11, 4  ;;  %v2449_v46 = vrot.slane %v2447_v34, 5  ;;  %v2457_v47 = vshll.u32 %v6863_v29, 16 }
  0x6d   : > { %v551_v48 = vsel %vm9189_vm2, %v546_v39, %v550_v20  ;;  %v2444_v49 = vor.u32 %v2443_v41, %v2440_v33  ;;  %v2453_v50 = vrot.slane %v2451_v42, 4  ;;  %v563_v52 = vshrl.u32 %v297_v37, 16  ;;  %v337_v33 = vld [vmem:[%s9164_s19 + $0x80] sm:$0x1] }
  0x6e   : > { %8094 = vmatmul.mubr.bf16.gmra.mrb[12].mxu0 %v6908_v44  ;;  %v561_v53 = vsel %vm9189_vm2, %v556_v45, %v560_v32  ;;  %v2459_v54 = vrot.slane %v2457_v47, 5  ;;  %v566_v55 = vshll.u32 %v297_v37, 16  ;;  %v572_v56 = vshll.u32 %v298_v43, 16 }
  0x6f   : > { %v6669_v58 = vcombine.low %v551_v48, %v561_v53  ;;  %v2445_v59 = vrot.slane %v2444_v49, 4  ;;  %v2454_v60 = vor.u32 %v2453_v50, %v2449_v46  ;;  %v565_v61 = vrot.slane %v563_v52, 4  ;;  %v9406_v48 = vld [vmem:[%s9164_s19 + $0x88] sm:$0xf] }
  0x70   : > { %v568_v63 = vrot.slane %v566_v55, 5  ;;  %v574_v0 = vrot.slane %v572_v56, 5  ;;  %v576_v1 = vshrl.u32 %v298_v43, 16  ;;  %v582_v2 = vshll.u32 %v336_v51, 16  ;;  %v6867_v43 = vld [vmem:[%s9164_s19 + $0x84] sm:$0xf] }
  0x71   : > { %7905 = vmatprep.mubr.bf16.mxu1 %v6669_v58  ;;  %v2450_v6 = vsel %vm9189_vm2, %v2445_v59, %v2449_v46  ;;  %v2455_v7 = vrot.slane %v2454_v60, 4  ;;  %v2462_v9 = vshrl.u32 %v6864_v57, 16  ;;  %v2465_v10 = vshll.u32 %v6864_v57, 16  ;;  %v6869_v55 = vld [vmem:[%s9164_s19 + $0x8c] sm:$0x1] }
  0x72   : > { %v569_v13 = vor.u32 %v568_v63, %v565_v61  ;;  %v578_v14 = vrot.slane %v576_v1, 4  ;;  %v584_v15 = vrot.slane %v582_v2, 5  ;;  %v2471_v16 = vshll.u32 %v6865_v62, 16 }
  0x73   : > { %v2460_v18 = vsel %vm9189_vm2, %v2455_v7, %v2459_v54  ;;  %v2464_v19 = vrot.slane %v2462_v9, 4  ;;  %v2467_v17 = vrot.slane %v2465_v10, 5  ;;  %v2475_v20 = vshrl.u32 %v6865_v62, 16  ;;  %v301_v62 = vld [vmem:[%s9164_s19 + $0x84] sm:$0xf] }
  0x74   : > { %v6909_v21 = vcombine.low %v2450_v6, %v2460_v18  ;;  %v570_v22 = vrot.slane %v569_v13, 4  ;;  %v579_v23 = vor.u32 %v578_v14, %v574_v0  ;;  %v2473_v25 = vrot.slane %v2471_v16, 5  ;;  %v338_v10 = vld [vmem:[%s9164_s19 + $0x8c] sm:$0x1]  ;;  %v9422_v18 = vld [vmem:[%s9164_s19 + $0x94] sm:$0xf] }
  0x75   : > { %v2468_v27 = vor.u32 %v2467_v17, %v2464_v19  ;;  %v2477_v28 = vrot.slane %v2475_v20, 4  ;;  %v2481_v29 = vshll.u32 %v6866_v3, 16  ;;  %v587_v30 = vshrl.u32 %v299_v4, 16  ;;  %v302_v3 = vld [vmem:[%s9164_s19 + $0x88] sm:$0xf] }
  0x76   : > { %8097 = vmatprep.mubr.bf16.mxu0 %v6909_v21  ;;  %v575_v11 = vsel %vm9189_vm2, %v570_v22, %v574_v0  ;;  %v580_v32 = vrot.slane %v579_v23, 4  ;;  %v590_v34 = vshll.u32 %v299_v4, 16  ;;  %v596_v37 = vshll.u32 %v300_v12, 16 }
  0x77   : > { %v2469_v38 = vrot.slane %v2468_v27, 4  ;;  %v2478_v39 = vor.u32 %v2477_v28, %v2473_v25  ;;  %v2483_v41 = vrot.slane %v2481_v29, 5  ;;  %v589_v42 = vrot.slane %v587_v30, 4 }
  0x78   : > { %v585_v44 = vsel %vm9189_vm2, %v580_v32, %v584_v15  ;;  %v592_v45 = vrot.slane %v590_v34, 5  ;;  %v598_v46 = vrot.slane %v596_v37, 5  ;;  %v600_v47 = vshrl.u32 %v300_v12, 16  ;;  %v6870_v12 = vld [vmem:[%s9164_s19 + $0x90] sm:$0xf] }
  0x79   : > { %v6670_v49 = vcombine.low %v575_v11, %v585_v44  ;;  %v2474_v50 = vsel %vm9189_vm2, %v2469_v38, %v2473_v25  ;;  %v2479_v51 = vrot.slane %v2478_v39, 4  ;;  %v606_v52 = vshll.u32 %v337_v33, 16  ;;  %v9427_v32 = vld [vmem:[%s9164_s19 + $0x98] sm:$0x1]  ;;  %v9430_v39 = vld [vmem:[%s9164_s19 + $0x90] sm:$0xf] }
  0x7a   : > { %v593_v53 = vor.u32 %v592_v45, %v589_v42  ;;  %v602_v54 = vrot.slane %v600_v47, 4  ;;  %v2486_v56 = vshrl.u32 %v6867_v43, 16  ;;  %v2489_v57 = vshll.u32 %v6867_v43, 16  ;;  %v9438_v45 = vld [vmem:[%s9164_s19 + $0x94] sm:$0xf] }
  0x7b   : > { %7906 = vmatmul.mubr.bf16.gmra.mrb[16].mxu1 %v6670_v49  ;;  %v2484_v58 = vsel %vm9189_vm2, %v2479_v51, %v2483_v41  ;;  %v608_v59 = vrot.slane %v606_v52, 5  ;;  %v2495_v60 = vshll.u32 %v9406_v48, 16  ;;  %v2499_v61 = vshrl.u32 %v9406_v48, 16 }
  0x7c   : > { %v6910_v63 = vcombine.low %v2474_v50, %v2484_v58  ;;  %v594_v0 = vrot.slane %v593_v53, 4  ;;  %v603_v1 = vor.u32 %v602_v54, %v598_v46  ;;  %v2488_v2 = vrot.slane %v2486_v56, 4 }
  0x7d   : > { %v2491_v4 = vrot.slane %v2489_v57, 5  ;;  %v2497_v6 = vrot.slane %v2495_v60, 5  ;;  %v2501_v7 = vrot.slane %v2499_v61, 4  ;;  %v2505_v9 = vshll.u32 %v6869_v55, 16  ;;  %v339_v55 = vld [vmem:[%s9164_s19 + $0x98] sm:$0x1] }
  0x7e   : > { %8098 = vmatmul.mubr.bf16.gmra.mrb[16].mxu0 %v6910_v63  ;;  %v599_v13 = vsel %vm9189_vm2, %v594_v0, %v598_v46  ;;  %v604_v14 = vrot.slane %v603_v1, 4  ;;  %v611_v15 = vshrl.u32 %v301_v62, 16  ;;  %v614_v16 = vshll.u32 %v301_v62, 16  ;;  %v6873_v60 = vld [vmem:[%s9164_s19 + $0x9c] sm:$0xf] }
  0x7f   : > { %v2492_v19 = vor.u32 %v2491_v4, %v2488_v2  ;;  %v2502_v17 = vor.u32 %v2501_v7, %v2497_v6  ;;  %v2507_v20 = vrot.slane %v2505_v9, 5  ;;  %v620_v21 = vshll.u32 %v302_v3, 16  ;;  %v9450_v1 = vld [vmem:[%s9164_s19 + $0xa0] sm:$0xf] }
  0x80   : > { %v609_v22 = vsel %vm9189_vm2, %v604_v14, %v608_v59  ;;  %v613_v23 = vrot.slane %v611_v15, 4  ;;  %v616_v25 = vrot.slane %v614_v16, 5  ;;  %v624_v27 = vshrl.u32 %v302_v3, 16 }
  0x81   : > { %v6671_v28 = vcombine.low %v599_v13, %v609_v22  ;;  %v2493_v29 = vrot.slane %v2492_v19, 4  ;;  %v2503_v30 = vrot.slane %v2502_v17, 4  ;;  %v622_v11 = vrot.slane %v620_v21, 5  ;;  %v9456_v13 = vld [vmem:[%s9164_s19 + $0xa4] sm:$0x1] }
  0x82   : > { %v617_v33 = vor.u32 %v616_v25, %v613_v23  ;;  %v626_v34 = vrot.slane %v624_v27, 4  ;;  %v630_v37 = vshll.u32 %v338_v10, 16  ;;  %v2510_v38 = vshrl.u32 %v6870_v12, 16  ;;  %v9461_v23 = vld [vmem:[%s9164_s19 + $0x9c] sm:$0xf] }
  0x83   : > { %7909 = vmatprep.mubr.bf16.mxu1 %v6671_v28  ;;  %v2498_v41 = vsel %vm9189_vm2, %v2493_v29, %v2497_v6  ;;  %v2508_v42 = vsel %vm9189_vm2, %v2503_v30, %v2507_v20  ;;  %v2513_v43 = vshll.u32 %v6870_v12, 16  ;;  %v2519_v44 = vshll.u32 %v9422_v18, 16  ;;  %v9464_v25 = vld [vmem:[%s9164_s19 + $0xa0] sm:$0xf] }
  0x84   : > { %v6911_v46 = vcombine.low %v2498_v41, %v2508_v42  ;;  %v618_v47 = vrot.slane %v617_v33, 4  ;;  %v627_v49 = vor.u32 %v626_v34, %v622_v11  ;;  %v632_v50 = vrot.slane %v630_v37, 5 }
  0x85   : > { %v2512_v51 = vrot.slane %v2510_v38, 4  ;;  %v2515_v52 = vrot.slane %v2513_v43, 5  ;;  %v2521_v53 = vrot.slane %v2519_v44, 5  ;;  %v2523_v54 = vshrl.u32 %v9422_v18, 16  ;;  %v340_v38 = vld [vmem:[%s9164_s19 + $0xa4] sm:$0x1] }
  0x86   : > { %8101 = vmatprep.mubr.bf16.mxu0 %v6911_v46  ;;  %v623_v56 = vsel %vm9189_vm2, %v618_v47, %v622_v11  ;;  %v628_v57 = vrot.slane %v627_v49, 4  ;;  %v2529_v58 = vshll.u32 %v9427_v32, 16  ;;  %v635_v59 = vshrl.u32 %v9430_v39, 16 }
  0x87   : > { %v2516_v61 = vor.u32 %v2515_v52, %v2512_v51  ;;  %v2525_v62 = vrot.slane %v2523_v54, 4  ;;  %v638_v63 = vshll.u32 %v9430_v39, 16  ;;  %v644_v0 = vshll.u32 %v9438_v45, 16  ;;  %v6876_v51 = vld [vmem:[%s9164_s19 + $0xa8] sm:$0xf] }
  0x88   : > { %v633_v2 = vsel %vm9189_vm2, %v628_v57, %v632_v50  ;;  %v2531_v3 = vrot.slane %v2529_v58, 5  ;;  %v637_v4 = vrot.slane %v635_v59, 4  ;;  %v648_v6 = vshrl.u32 %v9438_v45, 16 }
  0x89   : > { %v6672_v7 = vcombine.low %v623_v56, %v633_v2  ;;  %v2517_v9 = vrot.slane %v2516_v61, 4  ;;  %v2526_v10 = vor.u32 %v2525_v62, %v2521_v53  ;;  %v640_v12 = vrot.slane %v638_v63, 5  ;;  %v9481_v56 = vld [vmem:[%s9164_s19 + $0xac] sm:$0xf]  ;;  %v9485_v2 = vld [vmem:[%s9164_s19 + $0xb0] sm:$0x1] }
  0x8a   : > { %v646_v14 = vrot.slane %v644_v0, 5  ;;  %v650_v15 = vrot.slane %v648_v6, 4  ;;  %v654_v16 = vshll.u32 %v339_v55, 16  ;;  %v2534_v19 = vshrl.u32 %v6873_v60, 16 }
  0x8b   : > { %7910 = vmatmul.mubr.bf16.gmra.mrb[20].mxu1 %v6672_v7  ;;  %v2522_v17 = vsel %vm9189_vm2, %v2517_v9, %v2521_v53  ;;  %v2527_v20 = vrot.slane %v2526_v10, 4  ;;  %v641_v21 = vor.u32 %v640_v12, %v637_v4  ;;  %v2537_v22 = vshll.u32 %v6873_v60, 16 }
  0x8c   : > { %v651_v27 = vor.u32 %v650_v15, %v646_v14  ;;  %v656_v28 = vrot.slane %v654_v16, 5  ;;  %v2536_v29 = vrot.slane %v2534_v19, 4  ;;  %v2543_v30 = vshll.u32 %v9450_v1, 16  ;;  %v9491_v15 = vld [vmem:[%s9164_s19 + $0xa8] sm:$0xf] }
  0x8d   : > { %v2532_v11 = vsel %vm9189_vm2, %v2527_v20, %v2531_v3  ;;  %v642_v33 = vrot.slane %v641_v21, 4  ;;  %v2539_v34 = vrot.slane %v2537_v22, 5  ;;  %v2547_v37 = vshrl.u32 %v9450_v1, 16  ;;  %v9497_v21 = vld [vmem:[%s9164_s19 + $0xac] sm:$0xf] }
  0x8e   : > { %v6912_v41 = vcombine.low %v2522_v17, %v2532_v11  ;;  %v652_v42 = vrot.slane %v651_v27, 4  ;;  %v2545_v43 = vrot.slane %v2543_v30, 5  ;;  %v2553_v44 = vshll.u32 %v9456_v13, 16  ;;  %v341_v30 = vld [vmem:[%s9164_s19 + $0xb0] sm:$0x1] }
  0x8f   : > { %v647_v46 = vsel %vm9189_vm2, %v642_v33, %v646_v14  ;;  %v2540_v47 = vor.u32 %v2539_v34, %v2536_v29  ;;  %v2549_v49 = vrot.slane %v2547_v37, 4  ;;  %v659_v50 = vshrl.u32 %v9461_v23, 16 }
  0x90   : > { %8102 = vmatmul.mubr.bf16.gmra.mrb[20].mxu0 %v6912_v41  ;;  %v657_v52 = vsel %vm9189_vm2, %v652_v42, %v656_v28  ;;  %v2555_v53 = vrot.slane %v2553_v44, 5  ;;  %v662_v54 = vshll.u32 %v9461_v23, 16  ;;  %v668_v55 = vshll.u32 %v9464_v25, 16 }
  0x91   : > { %v6673_v57 = vcombine.low %v647_v46, %v657_v52  ;;  %v2541_v58 = vrot.slane %v2540_v47, 4  ;;  %v2550_v59 = vor.u32 %v2549_v49, %v2545_v43  ;;  %v661_v60 = vrot.slane %v659_v50, 4 }
  0x92   : > { %v664_v61 = vrot.slane %v662_v54, 5  ;;  %v670_v62 = vrot.slane %v668_v55, 5  ;;  %v672_v63 = vshrl.u32 %v9464_v25, 16  ;;  %v678_v0 = vshll.u32 %v340_v38, 16  ;;  %v6879_v38 = vld [vmem:[%s9164_s19 + $0xb4] sm:$0xf] }
  0x93   : > { %7913 = vmatprep.mubr.bf16.mxu1 %v6673_v57  ;;  %v2546_v3 = vsel %vm9189_vm2, %v2541_v58, %v2545_v43  ;;  %v2551_v4 = vrot.slane %v2550_v59, 4  ;;  %v2558_v6 = vshrl.u32 %v6876_v51, 16  ;;  %v2561_v7 = vshll.u32 %v6876_v51, 16  ;;  %v9508_v51 = vld [vmem:[%s9164_s19 + $0xb8] sm:$0xf] }
  0x94   : > { %v665_v9 = vor.u32 %v664_v61, %v661_v60  ;;  %v674_v10 = vrot.slane %v672_v63, 4  ;;  %v680_v12 = vrot.slane %v678_v0, 5  ;;  %v2567_v14 = vshll.u32 %v9481_v56, 16  ;;  %v9514_v57 = vld [vmem:[%s9164_s19 + $0xbc] sm:$0x1] }
  0x95   : > { %v2556_v16 = vsel %vm9189_vm2, %v2551_v4, %v2555_v53  ;;  %v2560_v19 = vrot.slane %v2558_v6, 4  ;;  %v2563_v17 = vrot.slane %v2561_v7, 5  ;;  %v2571_v20 = vshrl.u32 %v9481_v56, 16 }
  0x96   : > { %v6913_v22 = vcombine.low %v2546_v3, %v2556_v16  ;;  %v666_v27 = vrot.slane %v665_v9, 4  ;;  %v675_v28 = vor.u32 %v674_v10, %v670_v62  ;;  %v2569_v29 = vrot.slane %v2567_v14, 5 }
  0x97   : > { %v2564_v11 = vor.u32 %v2563_v17, %v2560_v19  ;;  %v2573_v33 = vrot.slane %v2571_v20, 4  ;;  %v2577_v34 = vshll.u32 %v9485_v2, 16  ;;  %v683_v37 = vshrl.u32 %v9491_v15, 16  ;;  %v9526_v17 = vld [vmem:[%s9164_s19 + $0xb8] sm:$0xf] }
  0x98   : > { %8105 = vmatprep.mubr.bf16.mxu0 %v6913_v22  ;;  %v671_v41 = vsel %vm9189_vm2, %v666_v27, %v670_v62  ;;  %v676_v42 = vrot.slane %v675_v28, 4  ;;  %v686_v43 = vshll.u32 %v9491_v15, 16  ;;  %v692_v44 = vshll.u32 %v9497_v21, 16  ;;  %v9519_v62 = vld [vmem:[%s9164_s19 + $0xb4] sm:$0xf] }
  0x99   : > { %v2565_v46 = vrot.slane %v2564_v11, 4  ;;  %v2574_v47 = vor.u32 %v2573_v33, %v2569_v29  ;;  %v2579_v49 = vrot.slane %v2577_v34, 5  ;;  %v685_v50 = vrot.slane %v683_v37, 4 }
  0x9a   : > { %v681_v52 = vsel %vm9189_vm2, %v676_v42, %v680_v12  ;;  %v688_v53 = vrot.slane %v686_v43, 5  ;;  %v694_v54 = vrot.slane %v692_v44, 5  ;;  %v696_v55 = vshrl.u32 %v9497_v21, 16 }
  0x9b   : > { %v6674_v58 = vcombine.low %v671_v41, %v681_v52  ;;  %v2570_v59 = vsel %vm9189_vm2, %v2565_v46, %v2569_v29  ;;  %v2575_v60 = vrot.slane %v2574_v47, 4  ;;  %v702_v61 = vshll.u32 %v341_v30, 16  ;;  %v342_v29 = vld [vmem:[%s9164_s19 + $0xbc] sm:$0x1]  ;;  %v6882_v30 = vld [vmem:[%s9164_s19 + $0xc0] sm:$0xf] }
  0x9c   : > { %v689_v63 = vor.u32 %v688_v53, %v685_v50  ;;  %v698_v0 = vrot.slane %v696_v55, 4  ;;  %v2582_v3 = vshrl.u32 %v6879_v38, 16  ;;  %v2585_v4 = vshll.u32 %v6879_v38, 16  ;;  %v9540_v50 = vld [vmem:[%s9164_s19 + $0xc4] sm:$0xf] }
  0x9d   : > { %7914 = vmatmul.mubr.bf16.gmra.mrb[24].mxu1 %v6674_v58  ;;  %v2580_v6 = vsel %vm9189_vm2, %v2575_v60, %v2579_v49  ;;  %v704_v7 = vrot.slane %v702_v61, 5  ;;  %v2591_v9 = vshll.u32 %v9508_v51, 16  ;;  %v2595_v10 = vshrl.u32 %v9508_v51, 16  ;;  %v9543_v58 = vld [vmem:[%s9164_s19 + $0xc8] sm:$0x1] }
  0x9e   : > { %v6914_v12 = vcombine.low %v2570_v59, %v2580_v6  ;;  %v690_v14 = vrot.slane %v689_v63, 4  ;;  %v699_v16 = vor.u32 %v698_v0, %v694_v54  ;;  %v2584_v19 = vrot.slane %v2582_v3, 4 }
  0x9f   : > { %v2587_v20 = vrot.slane %v2585_v4, 5  ;;  %v2593_v22 = vrot.slane %v2591_v9, 5  ;;  %v2597_v27 = vrot.slane %v2595_v10, 4  ;;  %v2601_v28 = vshll.u32 %v9514_v57, 16 }
  0xa0   : > { %8106 = vmatmul.mubr.bf16.gmra.mrb[24].mxu0 %v6914_v12  ;;  %v695_v11 = vsel %vm9189_vm2, %v690_v14, %v694_v54  ;;  %v700_v33 = vrot.slane %v699_v16, 4  ;;  %v707_v34 = vshrl.u32 %v9519_v62, 16  ;;  %v710_v37 = vshll.u32 %v9519_v62, 16  ;;  %v6925_v14 = vld [vmem:[%s9164_s19 + $0xc] sm:$0xe] }
  0xa1   : > { %v2588_v38 = vor.u32 %v2587_v20, %v2584_v19  ;;  %v2598_v41 = vor.u32 %v2597_v27, %v2593_v22  ;;  %v2603_v42 = vrot.slane %v2601_v28, 5  ;;  %v716_v43 = vshll.u32 %v9526_v17, 16 }
  0xa2   : > { %v705_v44 = vsel %vm9189_vm2, %v700_v33, %v704_v7  ;;  %v709_v46 = vrot.slane %v707_v34, 4  ;;  %v712_v47 = vrot.slane %v710_v37, 5  ;;  %v720_v49 = vshrl.u32 %v9526_v17, 16  ;;  %v8794_v37 = vld [vmem:[%s9164_s19] sm:$0xf] }
  0xa3   : > { %v6675_v52 = vcombine.low %v695_v11, %v705_v44  ;;  %v2589_v53 = vrot.slane %v2588_v38, 4  ;;  %v2599_v54 = vrot.slane %v2598_v41, 4  ;;  %v718_v55 = vrot.slane %v716_v43, 5  ;;  %v9560_v38 = vld [vmem:[%s9164_s19 + $0x4] sm:$0xf] }
  0xa4   : > { %v713_v59 = vor.u32 %v712_v47, %v709_v46  ;;  %v722_v60 = vrot.slane %v720_v49, 4  ;;  %v726_v61 = vshll.u32 %v342_v29, 16  ;;  %v2606_v63 = vshrl.u32 %v6882_v30, 16  ;;  %v8796_v44 = vld [vmem:[%s9164_s19 + $0x10] sm:$0xf] }
  0xa5   : > { %7917 = vmatprep.mubr.bf16.mxu1 %v6675_v52  ;;  %v2594_v0 = vsel %vm9189_vm2, %v2589_v53, %v2593_v22  ;;  %v2604_v3 = vsel %vm9189_vm2, %v2599_v54, %v2603_v42  ;;  %v2609_v4 = vshll.u32 %v6882_v30, 16  ;;  %v2615_v6 = vshll.u32 %v9540_v50, 16  ;;  %v6926_v30 = vld [vmem:[%s9164_s19 + $0x18] sm:$0xe]  ;;  %v6927_v47 = vld [vmem:[%s9164_s19 + $0x24] sm:$0xe] }
  0xa6   : > { %v6915_v7 = vcombine.low %v2594_v0, %v2604_v3  ;;  %v714_v9 = vrot.slane %v713_v59, 4  ;;  %v723_v10 = vor.u32 %v722_v60, %v718_v55  ;;  %v728_v12 = vrot.slane %v726_v61, 5 }
  0xa7   : > { %v2608_v16 = vrot.slane %v2606_v63, 4  ;;  %v2611_v19 = vrot.slane %v2609_v4, 5  ;;  %v2617_v20 = vrot.slane %v2615_v6, 5  ;;  %v2619_v27 = vshrl.u32 %v9540_v50, 16 }
  0xa8   : > { %8109 = vmatprep.mubr.bf16.mxu0 %v6915_v7  ;;  %v719_v22 = vsel %vm9189_vm2, %v714_v9, %v718_v55  ;;  %v724_v28 = vrot.slane %v723_v10, 4  ;;  %v2625_v29 = vshll.u32 %v9543_v58, 16  ;;  %v6685_v41 = vcombine.low %v8794_v37, %v9560_v38  ;;  %v6929_v37 = vld [vmem:[%s9164_s19 + $0x3c] sm:$0xe] }
  0xa9   : > { %v2612_v11 = vor.u32 %v2611_v19, %v2608_v16  ;;  %v2621_v33 = vrot.slane %v2619_v27, 4  ;;  %v6941_v43 = vrot.slane %v6925_v14, 9  ;;  %v3017_v46 = vrot.slane %v8796_v44, 5  ;;  %v8801_v16 = vld [vmem:[%s9164_s19 + $0x18] sm:$0xf] }
  0xaa   : > { %v729_v34 = vsel %vm9189_vm2, %v724_v28, %v728_v12  ;;  %v2627_v54 = vrot.slane %v2625_v29, 5  ;;  %v6942_v60 = vrot.slane %v6926_v30, 9  ;;  %v9576_v61 = vsel %vm9563_vm5, %v9241_v35, %v3027_v31  ;;  %v8797_v35 = vld [vmem:[%s9164_s19 + $0x28] sm:$0xf]  ;;  %v8799_v12 = vld [vmem:[%s9164_s19 + $0xc] sm:$0xf] }
  0xab   : > { %v6676_v49 = vcombine.low %v719_v22, %v729_v34  ;;  %v2613_v52 = vrot.slane %v2612_v11, 4  ;;  %v2622_v53 = vor.u32 %v2621_v33, %v2617_v20  ;;  %v3018_v55 = vsel %vm9563_vm5, %v6941_v43, %v3017_v46  ;;  %v9600_v19 = vld [vmem:[%s9164_s19 + $0x1c] sm:$0xf]  ;;  %v6928_v27 = vld [vmem:[%s9164_s19 + $0x30] sm:$0xe]  ;;  %v8705_v29 = vld [vmem:[%s11454_s1 + $0x88] sm:$0xff]  }
  0xac   : > { %v3019_v59 = vrot.slane %v3017_v46, 4  ;;  %v3025_v8 = vsel %vm9563_vm5, %v6942_v60, %v3024_v26  ;;  %v6943_v31 = vrot.slane %v6927_v47, 9  ;;  %v3031_v4 = vrot.slane %v8797_v35, 5  ;;  %v9595_v26 = vld [vmem:[%s9164_s19 + $0x10] sm:$0xf]  ;;  %v8806_v47 = vld [vmem:[%s11454_s1 + $0x80] sm:$0xff]  }
  0xad   : > { %7918 = vmatmul.mubr.bf16.gmra.mrb[28].mxu1 %v6676_v49  ;;  %v2618_v63 = vsel %vm9189_vm2, %v2613_v52, %v2617_v20  ;;  %v2623_v0 = vrot.slane %v2622_v53, 4  ;;  %v6974_v24 = vcombine.low %v3025_v8, %v9576_v61  ;;  %v3034_v10 = vrot.slane %v8798_v5, 5  ;;  %v8803_v22 = vld [vmem:[%s9164_s19 + $0x34] sm:$0xf]  ;;  %v8804_v30 = vld [vmem:[%s9164_s19 + $0x40] sm:$0xf] }
  0xae   : > { %7937 = vmatprep.mubr.bf16.mxu1 %v6685_v41  ;;  %v3021_v3 = vsel %vm9563_vm5, %v3019_v59, %v3020_v40  ;;  %v3033_v40 = vrot.slane %v3031_v4, 4  ;;  %v6686_v14 = vcombine.low %v8799_v12, %v9595_v26  ;;  %v6687_v20 = vcombine.low %v8801_v16, %v9600_v19  ;;  %v6930_v41 = vld [vmem:[%s9164_s19 + $0x48] sm:$0xe]  ;;  %v8805_v44 = vld [vmem:[%s9164_s19 + $0x38] sm:$0x1] }
  0xaf   : > { %v2628_v6 = vsel %vm9189_vm2, %v2623_v0, %v2627_v54  ;;  %v6973_v7 = vcombine.low %v3018_v55, %v3021_v3  ;;  %v3038_v28 = vrot.slane %v8803_v22, 5  ;;  %v3045_v11 = vrot.slane %v8804_v30, 5  ;;  %v8807_v52 = vld [vmem:[%s9164_s19 + $0x4c] sm:$0xf]  ;;  %v8808_v61 = vld [vmem:[%s9164_s19 + $0x44] sm:$0x1] }
  0xb0   : > { %v6916_v9 = vcombine.low %v2618_v63, %v2628_v6  ;;  %v3032_v33 = vsel %vm9563_vm5, %v6943_v31, %v3031_v4  ;;  %v3035_v34 = vsel %vm9563_vm5, %v3033_v40, %v3034_v10  ;;  %v6944_v43 = vrot.slane %v6928_v27, 9  ;;  %v8704_v55 = vld [vmem:[%s11454_s1 + $0x188] sm:$0xff]   ;;  %v8709_v0 = vld [vmem:[%s11454_s1 + $0x90] sm:$0xff]   ;;  %v8809_v3 = vld [vmem:[%s9164_s19 + $0x24] sm:$0xf] }
  0xb1   : > { %v3041_v46 = vrot.slane %v8805_v44, 5  ;;  %v3040_v49 = vrot.slane %v3038_v28, 4  ;;  %v3052_v53 = vrot.slane %v8807_v52, 5  ;;  %v6975_v54 = vcombine.low %v3032_v33, %v3035_v34  ;;  %v9629_v8 = vld [vmem:[%s9164_s19 + $0x28] sm:$0xf]  ;;  %v8713_v10 = vld [vmem:[%s11454_s1 + $0x98] sm:$0xff]  }
  0xb2   : > { %8110 = vmatmul.mubr.bf16.gmra.mrb[28].mxu0 %v6916_v9  ;;  %v6945_v59 = vrot.slane %v6929_v37, 9  ;;  %v3047_v60 = vrot.slane %v3045_v11, 4  ;;  %v3048_v63 = vrot.slane %v8808_v61, 5  ;;  %v6688_v31 = vcombine.low %v8809_v3, %v9629_v8  ;;  %v8811_v35 = vld [vmem:[%s9164_s19 + $0x30] sm:$0xf]  ;;  %v8815_v22 = vld [vmem:[%s11454_s1 + $0x180] sm:$0xff]  }
  0xb3   : > { %8129 = vmatprep.mubr.bf16.mxu0 %v6973_v7  ;;  %v9634_v4 = vld [vmem:[%s9164_s19 + $0x34] sm:$0xf]  ;;  %v6946_v7 = vrot.slane %v6930_v41, 9  ;;  %v8813_v9 = vld [vmem:[%s9164_s19 + $0x50] sm:$0x1]  ;;  %v3039_v12 = vsel %vm9563_vm5, %v6944_v43, %v3038_v28  ;;  %v3054_v16 = vrot.slane %v3052_v53, 4 }
  0xb4   : > { %v6689_v6 = vcombine.low %v8811_v35, %v9634_v4  ;;  %v3055_v40 = vrot.slane %v8813_v9, 5  ;;  %v6931_v5 = vld [vmem:[%s9164_s19 + $0x54] sm:$0xe]  ;;  %v3049_v28 = vsel %vm9563_vm5, %v3047_v60, %v3048_v63  ;;  %v9655_v30 = vld [vmem:[%s9164_s19 + $0x60] sm:$0xe]  ;;  %v3094_v35 = vrot.slane %v9422_v18, 5 }
  0xb5   : > { %7938 = vmatmul.mubr.bf16.vlgmr.msra.gmra.mrb[0].mxu1 %v6686_v14  ;;  %v3042_v14 = vsel %vm9563_vm5, %v3040_v49, %v3041_v46  ;;  %v8708_v33 = vld [vmem:[%s11454_s1 + $0x190] sm:$0xff]   ;;  %v6947_v34 = vrot.slane %v6931_v5, 9  ;;  %v8816_v41 = vld [vmem:[%s9164_s19 + $0x3c] sm:$0xf]  ;;  %v9668_v44 = vsel %vm9563_vm5, %v6946_v7, %v3052_v53  ;;  %v9671_v46 = vld [vmem:[%s9164_s19 + $0x6c] sm:$0xe] }
  0xb6   : > { %7970 = vmatpush3.bf16.msra.mxu1 %v8806_v47  ;;  %7941 = vmatprep.mubr.bf16.mxu1 %v6687_v20  ;;  %v8814_v20 = vld [vmem:[%s9164_s19 + $0x58] sm:$0xf]  ;;  %v6976_v37 = vcombine.low %v3039_v12, %v3042_v14  ;;  %v9675_v49 = vsel %vm9563_vm5, %v3054_v16, %v3055_v40  ;;  %v8717_v60 = vld [vmem:[%s11454_s1 + $0xa0] sm:$0xff]   ;;  %v6937_v61 = vld [vmem:[%s9164_s19 + $0x9c] sm:$0xe]  ;;  %v6948_v3 = vrot.slane %v9655_v30, 9 }
  0xb7   : > { %7971 = vmatprep.subr.bf16.mxu1 %v8705_v29  ;;  %v3059_v27 = vrot.slane %v8814_v20, 5  ;;  %v8712_v53 = vld [vmem:[%s11454_s1 + $0x198] sm:$0xff]   ;;  %v8820_v7 = vld [vmem:[%s9164_s19 + $0x48] sm:$0xf]  ;;  %v9694_v9 = vld [vmem:[%s9164_s19 + $0x4c] sm:$0xf]  ;;  %v6978_v20 = vcombine.low %v9668_v44, %v9675_v49 }
  0xb8   : > { %v8819_v63 = vld [vmem:[%s9164_s19 + $0x5c] sm:$0x1]  ;;  %v6691_v40 = vcombine.low %v8820_v7, %v9694_v9  ;;  %v9706_v14 = vld [vmem:[%s9164_s19 + $0x70] sm:$0xf]  ;;  %v6939_v18 = vld [vmem:[%s9164_s19 + $0xb4] sm:$0xe] }
  0xb9   : > { %v3061_v52 = vrot.slane %v3059_v27, 4  ;;  %v9699_v5 = vsel %vm9563_vm5, %v6947_v34, %v3059_v27  ;;  %v3073_v16 = vrot.slane %v9706_v14, 5  ;;  %v3097_v27 = vrot.slane %v9427_v32, 5 }
  0xba   : > { %8130 = vmatmul.mubr.bf16.vlgmr.msra.gmra.mrb[0].mxu0 %v6974_v24  ;;  %7972 = vmatpush3.bf16.msra.mxu1 %v8705_v29  ;;  %v3046_v24 = vsel %vm9563_vm5, %v6945_v59, %v3045_v11  ;;  %v6936_v29 = vld [vmem:[%s9164_s19 + $0x90] sm:$0xe]  ;;  %v9663_v11 = vld [vmem:[%s9164_s19 + $0x40] sm:$0xf]  ;;  %v6949_v34 = vrot.slane %v9671_v46, 9  ;;  %v6953_v44 = vrot.slane %v6937_v61, 9 }
  0xbb   : > { %8162 = vmatpush3.bf16.msra.mxu0 %v8815_v22  ;;  %8133 = vmatprep.mubr.bf16.mxu0 %v6975_v54  ;;  %v6690_v43 = vcombine.low %v8816_v41, %v9663_v11  ;;  %v6977_v47 = vcombine.low %v3046_v24, %v3049_v28  ;;  %v9678_v54 = vld [vmem:[%s9164_s19 + $0x64] sm:$0xf]  ;;  %v3096_v24 = vrot.slane %v3094_v35, 4  ;;  %v8721_v28 = vld [vmem:[%s11454_s1 + $0xa8] sm:$0xff]   ;;  %v3101_v49 = vrot.slane %v9450_v1, 5 }
  0xbc   : > { %8163 = vmatprep.subr.bf16.mxu0 %v8704_v55  ;;  %7973 = vmatprep.subr.bf16.mxu1 %v8709_v0  ;;  %v3066_v59 = vrot.slane %v9678_v54, 5  ;;  %v8716_v41 = vld [vmem:[%s11454_s1 + $0x1a0] sm:$0xff]   ;;  %v6955_v7 = vrot.slane %v6939_v18, 9  ;;  %v3122_v18 = vrot.slane %v9540_v50, 5  ;;  %v8729_v54 = vld [vmem:[%s11454_s1 + $0xb8] sm:$0xff]   ;;  %v3074_v30 = vsel %vm9563_vm5, %v6949_v34, %v3073_v16 }
  0xbd   : > { %7942 = vmatmul.mubr.bf16.gmra.mrb[4].mxu1 %v6688_v31  ;;  %v6952_v31 = vrot.slane %v6936_v29, 9  ;;  %v9739_v1 = vsel %vm9563_vm5, %v6953_v44, %v3101_v49  ;;  %v3125_v44 = vrot.slane %v9543_v58, 5  ;;  %v6935_v46 = vld [vmem:[%s9164_s19 + $0x84] sm:$0xe] }
  0xbe   : > { %7945 = vmatprep.mubr.bf16.mxu1 %v6689_v6  ;;  %7974 = vmatpush3.bf16.msra.mxu1 %v8709_v0  ;;  %v3062_v0 = vrot.slane %v8819_v63, 5  ;;  %v6938_v6 = vld [vmem:[%s9164_s19 + $0xa8] sm:$0xe]  ;;  %v3068_v29 = vrot.slane %v3066_v59, 4 }
  0xbf   : > { %8164 = vmatpush3.bf16.msra.mxu0 %v8704_v55  ;;  %7975 = vmatprep.subr.bf16.mxu1 %v8713_v10  ;;  %v9702_v55 = vld [vmem:[%s9164_s19 + $0x68] sm:$0x1]  ;;  %v9714_v22 = vsel %vm9563_vm5, %v6952_v31, %v3094_v35  ;;  %v3104_v31 = vrot.slane %v9456_v13, 5  ;;  %v3108_v35 = vrot.slane %v9481_v56, 5  ;;  %v3111_v13 = vrot.slane %v9485_v2, 5 }
  0xc0   : > { %8165 = vmatprep.subr.bf16.mxu0 %v8708_v33  ;;  %v3069_v12 = vrot.slane %v9702_v55, 5  ;;  %v3063_v32 = vsel %vm9563_vm5, %v3061_v52, %v3062_v0  ;;  %v6940_v52 = vld [vmem:[%s9164_s19 + $0xc0] sm:$0xe]  ;;  %v3075_v0 = vrot.slane %v3073_v16, 4  ;;  %v3087_v55 = vrot.slane %v9406_v48, 5 }
  0xc2   : > { %8134 = vmatmul.mubr.bf16.gmra.mrb[4].mxu0 %v6976_v37  ;;  %7976 = vmatpush3.bf16.msra.mxu1 %v8713_v10  ;;  %v8824_v37 = vld [vmem:[%s9164_s19 + $0x74] sm:$0x1]  ;;  %v9732_v10 = vsel %vm9563_vm5, %v3096_v24, %v3097_v27  ;;  %v6979_v24 = vcombine.low %v9699_v5, %v3063_v32  ;;  %v9773_v32 = vld [vmem:[%s9164_s19 + $0x58] sm:$0xf] }
  0xc3   : > { %8137 = vmatprep.mubr.bf16.mxu0 %v6977_v47  ;;  %8166 = vmatpush3.bf16.msra.mxu0 %v8708_v33  ;;  %v3076_v63 = vrot.slane %v8824_v37, 5  ;;  %v6984_v61 = vcombine.low %v9714_v22, %v9732_v10  ;;  %v3103_v33 = vrot.slane %v3101_v49, 4  ;;  %v6954_v47 = vrot.slane %v6938_v6, 9  ;;  %v8825_v49 = vld [vmem:[%s9164_s19 + $0x54] sm:$0xf] }
  0xc4   : > { %8167 = vmatprep.subr.bf16.mxu0 %v8712_v53  ;;  %7977 = vmatprep.subr.bf16.mxu1 %v8717_v60  ;;  %v3115_v6 = vrot.slane %v9508_v51, 5  ;;  %v8720_v51 = vld [vmem:[%s11454_s1 + $0x1a8] sm:$0xff]   ;;  %v6692_v37 = vcombine.low %v8825_v49, %v9773_v32  ;;  %v9843_v49 = vld [vmem:[%s9164_s19 + $0x70] sm:$0xf]  ;;  %v1399_v10 = vrot.slane %v9629_v8, 5 }
  0xc5   : > { %7946 = vmatmul.mubr.bf16.gmra.mrb[8].mxu1 %v6690_v43  ;;  %v9749_v27 = vsel %vm9563_vm5, %v3103_v33, %v3104_v31  ;;  %v3118_v43 = vrot.slane %v9514_v57, 5  ;;  %v9757_v2 = vsel %vm9563_vm5, %v6954_v47, %v3108_v35  ;;  %v8725_v57 = vld [vmem:[%s11454_s1 + $0xb0] sm:$0xff]   ;;  %v8827_v31 = vld [vmem:[%s9164_s19 + $0x60] sm:$0xf]  ;;  %v9778_v33 = vld [vmem:[%s9164_s19 + $0x64] sm:$0xf] }
  0xc6   : > { %7949 = vmatprep.mubr.bf16.mxu1 %v6691_v40  ;;  %7978 = vmatpush3.bf16.msra.mxu1 %v8717_v60  ;;  %v6985_v56 = vcombine.low %v9739_v1, %v9749_v27  ;;  %v3110_v60 = vrot.slane %v3108_v35, 4  ;;  %v6956_v40 = vrot.slane %v6940_v52, 9  ;;  %v3117_v5 = vrot.slane %v3115_v6, 4  ;;  %v8840_v8 = vld [vmem:[%s9164_s19 + $0x20] sm:$0x1] }
  0xc7   : > { %8168 = vmatpush3.bf16.msra.mxu0 %v8712_v53  ;;  %7979 = vmatprep.subr.bf16.mxu1 %v8721_v28  ;;  %v9767_v53 = vsel %vm9563_vm5, %v6955_v7, %v3115_v6  ;;  %v6693_v47 = vcombine.low %v8827_v31, %v9778_v33  ;;  %v3124_v7 = vrot.slane %v3122_v18, 4  ;;  %v9848_v31 = vld [vmem:[%s9164_s19 + $0x7c] sm:$0xf] }
  0xc8   : > { %8169 = vmatprep.subr.bf16.mxu0 %v8716_v41  ;;  %v9783_v52 = vsel %vm9563_vm5, %v3110_v60, %v3111_v13  ;;  %v9789_v58 = vsel %vm9563_vm5, %v3117_v5, %v3118_v43  ;;  %v9793_v35 = vsel %vm9563_vm5, %v6956_v40, %v3122_v18  ;;  %v8829_v13 = vld [vmem:[%s9164_s19 + $0x7c] sm:$0xf]  ;;  %v6951_v60 = vrot.slane %v6935_v46, 9  ;;  %v8831_v5 = vld [vmem:[%s9164_s19 + $0x8c] sm:$0x1] }
  0xc9   : > { %v6986_v50 = vcombine.low %v9757_v2, %v9783_v52  ;;  %v3080_v6 = vrot.slane %v8829_v13, 5  ;;  %v6987_v43 = vcombine.low %v9767_v53, %v9789_v58  ;;  %v9826_v14 = vsel %vm9563_vm5, %v3124_v7, %v3125_v44  ;;  %v8832_v44 = vld [vmem:[%s9164_s19 + $0x6c] sm:$0xf]  ;;  %v1325_v46 = vld [vmem:[%s9164_s19] sm:$0xe] }
  0xca   : > { %8138 = vmatmul.mubr.bf16.gmra.mrb[8].mxu0 %v6978_v20  ;;  %7980 = vmatpush3.bf16.msra.mxu1 %v8721_v28  ;;  %v3067_v20 = vsel %vm9563_vm5, %v6948_v3, %v3066_v59  ;;  %v3070_v28 = vsel %vm9563_vm5, %v3068_v29, %v3069_v12  ;;  %v3077_v59 = vsel %vm9563_vm5, %v3075_v0, %v3076_v63  ;;  %v6934_v3 = vld [vmem:[%s9164_s19 + $0x78] sm:$0xe]  ;;  %v8724_v12 = vld [vmem:[%s11454_s1 + $0x1b0] sm:$0xff]   ;;  %v8830_v63 = vld [vmem:[%s9164_s19 + $0x80] sm:$0x1]  ;;  %v3089_v40 = vrot.slane %v3087_v55, 4 }
  0xcb   : > { %8141 = vmatprep.mubr.bf16.mxu0 %v6979_v24  ;;  %8170 = vmatpush3.bf16.msra.mxu0 %v8716_v41  ;;  %v6988_v16 = vcombine.low %v9793_v35, %v9826_v14  ;;  %v6980_v29 = vcombine.low %v3067_v20, %v3070_v28  ;;  %v6981_v48 = vcombine.low %v3074_v30, %v3077_v59  ;;  %v6950_v34 = vrot.slane %v6934_v3, 9  ;;  %v8728_v24 = vld [vmem:[%s11454_s1 + $0x1b8] sm:$0xff]   ;;  %v8836_v59 = vld [vmem:[%s9164_s19 + $0x84] sm:$0xf]  ;;  %v9868_v3 = vld [vmem:[%s9164_s19 + $0x88] sm:$0xf] }
  0xcc   : > { %8171 = vmatprep.subr.bf16.mxu0 %v8720_v51  ;;  %7981 = vmatprep.subr.bf16.mxu1 %v8725_v57  ;;  %v3082_v41 = vrot.slane %v3080_v6, 4  ;;  %v3083_v0 = vrot.slane %v8830_v63, 5  ;;  %v3090_v18 = vrot.slane %v8831_v5, 5  ;;  %v3088_v28 = vsel %vm9563_vm5, %v6951_v60, %v3087_v55  ;;  %v1326_v63 = vld [vmem:[%s9164_s19 + $0xc] sm:$0xe] }
  0xcd   : > { %7950 = vmatmul.mubr.bf16.gmra.mrb[12].mxu1 %v6692_v37  ;;  %v8834_v37 = vld [vmem:[%s9164_s19 + $0x78] sm:$0xf]  ;;  %v3081_v7 = vsel %vm9563_vm5, %v6950_v34, %v3080_v6  ;;  %v6696_v55 = vcombine.low %v8836_v59, %v9868_v3  ;;  %v8839_v60 = vld [vmem:[%s9164_s19 + $0x14] sm:$0x1]  ;;  %v1413_v5 = vrot.slane %v9663_v11, 5  ;;  %v1420_v59 = vrot.slane %v9694_v9, 5 }
  0xce   : > { %7953 = vmatprep.mubr.bf16.mxu1 %v6693_v47  ;;  %7982 = vmatpush3.bf16.msra.mxu1 %v8725_v57  ;;  %v9839_v57 = vld [vmem:[%s11454_s1 + $0xc0] sm:$0xff]   ;;  %v6695_v47 = vcombine.low %v8834_v37, %v9848_v31  ;;  %v3084_v20 = vsel %vm9563_vm5, %v3082_v41, %v3083_v0  ;;  %v3091_v13 = vsel %vm9563_vm5, %v3089_v40, %v3090_v18  ;;  %v1385_v0 = vrot.slane %v9595_v26, 5 }
  0xcf   : > { %8172 = vmatpush3.bf16.msra.mxu0 %v8720_v51  ;;  %7983 = vmatprep.subr.bf16.mxu1 %v8729_v54  ;;  %v6694_v51 = vcombine.low %v8832_v44, %v9843_v49  ;;  %v6982_v6 = vcombine.low %v3081_v7, %v3084_v20  ;;  %v6983_v30 = vcombine.low %v3088_v28, %v3091_v13  ;;  %v1388_v22 = vrot.slane %v8839_v60, 5  ;;  %v8842_v13 = vld [vmem:[%s9164_s19 + $0x38] sm:$0x1] }
  0xd0   : > { %8173 = vmatprep.subr.bf16.mxu0 %v8724_v12  ;;  %v6698_v41 = vcombine.low %v9461_v23, %v9464_v25  ;;  %v1392_v23 = vrot.slane %v9600_v19, 5  ;;  %v1328_v25 = vld [vmem:[%s9164_s19 + $0x24] sm:$0xe]  ;;  %v1387_v1 = vrot.slane %v1385_v0, 4  ;;  %v1395_v40 = vrot.slane %v8840_v8, 5  ;;  %v8737_v8 = vld [vmem:[%s11454_s1 + $0xc8] sm:$0xff]  }
  0xd1   : > { %v6700_v18 = vcombine.low %v9519_v62, %v9526_v17  ;;  %v1401_v44 = vrot.slane %v1399_v10, 4 }
  0xd2   : > { %8142 = vmatmul.mubr.bf16.gmra.mrb[12].mxu0 %v6980_v29  ;;  %7984 = vmatpush3.bf16.msra.mxu1 %v8729_v54  ;;  %v9862_v54 = vld [vmem:[%s11454_s1 + $0x1c0] sm:$0xff]   ;;  %v1378_v29 = vrot.slane %v9560_v38, 5  ;;  %v1389_v17 = vsel %vm9563_vm5, %v1387_v1, %v1388_v22 }
  0xd3   : > { %8145 = vmatprep.mubr.bf16.mxu0 %v6981_v48  ;;  %8174 = vmatpush3.bf16.msra.mxu0 %v8724_v12  ;;  %v6697_v12 = vcombine.low %v9430_v39, %v9438_v45  ;;  %v8838_v48 = vld [vmem:[%s9164_s19 + $0x8] sm:$0x1]  ;;  %v6699_v39 = vcombine.low %v9491_v15, %v9497_v21  ;;  %v6709_v45 = vrot.slane %v1325_v46, 9  ;;  %v6710_v15 = vrot.slane %v1326_v63, 9 }
  0xd4   : > { %8175 = vmatprep.subr.bf16.mxu0 %v8728_v24  ;;  %8017 = vmatprep.subr.bf16.mxu1 %v9839_v57  ;;  %v1381_v34 = vrot.slane %v8838_v48, 5  ;;  %v1380_v38 = vrot.slane %v1378_v29, 4  ;;  %v1406_v21 = vrot.slane %v9634_v4, 5  ;;  %v6712_v4 = vrot.slane %v1328_v25, 9  ;;  %v1332_v48 = vld [vmem:[%s9164_s19 + $0x54] sm:$0xe] }
  0xd5   : > { %7954 = vmatmul.mubr.bf16.gmra.mrb[16].mxu1 %v6694_v51  ;;  %v1379_v26 = vsel %vm9563_vm5, %v6709_v45, %v1378_v29  ;;  %v8841_v51 = vld [vmem:[%s9164_s19 + $0x2c] sm:$0x1]  ;;  %v9907_v7 = vsel %vm9563_vm5, %v6710_v15, %v1385_v0  ;;  %v8844_v45 = vld [vmem:[%s9164_s19 + $0x50] sm:$0x1]  ;;  %v1427_v0 = vrot.slane %v9773_v32, 5  ;;  %v6716_v1 = vrot.slane %v1332_v48, 9 }
  0xd6   : > { %7957 = vmatprep.mubr.bf16.mxu1 %v6695_v47  ;;  %v1382_v19 = vsel %vm9563_vm5, %v1380_v38, %v1381_v34  ;;  %v1402_v37 = vrot.slane %v8841_v51, 5  ;;  %v1330_v47 = vld [vmem:[%s9164_s19 + $0x3c] sm:$0xe]  ;;  %v1408_v28 = vrot.slane %v1406_v21, 4  ;;  %v9931_v46 = vsel %vm9563_vm5, %v6712_v4, %v1399_v10  ;;  %v1333_v34 = vld [vmem:[%s9164_s19 + $0x60] sm:$0xe] }
  0xd7   : > { %8176 = vmatpush3.bf16.msra.mxu0 %v8728_v24  ;;  %v1327_v24 = vld [vmem:[%s9164_s19 + $0x18] sm:$0xe]  ;;  %v6741_v62 = vcombine.low %v1379_v26, %v1382_v19  ;;  %v6714_v52 = vrot.slane %v1330_v47, 9  ;;  %v6742_v58 = vcombine.low %v9907_v7, %v1389_v17  ;;  %v1423_v63 = vrot.slane %v8844_v45, 5  ;;  %v1334_v38 = vld [vmem:[%s9164_s19 + $0x6c] sm:$0xe] }
  0xd8   : > { %8209 = vmatprep.subr.bf16.mxu0 %v9862_v54  ;;  %v6711_v27 = vrot.slane %v1327_v24, 9  ;;  %v9935_v9 = vsel %vm9563_vm5, %v1401_v44, %v1402_v37  ;;  %v1335_v24 = vld [vmem:[%s9164_s19 + $0x78] sm:$0xe]  ;;  %v1434_v10 = vrot.slane %v9778_v33, 5  ;;  %v1448_v26 = vrot.slane %v9848_v31, 5 }
  0xd9   : > { %v6744_v25 = vcombine.low %v9931_v46, %v9935_v9  ;;  %v9959_v60 = vsel %vm9563_vm5, %v6714_v52, %v1413_v5  ;;  %v1455_v33 = vrot.slane %v9868_v3, 5  ;;  %v6718_v14 = vrot.slane %v1334_v38, 9  ;;  %v8848_v37 = vld [vmem:[%s9164_s19 + $0x80] sm:$0x1]  ;;  %v7069_v48 = vld [vmem:[%s9164_s19 + $0x18] sm:$0xf] }
  0xda   : > { %8146 = vmatmul.mubr.bf16.gmra.mrb[16].mxu0 %v6982_v6  ;;  %v1409_v6 = vrot.slane %v8842_v13, 5  ;;  %v9918_v11 = vsel %vm9563_vm5, %v6711_v27, %v1392_v23  ;;  %v8845_v27 = vld [vmem:[%s9164_s19 + $0x5c] sm:$0x1]  ;;  %v1436_v35 = vrot.slane %v1434_v10, 4  ;;  %v6719_v4 = vrot.slane %v1335_v24, 9 }
  0xdb   : > { %8149 = vmatprep.mubr.bf16.mxu0 %v6983_v30  ;;  %v1331_v30 = vld [vmem:[%s9164_s19 + $0x48] sm:$0xe]  ;;  %v1430_v19 = vrot.slane %v8845_v27, 5  ;;  %v1450_v51 = vrot.slane %v1448_v26, 4  ;;  %v1451_v47 = vrot.slane %v8848_v37, 5  ;;  %v1457_v13 = vrot.slane %v1455_v33, 4 }
  0xdc   : > { %v6715_v53 = vrot.slane %v1331_v30, 9  ;;  %v9944_v29 = vsel %vm9563_vm5, %v1408_v28, %v1409_v6  ;;  %v8849_v6 = vld [vmem:[%s9164_s19 + $0x8c] sm:$0x1]  ;;  %v1339_v24 = vld [vmem:[%s9164_s19 + $0xa8] sm:$0xe] }
  0xdd   : > { %7958 = vmatmul.mubr.bf16.gmra.mrb[20].mxu1 %v6696_v55  ;;  %v8843_v55 = vld [vmem:[%s9164_s19 + $0x44] sm:$0x1]  ;;  %v1458_v30 = vrot.slane %v8849_v6, 5  ;;  %v10038_v45 = vsel %vm9563_vm5, %v1450_v51, %v1451_v47  ;;  %v6723_v51 = vrot.slane %v1339_v24, 9  ;;  %v8854_v37 = vld [vmem:[%s9164_s19 + $0xac] sm:$0xf] }
  0xde   : > { %7961 = vmatprep.mubr.bf16.mxu1 %v6697_v12  ;;  %v1416_v12 = vrot.slane %v8843_v55, 5  ;;  %v9971_v15 = vsel %vm9563_vm5, %v6715_v53, %v1420_v59  ;;  %v8734_v55 = vld [vmem:[%s9164_s19 + $0x30] sm:$0xff]   ;;  %v10023_v53 = vsel %vm9563_vm5, %v6719_v4, %v1448_v26  ;;  %v1476_v47 = vrot.slane %v8854_v37, 5  ;;  %v8738_v6 = vld [vmem:[%s9164_s19 + $0x48] sm:$0xff]   ;;  %v10127_v24 = vld [vmem:[%s9164_s19 + $0x20] sm:$0x1] }
  0xdf   : > { %v8740_v4 = vld [vmem:[%s11454_s1 + $0x1d0] sm:$0xff]   ;;  %v10137_v37 = vld [vmem:[%s9164_s19 + $0x2c] sm:$0x1] }
  0xe2   : > { %8150 = vmatmul.mubr.bf16.gmra.mrb[20].mxu0 %v6984_v61  ;;  %v1329_v61 = vld [vmem:[%s9164_s19 + $0x30] sm:$0xe] }
  0xe3   : > { %8153 = vmatprep.mubr.bf16.mxu0 %v6985_v56  ;;  %v1394_v56 = vrot.slane %v1392_v23, 4  ;;  %v6713_v20 = vrot.slane %v1329_v61, 9  ;;  %v8730_v23 = vld [vmem:[%s9164_s19 + $0x18] sm:$0xff]   ;;  %v1336_v61 = vld [vmem:[%s9164_s19 + $0x84] sm:$0xe] }
  0xe4   : > { %v6720_v7 = vrot.slane %v1336_v61, 9 }
  0xe5   : > { %7962 = vmatmul.mubr.bf16.gmra.mrb[24].mxu1 %v6698_v41  ;;  %v9926_v2 = vsel %vm9563_vm5, %v1394_v56, %v1395_v40  ;;  %v6717_v56 = vrot.slane %v1333_v34, 9  ;;  %v1429_v40 = vrot.slane %v1427_v0, 4  ;;  %v8736_v34 = vld [vmem:[%s11454_s1 + $0x1c8] sm:$0xff]  }
  0xe6   : > { %7965 = vmatprep.mubr.bf16.mxu1 %v6699_v39  ;;  %v6743_v41 = vcombine.low %v9918_v11, %v9926_v2  ;;  %v1422_v39 = vrot.slane %v1420_v59, 4  ;;  %v8731_v11 = vld [vmem:[%s9164_s19 + $0x24] sm:$0xff]   ;;  %v10001_v59 = vsel %vm9563_vm5, %v6716_v1, %v1427_v0  ;;  %v8851_v0 = vld [vmem:[%s9164_s19 + $0x98] sm:$0x1]  ;;  %v10052_v1 = vld [vmem:[%s9164_s19 + $0x1c] sm:$0xf] }
  0xe7   : > { %v10005_v2 = vsel %vm9563_vm5, %v1429_v40, %v1430_v19  ;;  %v10009_v52 = vsel %vm9563_vm5, %v6717_v56, %v1434_v10  ;;  %v1465_v38 = vrot.slane %v8851_v0, 5  ;;  %v3885_v56 = vshrl.u32 %v7069_v48, 16  ;;  %v10059_v40 = vld [vmem:[%s9164_s19 + $0x24] sm:$0xf] }
  0xe8   : > { %v9987_v31 = vsel %vm9563_vm5, %v1422_v39, %v1423_v63  ;;  %v10042_v63 = vsel %vm9563_vm5, %v6720_v7, %v1455_v33  ;;  %v6748_v27 = vcombine.low %v10001_v59, %v10005_v2  ;;  %v3888_v33 = vshll.u32 %v7069_v48, 16  ;;  %v10085_v7 = vld [vmem:[%s9164_s19 + $0xb0] sm:$0x1]  ;;  %v8744_v48 = vld [vmem:[%s11454_s1 + $0x1d8] sm:$0xff]  }
  0xe9   : > { %v6747_v28 = vcombine.low %v9971_v15, %v9987_v31  ;;  %v3887_v46 = vrot.slane %v3885_v56, 4  ;;  %v1478_v56 = vrot.slane %v1476_v47, 4  ;;  %v8760_v59 = vld [vmem:[%s11454_s1 + $0x1f8] sm:$0xff]  }
  0xea   : > { %8154 = vmatmul.mubr.bf16.gmra.mrb[24].mxu0 %v6986_v50  ;;  %v1415_v50 = vrot.slane %v1413_v5, 4  ;;  %v8846_v5 = vld [vmem:[%s9164_s19 + $0x68] sm:$0x1]  ;;  %v3890_v9 = vrot.slane %v3888_v33, 5 }
  0xeb   : > { %8157 = vmatprep.mubr.bf16.mxu0 %v6987_v43  ;;  %v9940_v43 = vsel %vm9563_vm5, %v6713_v20, %v1406_v21  ;;  %v1441_v21 = vrot.slane %v9843_v49, 5  ;;  %v1437_v3 = vrot.slane %v8846_v5, 5  ;;  %v1337_v20 = vld [vmem:[%s9164_s19 + $0x90] sm:$0xe]  ;;  %v8745_v5 = vld [vmem:[%s11454_s1 + $0xd8] sm:$0xff]  }
  0xec   : > { %v9963_v22 = vsel %vm9563_vm5, %v1415_v50, %v1416_v12  ;;  %v6745_v32 = vcombine.low %v9940_v43, %v9944_v29  ;;  %v1338_v50 = vld [vmem:[%s9164_s19 + $0x9c] sm:$0xe]  ;;  %v8749_v43 = vld [vmem:[%s11454_s1 + $0xe0] sm:$0xff]   ;;  %v3909_v29 = vshrl.u32 %v10059_v40, 16 }
  0xed   : > { %7966 = vmatmul.mubr.bf16.gmra.mrb[28].mxu1 %v6700_v18  ;;  %v6746_v49 = vcombine.low %v9959_v60, %v9963_v22  ;;  %v1443_v44 = vrot.slane %v1441_v21, 4  ;;  %v10019_v12 = vsel %vm9563_vm5, %v6718_v14, %v1441_v21  ;;  %v6722_v61 = vrot.slane %v1338_v50, 9  ;;  %v8852_v21 = vld [vmem:[%s9164_s19 + $0xa0] sm:$0xf]  ;;  %v8853_v14 = vld [vmem:[%s9164_s19 + $0xa4] sm:$0x1] }
  0xee   : > { %7985 = vmatprep.mubr.bf16.mxu1 %v6741_v62  ;;  %v8850_v62 = vld [vmem:[%s9164_s19 + $0x94] sm:$0xf]  ;;  %v1469_v26 = vrot.slane %v8852_v21, 5  ;;  %v8752_v60 = vld [vmem:[%s11454_s1 + $0x1e8] sm:$0xff]  }
  0xef   : > { %v1462_v17 = vrot.slane %v8850_v62, 5 }
  0xf0   : > { %v10101_v62 = vsel %vm9563_vm5, %v6722_v61, %v1469_v26 }
  0xf1   : > { %v1464_v10 = vrot.slane %v1462_v17, 4 }
  0xf2   : > { %8158 = vmatmul.mubr.bf16.gmra.mrb[28].mxu0 %v6988_v16  ;;  %v8847_v16 = vld [vmem:[%s9164_s19 + $0x74] sm:$0x1] }
  0xf3   : > { %8177 = vmatprep.mubr.bf16.mxu0 %v8730_v23  ;;  %v1444_v18 = vrot.slane %v8847_v16, 5  ;;  %v10048_v23 = vsel %vm9563_vm5, %v1457_v13, %v1458_v30  ;;  %v10075_v16 = vld [vmem:[%s9164_s19 + $0x28] sm:$0xf]  ;;  %v10089_v13 = vld [vmem:[%s9164_s19 + $0xb4] sm:$0xe]  ;;  %v10097_v30 = vsel %vm9563_vm5, %v1464_v10, %v1465_v38  ;;  %v10124_v38 = vsel %vm9563_vm5, %v6723_v51, %v1476_v47  ;;  %v8748_v51 = vld [vmem:[%s11454_s1 + $0x1e0] sm:$0xff]  }
  0xf4   : > { %v3922_v0 = vshrl.u32 %v10075_v16, 16  ;;  %v7076_v10 = vld [vmem:[%s9164_s19 + $0x34] sm:$0xf]  ;;  %v6724_v33 = vrot.slane %v10089_v13, 9  ;;  %v3891_v47 = vor.u32 %v3890_v9, %v3887_v46 }
  0xf5   : > { %7986 = vmatmul.mubr.bf16.vlgmr.msra.gmra.mrb[0].mxu1 %v6742_v58  ;;  %v6721_v58 = vrot.slane %v1337_v20, 9  ;;  %v10034_v39 = vsel %vm9563_vm5, %v1443_v44, %v1444_v18  ;;  %v8735_v18 = vld [vmem:[%s9164_s19 + $0x3c] sm:$0xff]   ;;  %v1479_v20 = vrot.slane %v10085_v7, 5  ;;  %v3942_v46 = vshll.u32 %v7076_v10, 16 }
  0xf6   : > { %8018 = vmatpush3.bf16.msra.mxu1 %v9839_v57  ;;  %7989 = vmatprep.mubr.bf16.mxu1 %v6743_v41  ;;  %v10015_v57 = vsel %vm9563_vm5, %v1436_v35, %v1437_v3  ;;  %v8741_v41 = vld [vmem:[%s11454_s1 + $0xd0] sm:$0xff]   ;;  %v7078_v44 = vld [vmem:[%s9164_s19 + $0x3c] sm:$0xf]  ;;  %v3946_v9 = vshrl.u32 %v7076_v10, 16 }
  0xf7   : > { %8019 = vmatprep.subr.bf16.mxu1 %v8737_v8  ;;  %v10071_v35 = vsel %vm9563_vm5, %v6721_v58, %v1462_v17  ;;  %v1471_v17 = vrot.slane %v1469_v26, 4  ;;  %v3898_v58 = vshrl.u32 %v10052_v1, 16  ;;  %v8739_v3 = vld [vmem:[%s9164_s19 + $0x54] sm:$0xff]  }
  0xf9   : > { %v3900_v13 = vrot.slane %v3898_v58, 4  ;;  %v10163_v58 = vsel %vm9563_vm5, %v1478_v56, %v1479_v20  ;;  %v3928_v20 = vshll.u32 %v10137_v37, 16  ;;  %v3960_v56 = vshll.u32 %v7078_v44, 16 }
  0xfa   : > { %8178 = vmatmul.mubr.bf16.vlgmr.msra.gmra.mrb[0].mxu0 %v8731_v11  ;;  %8020 = vmatpush3.bf16.msra.mxu1 %v8737_v8  ;;  %v8856_v11 = vld [vmem:[%s9164_s19 + $0xb8] sm:$0xf] }
  0xfb   : > { %8210 = vmatpush3.bf16.msra.mxu0 %v9862_v54  ;;  %8181 = vmatprep.mubr.bf16.mxu0 %v8734_v55  ;;  %v1472_v54 = vrot.slane %v8853_v14, 5  ;;  %v1483_v50 = vrot.slane %v8856_v11, 5  ;;  %v7075_v55 = vld [vmem:[%s9164_s19 + $0x30] sm:$0xf] }
  0xfc   : > { %8211 = vmatprep.subr.bf16.mxu0 %v8736_v34  ;;  %8021 = vmatprep.subr.bf16.mxu1 %v8741_v41  ;;  %v3933_v61 = vshrl.u32 %v7075_v55, 16  ;;  %v3936_v21 = vshll.u32 %v7075_v55, 16  ;;  %v7077_v55 = vld [vmem:[%s9164_s19 + $0x38] sm:$0x1] }
  0xfd   : > { %7990 = vmatmul.mubr.bf16.gmra.mrb[4].mxu1 %v6744_v25  ;;  %v3894_v25 = vshll.u32 %v10052_v1, 16  ;;  %v10132_v26 = vsel %vm9563_vm5, %v1471_v17, %v1472_v54  ;;  %v8753_v54 = vld [vmem:[%s11454_s1 + $0xe8] sm:$0xff]   ;;  %v1485_v17 = vrot.slane %v1483_v50, 4 }
  0xfe   : > { %7993 = vmatprep.mubr.bf16.mxu1 %v6745_v32  ;;  %8022 = vmatpush3.bf16.msra.mxu1 %v8741_v41  ;;  %v3912_v32 = vshll.u32 %v10059_v40, 16  ;;  %v3918_v41 = vshll.u32 %v10075_v16, 16  ;;  %v8857_v40 = vld [vmem:[%s9164_s19 + $0xbc] sm:$0x1]  ;;  %v3935_v8 = vrot.slane %v3933_v61, 4  ;;  %v3938_v19 = vrot.slane %v3936_v21, 5 }
  0xff   : > { %8212 = vmatpush3.bf16.msra.mxu0 %v8736_v34  ;;  %8023 = vmatprep.subr.bf16.mxu1 %v8745_v5  ;;  %v1486_v14 = vrot.slane %v8857_v40, 5  ;;  %v10145_v11 = vrot.slane %v3894_v25, 5  ;;  %v3924_v34 = vrot.slane %v3922_v0, 4  ;;  %v7079_v25 = vld [vmem:[%s9164_s19 + $0x40] sm:$0xf]  ;;  %v8757_v0 = vld [vmem:[%s11454_s1 + $0xf0] sm:$0xff]  }
 0x100   : > { %8213 = vmatprep.subr.bf16.mxu0 %v8740_v4  ;;  %v10148_v40 = vrot.slane %v3918_v41, 5  ;;  %v3957_v41 = vshrl.u32 %v7078_v44, 16  ;;  %v3939_v10 = vor.u32 %v3938_v19, %v3935_v8  ;;  %v10192_v61 = vrot.slane %v3942_v46, 5  ;;  %v8743_v46 = vld [vmem:[%s9164_s19 + $0x6c] sm:$0xff]  }
 0x101   : > { %v10178_v22 = vsel %vm9563_vm5, %v1485_v17, %v1486_v14  ;;  %v3901_v7 = vor.u32 %v3900_v13, %v10145_v11  ;;  %v3948_v21 = vrot.slane %v3946_v9, 4  ;;  %v3966_v14 = vshll.u32 %v7079_v25, 16  ;;  %v8761_v13 = vld [vmem:[%s11454_s1 + $0xf8] sm:$0xff]   ;;  %v8756_v9 = vld [vmem:[%s11454_s1 + $0x1f0] sm:$0xff]  }
 0x102   : > { %8182 = vmatmul.mubr.bf16.gmra.mrb[4].mxu0 %v8735_v18  ;;  %8024 = vmatpush3.bf16.msra.mxu1 %v8745_v5  ;;  %v3911_v18 = vrot.slane %v3909_v29, 4  ;;  %v3914_v5 = vrot.slane %v3912_v32, 5  ;;  %v10167_v29 = vsel %vm9563_vm5, %v6724_v33, %v1483_v50  ;;  %v3904_v32 = vshll.u32 %v10127_v24, 16  ;;  %v7081_v50 = vld [vmem:[%s9164_s19 + $0x48] sm:$0xf] }
 0x103   : > { %8185 = vmatprep.mubr.bf16.mxu0 %v8738_v6  ;;  %8214 = vmatpush3.bf16.msra.mxu0 %v8740_v4  ;;  %v8742_v4 = vld [vmem:[%s9164_s19 + $0x60] sm:$0xff]   ;;  %v6754_v6 = vcombine.low %v10101_v62, %v10132_v26  ;;  %v3925_v31 = vor.u32 %v3924_v34, %v10148_v40  ;;  %v3970_v34 = vshrl.u32 %v7079_v25, 16  ;;  %v3981_v17 = vshrl.u32 %v7081_v50, 16 }
 0x104   : > { %8215 = vmatprep.subr.bf16.mxu0 %v8744_v48  ;;  %8025 = vmatprep.subr.bf16.mxu1 %v8749_v43  ;;  %v3915_v15 = vor.u32 %v3914_v5, %v3911_v18  ;;  %v10197_v33 = vrot.slane %v3904_v32, 5  ;;  %v10207_v8 = vrot.slane %v3901_v7, 4  ;;  %v10209_v44 = vrot.slane %v3928_v20, 5  ;;  %v10228_v7 = vld [vmem:[%s9164_s19 + $0x50] sm:$0x1]  ;;  %v8746_v20 = vld [vmem:[%s9164_s19 + $0x78] sm:$0xff]  }
 0x105   : > { %7994 = vmatmul.mubr.bf16.gmra.mrb[8].mxu1 %v6746_v49  ;;  %v10180_v49 = vrot.slane %v3891_v47, 4  ;;  %v7084_v47 = vld [vmem:[%s9164_s19 + $0x54] sm:$0xf]  ;;  %v10217_v5 = vrot.slane %v3957_v41, 4  ;;  %v10223_v25 = vrot.slane %v3939_v10, 4 }
 0x106   : > { %7997 = vmatprep.mubr.bf16.mxu1 %v6747_v28  ;;  %8026 = vmatpush3.bf16.msra.mxu1 %v8749_v43  ;;  %v3952_v28 = vshll.u32 %v7077_v55, 16  ;;  %v10187_v43 = vld [vmem:[%s9164_s19 + $0x44] sm:$0x1]  ;;  %v3984_v55 = vshll.u32 %v7081_v50, 16  ;;  %v10234_v50 = vrot.slane %v3966_v14, 5  ;;  %v4005_v10 = vshrl.u32 %v7084_v47, 16 }
 0x107   : > { %8216 = vmatpush3.bf16.msra.mxu0 %v8744_v48  ;;  %8027 = vmatprep.subr.bf16.mxu1 %v8753_v54  ;;  %v10195_v48 = vld [vmem:[%s9164_s19 + $0x4c] sm:$0xf]  ;;  %v3897_v19 = vsel %vm9189_vm2, %v10180_v49, %v10145_v11  ;;  %v3976_v32 = vshll.u32 %v10187_v43, 16  ;;  %v10238_v41 = vld [vmem:[%s9164_s19 + $0x58] sm:$0xf]  ;;  %v11460_v43 = vcombine.low %v10009_v52, %v10015_v57  ;;  %v3907_v52 = vsel %vm9189_vm2, %v10207_v8, %v10197_v33 }
 0x108   : > { %8217 = vmatprep.subr.bf16.mxu0 %v8748_v51  ;;  %v10215_v18 = vrot.slane %v3952_v28, 5  ;;  %v3990_v28 = vshll.u32 %v10195_v48, 16  ;;  %v3986_v2 = vrot.slane %v3984_v55, 5  ;;  %v3945_v33 = vsel %vm9189_vm2, %v10223_v25, %v10192_v61  ;;  %v7090_v55 = vld [vmem:[%s9164_s19 + $0x6c] sm:$0xf] }
 0x10a   : > { %8186 = vmatmul.mubr.bf16.gmra.mrb[8].mxu0 %v8739_v3  ;;  %8028 = vmatpush3.bf16.msra.mxu1 %v8753_v54  ;;  %v10211_v3 = vrot.slane %v3915_v15, 4  ;;  %v10213_v54 = vrot.slane %v3925_v31, 4  ;;  %v3972_v15 = vrot.slane %v3970_v34, 4  ;;  %v3983_v31 = vrot.slane %v3981_v17, 4 }
 0x10b   : > { %8189 = vmatprep.mubr.bf16.mxu0 %v8742_v4  ;;  %8218 = vmatpush3.bf16.msra.mxu0 %v8748_v51  ;;  %v3949_v51 = vor.u32 %v3948_v21, %v10192_v61  ;;  %v3962_v4 = vrot.slane %v3960_v56, 5  ;;  %v4008_v21 = vshll.u32 %v7084_v47, 16  ;;  %v7087_v56 = vld [vmem:[%s9164_s19 + $0x60] sm:$0xf]  ;;  %v4018_v34 = vshrl.u32 %v10238_v41, 16 }
 0x10c   : > { %8219 = vmatprep.subr.bf16.mxu0 %v8752_v60  ;;  %8029 = vmatprep.subr.bf16.mxu1 %v8757_v0  ;;  %v3921_v57 = vsel %vm9189_vm2, %v10211_v3, %v10148_v40  ;;  %v4014_v40 = vshll.u32 %v10238_v41, 16  ;;  %v3973_v47 = vor.u32 %v3972_v15, %v10234_v50  ;;  %v10274_v8 = vrot.slane %v3990_v28, 5  ;;  %v8747_v28 = vld [vmem:[%s9164_s19 + $0x84] sm:$0xff]  }
 0x10d   : > { %7998 = vmatmul.mubr.bf16.gmra.mrb[12].mxu1 %v6748_v27  ;;  %v3994_v27 = vshrl.u32 %v10195_v48, 16  ;;  %v7088_v48 = vld [vmem:[%s9164_s19 + $0x64] sm:$0xf]  ;;  %v3950_v14 = vrot.slane %v3949_v51, 4  ;;  %v3963_v17 = vor.u32 %v3962_v4, %v10217_v5  ;;  %v3987_v3 = vor.u32 %v3986_v2, %v3983_v31  ;;  %v10279_v51 = vld [vmem:[%s9164_s19 + $0x5c] sm:$0x1] }
 0x10e   : > { %8001 = vmatprep.mubr.bf16.mxu1 %v11460_v43  ;;  %8030 = vmatpush3.bf16.msra.mxu1 %v8757_v0  ;;  %v3931_v0 = vsel %vm9189_vm2, %v10213_v54, %v10209_v44  ;;  %v4000_v44 = vshll.u32 %v10228_v7, 16  ;;  %v4007_v61 = vrot.slane %v4005_v10, 4  ;;  %v4010_v25 = vrot.slane %v4008_v21, 5 }
 0x10f   : > { %8220 = vmatpush3.bf16.msra.mxu0 %v8752_v60  ;;  %8031 = vmatprep.subr.bf16.mxu1 %v8761_v13  ;;  %v10264_v60 = vld [vmem:[%s11442_s2] sm:$0xff]   ;;  %v3996_v54 = vrot.slane %v3994_v27, 4  ;;  %v4029_v43 = vshrl.u32 %v7087_v56, 16  ;;  %v4032_v5 = vshll.u32 %v7087_v56, 16  ;;  %v4038_v4 = vshll.u32 %v7088_v48, 16 }
 0x110   : > { %8221 = vmatprep.subr.bf16.mxu0 %v8756_v9  ;;  %v4042_v15 = vshrl.u32 %v7088_v48, 16  ;;  %v4020_v7 = vrot.slane %v4018_v34, 4  ;;  %v11461_v31 = vcombine.low %v10019_v12, %v10034_v39  ;;  %v3955_v2 = vsel %vm9189_vm2, %v3950_v14, %v10215_v18  ;;  %v8750_v48 = vld [vmem:[%s9164_s19 + $0x90] sm:$0xff]   ;;  %v10313_v14 = vld [vmem:[%s9164_s19 + $0x68] sm:$0x1] }
 0x111   : > { %v10296_v27 = vrot.slane %v3963_v17, 4  ;;  %v10298_v10 = vrot.slane %v3973_v47, 4  ;;  %v10300_v21 = vrot.slane %v3976_v32, 5  ;;  %v11462_v56 = vcombine.low %v10023_v53, %v10038_v45 }
 0x112   : > { %8190 = vmatmul.mubr.bf16.gmra.mrb[12].mxu0 %v8743_v46  ;;  %8032 = vmatpush3.bf16.msra.mxu1 %v8761_v13  ;;  %v10284_v46 = vld [vmem:[%s11454_s1 + $0x200] sm:$0xff]   ;;  %v10287_v13 = vrot.slane %v4014_v40, 5  ;;  %v10306_v12 = vrot.slane %v3987_v3, 4  ;;  %v3997_v39 = vor.u32 %v3996_v54, %v10274_v8  ;;  %v10309_v40 = vrot.slane %v4000_v44, 5  ;;  %v7092_v44 = vld [vmem:[%s9164_s19 + $0x74] sm:$0x1] }
 0x113   : > { %8193 = vmatprep.mubr.bf16.mxu0 %v8746_v20  ;;  %8222 = vmatpush3.bf16.msra.mxu0 %v8756_v9  ;;  %v4053_v9 = vshrl.u32 %v7090_v55, 16  ;;  %v4056_v20 = vshll.u32 %v7090_v55, 16  ;;  %v4024_v18 = vshll.u32 %v10279_v51, 16  ;;  %v4031_v32 = vrot.slane %v4029_v43, 4  ;;  %v7091_v55 = vld [vmem:[%s9164_s19 + $0x70] sm:$0xf] }
 0x114   : > { %8223 = vmatprep.subr.bf16.mxu0 %v8760_v59  ;;  %8305 = vmatprep.subr.bf16.mxu1 %v10264_v60  ;;  %v4034_v34 = vrot.slane %v4032_v5, 5  ;;  %v10315_v53 = vrot.slane %v4038_v4, 5  ;;  %v4044_v45 = vrot.slane %v4042_v15, 4  ;;  %v4011_v17 = vor.u32 %v4010_v25, %v4007_v61  ;;  %v7093_v25 = vld [vmem:[%s9164_s19 + $0x78] sm:$0xf] }
 0x115   : > { %8002 = vmatmul.mubr.bf16.gmra.mrb[16].mxu1 %v11461_v31  ;;  %v4021_v47 = vor.u32 %v4020_v7, %v10287_v13  ;;  %v4055_v3 = vrot.slane %v4053_v9, 4  ;;  %v4058_v54 = vrot.slane %v4056_v20, 5  ;;  %v6756_v43 = vcombine.low %v10167_v29, %v10178_v22  ;;  %v7094_v4 = vld [vmem:[%s9164_s19 + $0x7c] sm:$0xf] }
 0x116   : > { %8005 = vmatprep.mubr.bf16.mxu1 %v11462_v56  ;;  %v10330_v5 = vcombine.low %v3897_v19, %v3907_v52  ;;  %v10332_v61 = vcombine.low %v3921_v57, %v3931_v0  ;;  %v10336_v15 = vcombine.low %v3945_v33, %v3955_v2  ;;  %v3969_v7 = vsel %vm9189_vm2, %v10296_v27, %v10234_v50  ;;  %v8751_v57 = vld [vmem:[%s9164_s19 + $0x9c] sm:$0xff]  }
 0x117   : > { %8224 = vmatpush3.bf16.msra.mxu0 %v8760_v59  ;;  %v6755_v59 = vcombine.low %v10124_v38, %v10163_v58  ;;  %v3998_v9 = vrot.slane %v3997_v39, 4  ;;  %v4048_v20 = vshll.u32 %v10313_v14, 16  ;;  %v4026_v11 = vrot.slane %v4024_v18, 5  ;;  %v8754_v18 = vld [vmem:[%s9164_s19 + $0xa8] sm:$0xff]  }
 0x118   : > { %8257 = vmatprep.subr.bf16.mxu0 %v10284_v46  ;;  %v4035_v49 = vor.u32 %v4034_v34, %v4031_v32  ;;  %v4045_v19 = vor.u32 %v4044_v45, %v10315_v53  ;;  %v4062_v52 = vshll.u32 %v7091_v55, 16  ;;  %v4012_v0 = vrot.slane %v4011_v17, 4  ;;  %v7095_v45 = vld [vmem:[%s9164_s19 + $0x80] sm:$0x1] }
 0x119   : > { %v4022_v33 = vrot.slane %v4021_v47, 4  ;;  %v4059_v31 = vor.u32 %v4058_v54, %v4055_v3  ;;  %v11463_v50 = vcombine.low %v10042_v63, %v10048_v23  ;;  %v4072_v2 = vshll.u32 %v7092_v44, 16 }
 0x11a   : > { %8194 = vmatmul.mubr.bf16.gmra.mrb[16].mxu0 %v8747_v28  ;;  %v4066_v28 = vshrl.u32 %v7091_v55, 16  ;;  %v4077_v27 = vshrl.u32 %v7093_v25, 16  ;;  %v4080_v56 = vshll.u32 %v7093_v25, 16  ;;  %v11464_v39 = vcombine.low %v10071_v35, %v10097_v30  ;;  %v7096_v35 = vld [vmem:[%s9164_s19 + $0x84] sm:$0xf] }
 0x11b   : > { %8197 = vmatprep.mubr.bf16.mxu0 %v8750_v48  ;;  %v4086_v48 = vshll.u32 %v7094_v4, 16  ;;  %v3979_v32 = vsel %vm9189_vm2, %v10298_v10, %v10300_v21  ;;  %v3993_v63 = vsel %vm9189_vm2, %v10306_v12, %v10274_v8  ;;  %v4003_v23 = vsel %vm9189_vm2, %v3998_v9, %v10309_v40  ;;  %v7097_v30 = vld [vmem:[%s9164_s19 + $0x88] sm:$0xf]  ;;  %v7099_v40 = vld [vmem:[%s9164_s19 + $0x90] sm:$0xf] }
 0x11c   : > { %v4050_v34 = vrot.slane %v4048_v20, 5  ;;  %v4036_v17 = vrot.slane %v4035_v49, 4  ;;  %v4046_v47 = vrot.slane %v4045_v19, 4  ;;  %v10366_v55 = vrot.slane %v4062_v52, 5  ;;  %v7100_v20 = vld [vmem:[%s9164_s19 + $0x94] sm:$0xf] }
 0x11d   : > { %8006 = vmatmul.mubr.bf16.gmra.mrb[20].mxu1 %v11463_v50  ;;  %v4090_v44 = vshrl.u32 %v7094_v4, 16  ;;  %v4017_v10 = vsel %vm9189_vm2, %v4012_v0, %v10287_v13  ;;  %v4027_v8 = vsel %vm9189_vm2, %v4022_v33, %v4026_v11  ;;  %v10373_v21 = vrot.slane %v4059_v31, 4  ;;  %v7102_v31 = vld [vmem:[%s9164_s19 + $0x9c] sm:$0xf] }
 0x11e   : > { %8009 = vmatprep.mubr.bf16.mxu1 %v11464_v39  ;;  %v4068_v12 = vrot.slane %v4066_v28, 4  ;;  %v10376_v3 = vrot.slane %v4072_v2, 5  ;;  %v4079_v54 = vrot.slane %v4077_v27, 4  ;;  %v4082_v25 = vrot.slane %v4080_v56, 5  ;;  %v7103_v39 = vld [vmem:[%s9164_s19 + $0xa0] sm:$0xf] }
 0x11f   : > { %v10378_v9 = vrot.slane %v4086_v48, 5  ;;  %v4101_v4 = vshrl.u32 %v7096_v35, 16  ;;  %v4104_v49 = vshll.u32 %v7096_v35, 16  ;;  %v4110_v19 = vshll.u32 %v7097_v30, 16 }
 0x120   : > { %v4114_v13 = vshrl.u32 %v7097_v30, 16  ;;  %v4092_v11 = vrot.slane %v4090_v44, 4  ;;  %v4096_v52 = vshll.u32 %v7095_v45, 16  ;;  %v4125_v0 = vshrl.u32 %v7099_v40, 16  ;;  %v7101_v30 = vld [vmem:[%s9164_s19 + $0x98] sm:$0x1] }
 0x121   : > { %v4128_v33 = vshll.u32 %v7099_v40, 16  ;;  %v10382_v28 = vcombine.low %v3969_v7, %v3979_v32  ;;  %v10384_v50 = vcombine.low %v3993_v63, %v4003_v23  ;;  %v4134_v2 = vshll.u32 %v7100_v20, 16  ;;  %v8758_v63 = vld [vmem:[%s9164_s19 + $0xc0] sm:$0xff]   ;;  %v10406_v23 = vld [vmem:[%s9164_s19 + $0x8c] sm:$0x1] }
 0x122   : > { %8198 = vmatmul.mubr.bf16.gmra.mrb[20].mxu0 %v8751_v57  ;;  %v4138_v57 = vshrl.u32 %v7100_v20, 16  ;;  %v10389_v27 = vcombine.low %v4017_v10, %v4027_v8  ;;  %v4041_v56 = vsel %vm9189_vm2, %v4036_v17, %v10315_v53  ;;  %v4051_v7 = vsel %vm9189_vm2, %v4046_v47, %v4050_v34  ;;  %v8762_v40 = vld [vmem:[%s9164_s19 + $0xc] sm:$0xff]  }
 0x123   : > { %8201 = vmatprep.mubr.bf16.mxu0 %v8754_v18  ;;  %v4069_v48 = vor.u32 %v4068_v12, %v10366_v55  ;;  %v8755_v18 = vld [vmem:[%s9164_s19 + $0xb4] sm:$0xff]   ;;  %v4103_v62 = vrot.slane %v4101_v4, 4  ;;  %v4106_v26 = vrot.slane %v4104_v49, 5  ;;  %v4116_v32 = vrot.slane %v4114_v13, 4  ;;  %v7105_v12 = vld [vmem:[%s9164_s19 + $0xa8] sm:$0xf] }
 0x124   : > { %v4083_v53 = vor.u32 %v4082_v25, %v4079_v54  ;;  %v4127_v34 = vrot.slane %v4125_v0, 4  ;;  %v4130_v45 = vrot.slane %v4128_v33, 5  ;;  %v4149_v35 = vshrl.u32 %v7102_v31, 16  ;;  %v7106_v49 = vld [vmem:[%s9164_s19 + $0xac] sm:$0xf] }
 0x125   : > { %8010 = vmatmul.mubr.bf16.gmra.mrb[24].mxu1 %v6754_v6  ;;  %v10402_v6 = vrot.slane %v4110_v19, 5  ;;  %v10409_v17 = vrot.slane %v4134_v2, 5  ;;  %v4140_v38 = vrot.slane %v4138_v57, 4  ;;  %v4152_v58 = vshll.u32 %v7102_v31, 16  ;;  %v7104_v57 = vld [vmem:[%s9164_s19 + $0xa4] sm:$0x1] }
 0x126   : > { %8013 = vmatprep.mubr.bf16.mxu1 %v6755_v59  ;;  %v4158_v59 = vshll.u32 %v7103_v39, 16  ;;  %v10411_v47 = vcombine.low %v4041_v56, %v4051_v7  ;;  %v10413_v44 = vrot.slane %v4069_v48, 4  ;;  %v4093_v10 = vor.u32 %v4092_v11, %v10378_v9 }
 0x127   : > { %v4162_v8 = vshrl.u32 %v7103_v39, 16  ;;  %v10418_v54 = vrot.slane %v4096_v52, 5  ;;  %v4107_v25 = vor.u32 %v4106_v26, %v4103_v62  ;;  %v4117_v20 = vor.u32 %v4116_v32, %v10402_v6 }
 0x128   : > { %v4120_v4 = vshll.u32 %v10406_v23, 16  ;;  %v10423_v19 = vrot.slane %v4083_v53, 4  ;;  %v4131_v13 = vor.u32 %v4130_v45, %v4127_v34  ;;  %v4144_v0 = vshll.u32 %v7101_v30, 16  ;;  %v7108_v34 = vld [vmem:[%s9164_s19 + $0xb4] sm:$0xf] }
 0x129   : > { %v4151_v11 = vrot.slane %v4149_v35, 4  ;;  %v4141_v33 = vor.u32 %v4140_v38, %v10409_v17  ;;  %v4154_v31 = vrot.slane %v4152_v58, 5  ;;  %v10426_v2 = vrot.slane %v4158_v59, 5  ;;  %v7109_v45 = vld [vmem:[%s9164_s19 + $0xb8] sm:$0xf] }
 0x12a   : > { %8202 = vmatmul.mubr.bf16.gmra.mrb[24].mxu0 %v8755_v18  ;;  %v4173_v52 = vshrl.u32 %v7105_v12, 16  ;;  %v4164_v56 = vrot.slane %v4162_v8, 4  ;;  %v4176_v7 = vshll.u32 %v7105_v12, 16  ;;  %v4182_v48 = vshll.u32 %v7106_v49, 16  ;;  %v8759_v18 = vld [vmem:[%s9164_s19 + $0xcc] sm:$0xff]   ;;  %v8763_v59 = vld [vmem:[%s9164_s19 + $0x18] sm:$0xff]  }
 0x12b   : > { %8205 = vmatprep.mubr.bf16.mxu0 %v8758_v63  ;;  %v4186_v39 = vshrl.u32 %v7106_v49, 16  ;;  %v4094_v62 = vrot.slane %v4093_v10, 4  ;;  %v4108_v26 = vrot.slane %v4107_v25, 4  ;;  %v4118_v32 = vrot.slane %v4117_v20, 4  ;;  %v8766_v10 = vld [vmem:[%s9164_s19 + $0x24] sm:$0xff]  }
 0x12c   : > { %v4122_v63 = vrot.slane %v4120_v4, 5  ;;  %v4065_v29 = vsel %vm9189_vm2, %v10373_v21, %v10366_v55  ;;  %v4075_v22 = vsel %vm9189_vm2, %v10413_v44, %v10376_v3  ;;  %v4146_v53 = vrot.slane %v4144_v0, 5  ;;  %v7107_v3 = vld [vmem:[%s9164_s19 + $0xb0] sm:$0x1]  ;;  %v8769_v4 = vld [vmem:[%s11442_s2 + $0x8] sm:$0xff]  }
 0x12d   : > { %8014 = vmatmul.mubr.bf16.gmra.mrb[28].mxu1 %v6756_v43  ;;  %v4132_v43 = vrot.slane %v4131_v13, 4  ;;  %v4142_v35 = vrot.slane %v4141_v33, 4  ;;  %v4155_v30 = vor.u32 %v4154_v31, %v4151_v11  ;;  %v4168_v38 = vshll.u32 %v7104_v57, 16 }
 0x12e   : > { %8033 = vmatprep.mubr.bf16.mxu1 %v8762_v40  ;;  %v4175_v58 = vrot.slane %v4173_v52, 4  ;;  %v4165_v8 = vor.u32 %v4164_v56, %v10426_v2  ;;  %v4178_v12 = vrot.slane %v4176_v7, 5  ;;  %v10446_v55 = vrot.slane %v4182_v48, 5  ;;  %v7112_v56 = vld [vmem:[%s9164_s19 + $0xc4] sm:$0xf] }
 0x12f   : > { %v4188_v21 = vrot.slane %v4186_v39, 4  ;;  %v4197_v44 = vshrl.u32 %v7108_v34, 16  ;;  %v4200_v40 = vshll.u32 %v7108_v34, 16  ;;  %v4206_v25 = vshll.u32 %v7109_v45, 16 }
 0x130   : > { %v4210_v20 = vshrl.u32 %v7109_v45, 16  ;;  %v4089_v49 = vsel %vm9189_vm2, %v10423_v19, %v10378_v9  ;;  %v4099_v13 = vsel %vm9189_vm2, %v4094_v62, %v10418_v54  ;;  %v4113_v0 = vsel %vm9189_vm2, %v4108_v26, %v10402_v6  ;;  %v7111_v19 = vld [vmem:[%s9164_s19 + $0xc0] sm:$0xf]  ;;  %v7110_v26 = vld [vmem:[%s9164_s19 + $0xbc] sm:$0x1] }
 0x131   : > { %v4137_v11 = vsel %vm9189_vm2, %v4132_v43, %v10409_v17  ;;  %v4147_v33 = vsel %vm9189_vm2, %v4142_v35, %v4146_v53  ;;  %v10470_v31 = vrot.slane %v4155_v30, 4  ;;  %v10472_v9 = vrot.slane %v4168_v38, 5  ;;  %v8773_v43 = vld [vmem:[%s11442_s2 + $0x10] sm:$0xff]   ;;  %v7114_v45 = vld [vmem:[%s9164_s19 + $0xcc] sm:$0xf]  ;;  %v8770_v30 = vld [vmem:[%s9164_s19 + $0x3c] sm:$0xff]  }
 0x132   : > { %8206 = vmatmul.mubr.bf16.gmra.mrb[28].mxu0 %v8759_v18  ;;  %v10475_v54 = vrot.slane %v4165_v8, 4  ;;  %v4179_v6 = vor.u32 %v4178_v12, %v4175_v58  ;;  %v4189_v52 = vor.u32 %v4188_v21, %v10446_v55  ;;  %v4192_v57 = vshll.u32 %v7107_v3, 16  ;;  %v8767_v35 = vld [vmem:[%s9164_s19 + $0x30] sm:$0xff]  }
 0x133   : > { %8225 = vmatprep.mubr.bf16.mxu0 %v10330_v5  ;;  %v4123_v5 = vsel %vm9189_vm2, %v4118_v32, %v4122_v63  ;;  %v4199_v17 = vrot.slane %v4197_v44, 4  ;;  %v4202_v7 = vrot.slane %v4200_v40, 5  ;;  %v10480_v48 = vrot.slane %v4206_v25, 5  ;;  %v7115_v8 = vld [vmem:[%s9164_s19 + $0xd0] sm:$0xf] }
 0x134   : > { %v4212_v39 = vrot.slane %v4210_v20, 4  ;;  %v10482_v18 = vcombine.low %v4065_v29, %v4075_v22  ;;  %v10484_v62 = vcombine.low %v4089_v49, %v4099_v13  ;;  %v4221_v32 = vshrl.u32 %v7111_v19, 16  ;;  %v7261_v40 = vld [vmem:[%s9164_s19 + $0xc] sm:$0xf]  ;;  %v7262_v25 = vld [vmem:[%s9164_s19 + $0x10] sm:$0xf] }
 0x135   : > { %8034 = vmatmul.mubr.bf16.vlgmr.msra.gmra.mrb[0].mxu1 %v8763_v59  ;;  %v4224_v63 = vshll.u32 %v7111_v19, 16  ;;  %v10493_v53 = vcombine.low %v4113_v0, %v4123_v5  ;;  %v10495_v34 = vcombine.low %v4137_v11, %v4147_v33  ;;  %v4230_v29 = vshll.u32 %v7112_v56, 16  ;;  %v7113_v0 = vld [vmem:[%s9164_s19 + $0xc8] sm:$0x1] }
 0x136   : > { %8306 = vmatpush3.bf16.msra.mxu1 %v10264_v60  ;;  %8037 = vmatprep.mubr.bf16.mxu1 %v8766_v10  ;;  %v8768_v60 = vld [vmem:[%s11454_s1 + $0x208] sm:$0xff]   ;;  %v4234_v22 = vshrl.u32 %v7112_v56, 16  ;;  %v4161_v38 = vsel %vm9189_vm2, %v10470_v31, %v10426_v2  ;;  %v4171_v58 = vsel %vm9189_vm2, %v10475_v54, %v10472_v9  ;;  %v4180_v59 = vrot.slane %v4179_v6, 4  ;;  %v8772_v2 = vld [vmem:[%s11454_s1 + $0x210] sm:$0xff]  }
 0x137   : > { %8307 = vmatprep.subr.bf16.mxu1 %v8769_v4  ;;  %v4194_v10 = vrot.slane %v4192_v57, 5  ;;  %v4190_v12 = vrot.slane %v4189_v52, 4  ;;  %v4203_v21 = vor.u32 %v4202_v7, %v4199_v17  ;;  %v4213_v3 = vor.u32 %v4212_v39, %v10480_v48  ;;  %v7116_v7 = vld [vmem:[%s9164_s19 + $0xd4] sm:$0x1] }
 0x138   : > { %v4216_v44 = vshll.u32 %v7110_v26, 16  ;;  %v4223_v20 = vrot.slane %v4221_v32, 4  ;;  %v4245_v49 = vshrl.u32 %v7114_v45, 16  ;;  %v4248_v13 = vshll.u32 %v7114_v45, 16  ;;  %v8781_v32 = vld [vmem:[%s11442_s2 + $0x20] sm:$0xff]  }
 0x139   : > { %v10522_v5 = vrot.slane %v4230_v29, 5  ;;  %v4254_v11 = vshll.u32 %v7115_v8, 16  ;;  %v5438_v33 = vshrl.u32 %v7261_v40, 16  ;;  %v5441_v31 = vshll.u32 %v7261_v40, 16  ;;  %v7263_v40 = vld [vmem:[%s9164_s19 + $0x14] sm:$0x1] }
 0x13a   : > { %8226 = vmatmul.mubr.bf16.vlgmr.msra.gmra.mrb[0].mxu0 %v10332_v61  ;;  %8308 = vmatpush3.bf16.msra.mxu1 %v8769_v4  ;;  %v8777_v61 = vld [vmem:[%s11442_s2 + $0x18] sm:$0xff]   ;;  %v4226_v4 = vrot.slane %v4224_v63, 5  ;;  %v5447_v9 = vshll.u32 %v7262_v25, 16  ;;  %v5451_v19 = vshrl.u32 %v7262_v25, 16  ;;  %v4185_v54 = vsel %vm9189_vm2, %v4180_v59, %v10446_v55 }
 0x13b   : > { %8258 = vmatpush3.bf16.msra.mxu0 %v10284_v46  ;;  %8229 = vmatprep.mubr.bf16.mxu0 %v10336_v15  ;;  %v4236_v46 = vrot.slane %v4234_v22, 4  ;;  %v4258_v15 = vshrl.u32 %v7115_v8, 16  ;;  %v4195_v6 = vsel %vm9189_vm2, %v4190_v12, %v4194_v10  ;;  %v10529_v52 = vrot.slane %v4203_v21, 4  ;;  %v8776_v55 = vld [vmem:[%s11454_s1 + $0x218] sm:$0xff]   ;;  %v8771_v22 = vld [vmem:[%s9164_s19 + $0x48] sm:$0xff]  }
 0x13c   : > { %8259 = vmatprep.subr.bf16.mxu0 %v8768_v60  ;;  %8309 = vmatprep.subr.bf16.mxu1 %v8773_v43  ;;  %v10531_v57 = vrot.slane %v4216_v44, 5  ;;  %v10533_v56 = vrot.slane %v4213_v3, 4  ;;  %v4240_v17 = vshll.u32 %v7113_v0, 16  ;;  %v4247_v39 = vrot.slane %v4245_v49, 4  ;;  %v8774_v10 = vld [vmem:[%s9164_s19 + $0x54] sm:$0xff]  }
 0x13d   : > { %8038 = vmatmul.mubr.bf16.gmra.mrb[4].mxu1 %v8767_v35  ;;  %v4250_v26 = vrot.slane %v4248_v13, 5  ;;  %v4227_v63 = vor.u32 %v4226_v4, %v4223_v20  ;;  %v4260_v29 = vrot.slane %v4258_v15, 4  ;;  %v5440_v45 = vrot.slane %v5438_v33, 4  ;;  %v7157_v44 = vld [vmem:[%s9164_s19 + $0x18] sm:$0xe] }
 0x13e   : > { %8041 = vmatprep.mubr.bf16.mxu1 %v8770_v30  ;;  %8310 = vmatpush3.bf16.msra.mxu1 %v8773_v43  ;;  %v10543_v43 = vrot.slane %v4254_v11, 5  ;;  %v5443_v35 = vrot.slane %v5441_v31, 5  ;;  %v10546_v30 = vrot.slane %v5447_v9, 5  ;;  %v5453_v59 = vrot.slane %v5451_v19, 4  ;;  %v7264_v20 = vld [vmem:[%s9164_s19 + $0x18] sm:$0xf] }
 0x13f   : > { %8260 = vmatpush3.bf16.msra.mxu0 %v8768_v60  ;;  %8311 = vmatprep.subr.bf16.mxu1 %v8777_v61  ;;  %v4237_v60 = vor.u32 %v4236_v46, %v10522_v5  ;;  %v10550_v8 = vcombine.low %v4161_v38, %v4171_v58  ;;  %v10552_v12 = vcombine.low %v4185_v54, %v4195_v6  ;;  %v4264_v3 = vshll.u32 %v7116_v7, 16  ;;  %v7265_v0 = vld [vmem:[%s9164_s19 + $0x1c] sm:$0xf]  ;;  %v7158_v33 = vld [vmem:[%s9164_s19 + $0x24] sm:$0xe] }
 0x140   : > { %8261 = vmatprep.subr.bf16.mxu0 %v8772_v2  ;;  %v4209_v21 = vsel %vm9189_vm2, %v10529_v52, %v10480_v48  ;;  %v4219_v38 = vsel %vm9189_vm2, %v10533_v56, %v10531_v57  ;;  %v10568_v58 = vrot.slane %v4240_v17, 5  ;;  %v4251_v25 = vor.u32 %v4250_v26, %v4247_v39  ;;  %v8784_v39 = vld [vmem:[%s11454_s1 + $0x228] sm:$0xff]   ;;  %v8789_v26 = vld [vmem:[%s11442_s2 + $0x30] sm:$0xff]  }
 0x141   : > { %v10577_v4 = vrot.slane %v4237_v60, 4  ;;  %v4261_v49 = vor.u32 %v4260_v29, %v10543_v43  ;;  %v4663_v13 = vrot.slane %v10075_v16, 5  ;;  %v7173_v46 = vrot.slane %v7157_v44, 9  ;;  %v8775_v60 = vld [vmem:[%s9164_s19 + $0x60] sm:$0xff]   ;;  %v7270_v56 = vld [vmem:[%s9164_s19 + $0x30] sm:$0xf] }
 0x142   : > { %8230 = vmatmul.mubr.bf16.gmra.mrb[4].mxu0 %v10382_v28  ;;  %8312 = vmatpush3.bf16.msra.mxu1 %v8777_v61  ;;  %v8785_v28 = vld [vmem:[%s11442_s2 + $0x28] sm:$0xff]   ;;  %v4656_v61 = vrot.slane %v10052_v1, 5  ;;  %v5444_v11 = vor.u32 %v5443_v35, %v5440_v45  ;;  %v5454_v1 = vor.u32 %v5453_v59, %v10546_v30  ;;  %v5457_v15 = vshll.u32 %v7263_v40, 16  ;;  %v8793_v40 = vld [vmem:[%s11442_s2 + $0x38] sm:$0xff]  }
 0x143   : > { %8233 = vmatprep.mubr.bf16.mxu0 %v10384_v50  ;;  %8262 = vmatpush3.bf16.msra.mxu0 %v8772_v2  ;;  %v8780_v50 = vld [vmem:[%s11454_s1 + $0x220] sm:$0xff]   ;;  %v10575_v2 = vrot.slane %v4227_v63, 4  ;;  %v4266_v31 = vrot.slane %v4264_v3, 5  ;;  %v4659_v9 = vrot.slane %v10127_v24, 5  ;;  %v5462_v19 = vshrl.u32 %v7264_v20, 16  ;;  %v8778_v59 = vld [vmem:[%s9164_s19 + $0x6c] sm:$0xff]  }
 0x144   : > { %8263 = vmatprep.subr.bf16.mxu0 %v8776_v55  ;;  %8313 = vmatprep.subr.bf16.mxu1 %v8781_v32  ;;  %v5465_v54 = vshll.u32 %v7264_v20, 16  ;;  %v4252_v6 = vrot.slane %v4251_v25, 4  ;;  %v4658_v16 = vrot.slane %v4656_v61, 4  ;;  %v5471_v17 = vshll.u32 %v7265_v0, 16 }
 0x145   : > { %8042 = vmatmul.mubr.bf16.gmra.mrb[8].mxu1 %v8771_v22  ;;  %v5475_v7 = vshrl.u32 %v7265_v0, 16  ;;  %v4262_v24 = vrot.slane %v4261_v49, 4  ;;  %v4665_v63 = vrot.slane %v4663_v13, 4  ;;  %v4233_v29 = vsel %vm9189_vm2, %v10575_v2, %v10522_v5  ;;  %v7267_v5 = vld [vmem:[%s9164_s19 + $0x24] sm:$0xf] }
 0x146   : > { %8045 = vmatprep.mubr.bf16.mxu1 %v8774_v10  ;;  %8314 = vmatpush3.bf16.msra.mxu1 %v8781_v32  ;;  %v7174_v32 = vrot.slane %v7158_v33, 9  ;;  %v5445_v22 = vrot.slane %v5444_v11, 4  ;;  %v5455_v45 = vrot.slane %v5454_v1, 4  ;;  %v5459_v35 = vrot.slane %v5457_v15, 5  ;;  %v7159_v49 = vld [vmem:[%s9164_s19 + $0x30] sm:$0xe] }
 0x147   : > { %8264 = vmatpush3.bf16.msra.mxu0 %v8776_v55  ;;  %8315 = vmatprep.subr.bf16.mxu1 %v8785_v28  ;;  %v4666_v55 = vrot.slane %v10137_v37, 5  ;;  %v4243_v10 = vsel %vm9189_vm2, %v10577_v4, %v10568_v58  ;;  %v10605_v37 = vsel %vm9563_vm5, %v7173_v46, %v4656_v61  ;;  %v5464_v3 = vrot.slane %v5462_v19, 4  ;;  %v7268_v0 = vld [vmem:[%s9164_s19 + $0x28] sm:$0xf]  ;;  %v8858_v15 = vld [vmem:[%s9164_s19 + $0x34] sm:$0xf] }
 0x148   : > { %8265 = vmatprep.subr.bf16.mxu0 %v8780_v50  ;;  %v5467_v44 = vrot.slane %v5465_v54, 5  ;;  %v10619_v58 = vrot.slane %v5471_v17, 5  ;;  %v5477_v25 = vrot.slane %v5475_v7, 4  ;;  %v10628_v61 = vsel %vm9563_vm5, %v7174_v32, %v4663_v13  ;;  %v7271_v17 = vld [vmem:[%s9164_s19 + $0x34] sm:$0xf] }
 0x149   : > { %v10632_v20 = vsel %vm9563_vm5, %v4665_v63, %v4666_v55  ;;  %v5450_v2 = vsel %vm9189_vm2, %v5445_v22, %v10546_v30  ;;  %v5460_v4 = vsel %vm9189_vm2, %v5455_v45, %v5459_v35  ;;  %v5486_v46 = vshrl.u32 %v7267_v5, 16  ;;  %v8859_v7 = vld [vmem:[%s9164_s19 + $0x38] sm:$0x1]  ;;  %v7273_v63 = vld [vmem:[%s9164_s19 + $0x3c] sm:$0xf] }
 0x14a   : > { %8234 = vmatmul.mubr.bf16.gmra.mrb[8].mxu0 %v10389_v27  ;;  %8316 = vmatpush3.bf16.msra.mxu1 %v8785_v28  ;;  %v4257_v27 = vsel %vm9189_vm2, %v4252_v6, %v10543_v43  ;;  %v10617_v28 = vsel %vm9563_vm5, %v4658_v16, %v4659_v9  ;;  %v4267_v43 = vsel %vm9189_vm2, %v4262_v24, %v4266_v31  ;;  %v5489_v13 = vshll.u32 %v7267_v5, 16  ;;  %v8779_v31 = vld [vmem:[%s9164_s19 + $0x78] sm:$0xff]   ;;  %v7274_v45 = vld [vmem:[%s9164_s19 + $0x40] sm:$0xf] }
 0x14b   : > { %8237 = vmatprep.mubr.bf16.mxu0 %v10411_v47  ;;  %8266 = vmatpush3.bf16.msra.mxu0 %v8780_v50  ;;  %v8788_v47 = vld [vmem:[%s11454_s1 + $0x230] sm:$0xff]   ;;  %v7266_v50 = vld [vmem:[%s9164_s19 + $0x20] sm:$0x1]  ;;  %v10652_v30 = vcombine.low %v4209_v21, %v4219_v38  ;;  %v10654_v11 = vcombine.low %v4233_v29, %v4243_v10  ;;  %v5468_v1 = vor.u32 %v5467_v44, %v5464_v3  ;;  %v4670_v33 = vrot.slane %v8858_v15, 5  ;;  %v8782_v21 = vld [vmem:[%s9164_s19 + $0x84] sm:$0xff]  }
 0x14c   : > { %8267 = vmatprep.subr.bf16.mxu0 %v8784_v39  ;;  %8317 = vmatprep.subr.bf16.mxu1 %v8789_v26  ;;  %v10658_v9 = vcombine.low %v4257_v27, %v4267_v43  ;;  %v7205_v57 = vcombine.low %v10605_v37, %v10617_v28  ;;  %v5478_v48 = vor.u32 %v5477_v25, %v10619_v58  ;;  %v5481_v52 = vshll.u32 %v7266_v50, 16  ;;  %v8792_v38 = vld [vmem:[%s11454_s1 + $0x238] sm:$0xff]  }
 0x14d   : > { %8046 = vmatmul.mubr.bf16.gmra.mrb[12].mxu1 %v8775_v60  ;;  %v10668_v19 = vcombine.low %v5450_v2, %v5460_v4  ;;  %v7206_v54 = vcombine.low %v10628_v61, %v10632_v20  ;;  %v7175_v6 = vrot.slane %v7159_v49, 9  ;;  %v5495_v16 = vshll.u32 %v7268_v0, 16 }
 0x14e   : > { %8049 = vmatprep.mubr.bf16.mxu1 %v8778_v59  ;;  %8318 = vmatpush3.bf16.msra.mxu1 %v8789_v26  ;;  %v5488_v26 = vrot.slane %v5486_v46, 4  ;;  %v5491_v24 = vrot.slane %v5489_v13, 5  ;;  %v5499_v32 = vshrl.u32 %v7268_v0, 16  ;;  %v5469_v55 = vrot.slane %v5468_v1, 4  ;;  %v7272_v1 = vld [vmem:[%s9164_s19 + $0x38] sm:$0x1] }
 0x14f   : > { %8268 = vmatpush3.bf16.msra.mxu0 %v8784_v39  ;;  %8319 = vmatprep.subr.bf16.mxu1 %v8793_v40  ;;  %v4673_v39 = vrot.slane %v8859_v7, 5  ;;  %v4672_v60 = vrot.slane %v4670_v33, 4  ;;  %v5510_v29 = vshrl.u32 %v7270_v56, 16  ;;  %v5513_v22 = vshll.u32 %v7270_v56, 16  ;;  %v8786_v7 = vld [vmem:[%s9164_s19 + $0x9c] sm:$0xff]  }
 0x150   : > { %8269 = vmatprep.subr.bf16.mxu0 %v8788_v47  ;;  %v5479_v35 = vrot.slane %v5478_v48, 4  ;;  %v5483_v59 = vrot.slane %v5481_v52, 5  ;;  %v5519_v10 = vshll.u32 %v7271_v17, 16  ;;  %v5523_v3 = vshrl.u32 %v7271_v17, 16  ;;  %v8860_v48 = vld [vmem:[%s9164_s19 + $0x40] sm:$0xf] }
 0x151   : > { %v10680_v44 = vsel %vm9563_vm5, %v7175_v6, %v4670_v33  ;;  %v10683_v5 = vrot.slane %v5495_v16, 5  ;;  %v5534_v27 = vshrl.u32 %v7273_v63, 16  ;;  %v5492_v25 = vor.u32 %v5491_v24, %v5488_v26 }
 0x152   : > { %8238 = vmatmul.mubr.bf16.gmra.mrb[12].mxu0 %v10482_v18  ;;  %8320 = vmatpush3.bf16.msra.mxu1 %v8793_v40  ;;  %v7269_v18 = vld [vmem:[%s9164_s19 + $0x2c] sm:$0x1]  ;;  %v5537_v40 = vshll.u32 %v7273_v63, 16  ;;  %v5501_v43 = vrot.slane %v5499_v32, 4  ;;  %v5547_v50 = vshrl.u32 %v7274_v45, 16  ;;  %v5474_v2 = vsel %vm9189_vm2, %v5469_v55, %v10619_v58 }
 0x153   : > { %8241 = vmatprep.mubr.bf16.mxu0 %v10484_v62  ;;  %8270 = vmatpush3.bf16.msra.mxu0 %v8788_v47  ;;  %v7160_v62 = vld [vmem:[%s9164_s19 + $0x3c] sm:$0xe]  ;;  %v5543_v47 = vshll.u32 %v7274_v45, 16  ;;  %v10691_v4 = vsel %vm9563_vm5, %v4672_v60, %v4673_v39  ;;  %v5512_v49 = vrot.slane %v5510_v29, 4  ;;  %v5515_v0 = vrot.slane %v5513_v22, 5 }
 0x154   : > { %8271 = vmatprep.subr.bf16.mxu0 %v8792_v38  ;;  %v5484_v46 = vsel %vm9189_vm2, %v5479_v35, %v5483_v59  ;;  %v5505_v13 = vshll.u32 %v7269_v18, 16  ;;  %v10696_v15 = vrot.slane %v5519_v10, 5  ;;  %v5525_v33 = vrot.slane %v5523_v3, 4  ;;  %v7275_v63 = vld [vmem:[%s9164_s19 + $0x44] sm:$0x1] }
 0x155   : > { %8050 = vmatmul.mubr.bf16.gmra.mrb[16].mxu1 %v8779_v31  ;;  %v7176_v31 = vrot.slane %v7160_v62, 9  ;;  %v4677_v58 = vrot.slane %v8860_v48, 5  ;;  %v5536_v52 = vrot.slane %v5534_v27, 4  ;;  %v5539_v56 = vrot.slane %v5537_v40, 5  ;;  %v8861_v60 = vld [vmem:[%s9164_s19 + $0x44] sm:$0x1] }
 0x156   : > { %8053 = vmatprep.mubr.bf16.mxu1 %v8782_v21  ;;  %v8783_v21 = vld [vmem:[%s9164_s19 + $0x90] sm:$0xff]   ;;  %v10700_v6 = vrot.slane %v5492_v25, 4  ;;  %v10703_v16 = vrot.slane %v5543_v47, 5  ;;  %v5549_v17 = vrot.slane %v5547_v50, 4  ;;  %v10707_v39 = vcombine.low %v5474_v2, %v5484_v46  ;;  %v8862_v45 = vld [vmem:[%s9164_s19 + $0x4c] sm:$0xf] }
 0x157   : > { %8272 = vmatpush3.bf16.msra.mxu0 %v8792_v38  ;;  %v5502_v38 = vor.u32 %v5501_v43, %v10683_v5  ;;  %v7207_v26 = vcombine.low %v10680_v44, %v10691_v4  ;;  %v5516_v24 = vor.u32 %v5515_v0, %v5512_v49  ;;  %v5529_v32 = vshll.u32 %v7272_v1, 16  ;;  %v7276_v18 = vld [vmem:[%s9164_s19 + $0x48] sm:$0xf]  ;;  %v7162_v62 = vld [vmem:[%s9164_s19 + $0x54] sm:$0xe] }
 0x158   : > { %v10713_v55 = vrot.slane %v5505_v13, 5  ;;  %v4680_v29 = vrot.slane %v8861_v60, 5  ;;  %v5526_v22 = vor.u32 %v5525_v33, %v10696_v15  ;;  %v4684_v35 = vrot.slane %v8862_v45, 5  ;;  %v8863_v49 = vld [vmem:[%s9164_s19 + $0x50] sm:$0x1] }
 0x159   : > { %v10721_v59 = vsel %vm9563_vm5, %v7176_v31, %v4677_v58  ;;  %v4679_v10 = vrot.slane %v4677_v58, 4  ;;  %v5540_v3 = vor.u32 %v5539_v56, %v5536_v52  ;;  %v5498_v27 = vsel %vm9189_vm2, %v10700_v6, %v10683_v5  ;;  %v7277_v0 = vld [vmem:[%s9164_s19 + $0x4c] sm:$0xf]  ;;  %v7278_v6 = vld [vmem:[%s9164_s19 + $0x50] sm:$0x1] }
 0x15a   : > { %8242 = vmatmul.mubr.bf16.gmra.mrb[16].mxu0 %v10493_v53  ;;  %v7161_v53 = vld [vmem:[%s9164_s19 + $0x48] sm:$0xe]  ;;  %v5503_v40 = vrot.slane %v5502_v38, 4  ;;  %v5550_v25 = vor.u32 %v5549_v17, %v10703_v16  ;;  %v5553_v43 = vshll.u32 %v7275_v63, 16  ;;  %v5517_v47 = vrot.slane %v5516_v24, 4 }
 0x15b   : > { %8245 = vmatprep.mubr.bf16.mxu0 %v10495_v34  ;;  %v4691_v34 = vrot.slane %v10238_v41, 5  ;;  %v5531_v50 = vrot.slane %v5529_v32, 5  ;;  %v7177_v2 = vrot.slane %v7161_v53, 9  ;;  %v4687_v41 = vrot.slane %v8863_v49, 5  ;;  %v8787_v5 = vld [vmem:[%s9164_s19 + $0xa8] sm:$0xff]  }
 0x15c   : > { %v5527_v46 = vrot.slane %v5526_v22, 4  ;;  %v4686_v13 = vrot.slane %v4684_v35, 4  ;;  %v5558_v1 = vshrl.u32 %v7276_v18, 16  ;;  %v5561_v33 = vshll.u32 %v7276_v18, 16  ;;  %v7279_v22 = vld [vmem:[%s9164_s19 + $0x54] sm:$0xf] }
 0x15d   : > { %8054 = vmatmul.mubr.bf16.gmra.mrb[20].mxu1 %v8783_v21  ;;  %v5541_v31 = vrot.slane %v5540_v3, 4  ;;  %v7178_v48 = vrot.slane %v7162_v62, 9  ;;  %v4693_v58 = vrot.slane %v4691_v34, 4  ;;  %v4694_v52 = vrot.slane %v10279_v51, 5 }
 0x15e   : > { %8057 = vmatprep.mubr.bf16.mxu1 %v8786_v7  ;;  %v5551_v56 = vrot.slane %v5550_v25, 4  ;;  %v5555_v21 = vrot.slane %v5553_v43, 5  ;;  %v5567_v38 = vshll.u32 %v7277_v0, 16  ;;  %v5571_v17 = vshrl.u32 %v7277_v0, 16  ;;  %v8790_v7 = vld [vmem:[%s9164_s19 + $0xb4] sm:$0xff]  }
 0x15f   : > { %v5508_v24 = vsel %vm9189_vm2, %v5503_v40, %v10713_v55  ;;  %v10743_v32 = vsel %vm9563_vm5, %v4679_v10, %v4680_v29  ;;  %v5522_v51 = vsel %vm9189_vm2, %v5517_v47, %v10696_v15  ;;  %v10750_v63 = vsel %vm9563_vm5, %v7177_v2, %v4684_v35  ;;  %v7163_v35 = vld [vmem:[%s9164_s19 + $0x60] sm:$0xe]  ;;  %v8864_v40 = vld [vmem:[%s9164_s19 + $0x64] sm:$0xf]  ;;  %v7280_v43 = vld [vmem:[%s9164_s19 + $0x58] sm:$0xf] }
 0x160   : > { %v10757_v55 = vsel %vm9563_vm5, %v4686_v13, %v4687_v41  ;;  %v5560_v60 = vrot.slane %v5558_v1, 4  ;;  %v5563_v29 = vrot.slane %v5561_v33, 5  ;;  %v5546_v15 = vsel %vm9189_vm2, %v5541_v31, %v10703_v16  ;;  %v7282_v0 = vld [vmem:[%s9164_s19 + $0x60] sm:$0xf]  ;;  %v7283_v33 = vld [vmem:[%s9164_s19 + $0x64] sm:$0xf] }
 0x161   : > { %v10765_v53 = vsel %vm9563_vm5, %v7178_v48, %v4691_v34  ;;  %v5577_v45 = vshll.u32 %v7278_v6, 16  ;;  %v5556_v10 = vsel %vm9189_vm2, %v5551_v56, %v5555_v21  ;;  %v10774_v3 = vrot.slane %v5567_v38, 5  ;;  %v8791_v31 = vld [vmem:[%s9164_s19 + $0xc0] sm:$0xff]   ;;  %v7286_v21 = vld [vmem:[%s9164_s19 + $0x70] sm:$0xf] }
 0x162   : > { %8246 = vmatmul.mubr.bf16.gmra.mrb[20].mxu0 %v10550_v8  ;;  %v5532_v8 = vsel %vm9189_vm2, %v5527_v46, %v5531_v50  ;;  %v5573_v18 = vrot.slane %v5571_v17, 4  ;;  %v4698_v16 = vrot.slane %v8864_v40, 5  ;;  %v10777_v34 = vcombine.low %v5498_v27, %v5508_v24  ;;  %v7291_v27 = vld [vmem:[%s9164_s19 + $0x84] sm:$0xf] }
 0x163   : > { %8249 = vmatprep.mubr.bf16.mxu0 %v10552_v12  ;;  %v10769_v12 = vsel %vm9563_vm5, %v4693_v58, %v4694_v52  ;;  %v5582_v62 = vshrl.u32 %v7279_v22, 16  ;;  %v5585_v47 = vshll.u32 %v7279_v22, 16  ;;  %v10782_v50 = vcombine.low %v5522_v51, %v5532_v8  ;;  %v7281_v51 = vld [vmem:[%s9164_s19 + $0x5c] sm:$0x1] }
 0x164   : > { %v5564_v49 = vor.u32 %v5563_v29, %v5560_v60  ;;  %v7179_v41 = vrot.slane %v7163_v35, 9  ;;  %v10787_v46 = vcombine.low %v5546_v15, %v5556_v10  ;;  %v10791_v13 = vrot.slane %v5577_v45, 5  ;;  %v7164_v29 = vld [vmem:[%s9164_s19 + $0x6c] sm:$0xe] }
 0x165   : > { %8058 = vmatmul.mubr.bf16.gmra.mrb[24].mxu1 %v8787_v5  ;;  %v4701_v1 = vrot.slane %v10313_v14, 5  ;;  %v7285_v5 = vld [vmem:[%s9164_s19 + $0x6c] sm:$0xf]  ;;  %v5574_v48 = vor.u32 %v5573_v18, %v10774_v3  ;;  %v4700_v58 = vrot.slane %v4698_v16, 4  ;;  %v5591_v52 = vshll.u32 %v7280_v43, 16 }
 0x166   : > { %8061 = vmatprep.mubr.bf16.mxu1 %v8790_v7  ;;  %v5595_v56 = vshrl.u32 %v7280_v43, 16  ;;  %v5584_v6 = vrot.slane %v5582_v62, 4  ;;  %v5587_v38 = vrot.slane %v5585_v47, 5  ;;  %v5606_v17 = vshrl.u32 %v7282_v0, 16 }
 0x167   : > { %v5609_v7 = vshll.u32 %v7282_v0, 16  ;;  %v10801_v14 = vrot.slane %v5564_v49, 4  ;;  %v10805_v24 = vsel %vm9563_vm5, %v7179_v41, %v4698_v16  ;;  %v5615_v8 = vshll.u32 %v7283_v33, 16  ;;  %v8865_v49 = vld [vmem:[%s9164_s19 + $0x70] sm:$0xf] }
 0x168   : > { %v5619_v60 = vshrl.u32 %v7283_v33, 16  ;;  %v5630_v22 = vshrl.u32 %v7285_v5, 16  ;;  %v5633_v15 = vshll.u32 %v7285_v5, 16  ;;  %v5643_v45 = vshrl.u32 %v7286_v21, 16 }
 0x169   : > { %v10809_v35 = vrot.slane %v5574_v48, 4  ;;  %v10815_v10 = vrot.slane %v5591_v52, 5  ;;  %v5597_v18 = vrot.slane %v5595_v56, 4  ;;  %v5588_v40 = vor.u32 %v5587_v38, %v5584_v6  ;;  %v7287_v6 = vld [vmem:[%s9164_s19 + $0x74] sm:$0x1] }
 0x16a   : > { %8250 = vmatmul.mubr.bf16.gmra.mrb[24].mxu0 %v10652_v30  ;;  %v5639_v30 = vshll.u32 %v7286_v21, 16  ;;  %v5601_v16 = vshll.u32 %v7281_v51, 16  ;;  %v5608_v43 = vrot.slane %v5606_v17, 4  ;;  %v5611_v62 = vrot.slane %v5609_v7, 5  ;;  %v7288_v38 = vld [vmem:[%s9164_s19 + $0x78] sm:$0xf] }
 0x16b   : > { %8253 = vmatprep.mubr.bf16.mxu0 %v10654_v11  ;;  %v10813_v11 = vsel %vm9563_vm5, %v4700_v58, %v4701_v1  ;;  %v7180_v47 = vrot.slane %v7164_v29, 9  ;;  %v4705_v41 = vrot.slane %v8865_v49, 5  ;;  %v10819_v0 = vrot.slane %v5615_v8, 5  ;;  %v7284_v1 = vld [vmem:[%s9164_s19 + $0x68] sm:$0x1] }
 0x16c   : > { %v5621_v33 = vrot.slane %v5619_v60, 4  ;;  %v5632_v5 = vrot.slane %v5630_v22, 4  ;;  %v10822_v48 = vrot.slane %v5639_v30, 5  ;;  %v5570_v58 = vsel %vm9189_vm2, %v10801_v14, %v10774_v3  ;;  %v8866_v51 = vld [vmem:[%s9164_s19 + $0x74] sm:$0x1] }
 0x16d   : > { %8062 = vmatmul.mubr.bf16.gmra.mrb[28].mxu1 %v8791_v31  ;;  %v5635_v31 = vrot.slane %v5633_v15, 5  ;;  %v5580_v52 = vsel %vm9189_vm2, %v10809_v35, %v10791_v13  ;;  %v5598_v21 = vor.u32 %v5597_v18, %v10815_v10  ;;  %v10838_v17 = vrot.slane %v5588_v40, 4  ;;  %v7289_v29 = vld [vmem:[%s9164_s19 + $0x7c] sm:$0xf] }
 0x16e   : > { %8321 = vmatprep.mubr.bf16.mxu1 %v10668_v19  ;;  %v5645_v19 = vrot.slane %v5643_v45, 4  ;;  %v10840_v7 = vrot.slane %v5601_v16, 5  ;;  %v4708_v8 = vrot.slane %v8866_v51, 5  ;;  %v5612_v60 = vor.u32 %v5611_v62, %v5608_v43  ;;  %v8867_v45 = vld [vmem:[%s9164_s19 + $0x7c] sm:$0xf] }
 0x16f   : > { %v10849_v22 = vsel %vm9563_vm5, %v7180_v47, %v4705_v41  ;;  %v5622_v15 = vor.u32 %v5621_v33, %v10819_v0  ;;  %v5625_v30 = vshll.u32 %v7284_v1, 16  ;;  %v4712_v18 = vrot.slane %v8867_v45, 5 }
 0x170   : > { %v4707_v40 = vrot.slane %v4705_v41, 4  ;;  %v5636_v16 = vor.u32 %v5635_v31, %v5632_v5  ;;  %v5646_v43 = vor.u32 %v5645_v19, %v10822_v48  ;;  %v5649_v62 = vshll.u32 %v7287_v6, 16 }
 0x171   : > { %v5654_v37 = vshrl.u32 %v7288_v38, 16  ;;  %v5657_v28 = vshll.u32 %v7288_v38, 16  ;;  %v5667_v47 = vshrl.u32 %v7289_v29, 16  ;;  %v5594_v49 = vsel %vm9189_vm2, %v10838_v17, %v10815_v10  ;;  %v7166_v38 = vld [vmem:[%s9164_s19 + $0x84] sm:$0xe] }
 0x172   : > { %8254 = vmatmul.mubr.bf16.gmra.mrb[28].mxu0 %v10658_v9  ;;  %v7165_v9 = vld [vmem:[%s9164_s19 + $0x78] sm:$0xe]  ;;  %v5599_v41 = vrot.slane %v5598_v21, 4  ;;  %v5613_v33 = vrot.slane %v5612_v60, 4  ;;  %v5623_v5 = vrot.slane %v5622_v15, 4  ;;  %v5627_v31 = vrot.slane %v5625_v30, 5 }
 0x173   : > { %8273 = vmatprep.mubr.bf16.mxu0 %v7205_v57  ;;  %v5663_v57 = vshll.u32 %v7289_v29, 16  ;;  %v7181_v1 = vrot.slane %v7165_v9, 9  ;;  %v4714_v19 = vrot.slane %v4712_v18, 4  ;;  %v5637_v51 = vrot.slane %v5636_v16, 4  ;;  %v7290_v9 = vld [vmem:[%s9164_s19 + $0x80] sm:$0x1] }
 0x174   : > { %v5647_v29 = vrot.slane %v5646_v43, 4  ;;  %v5651_v45 = vrot.slane %v5649_v62, 5  ;;  %v5656_v2 = vrot.slane %v5654_v37, 4  ;;  %v5659_v25 = vrot.slane %v5657_v28, 5  ;;  %v7294_v28 = vld [vmem:[%s9164_s19 + $0x90] sm:$0xf] }
 0x175   : > { %8322 = vmatmul.mubr.bf16.vlgmr.msra.gmra.mrb[32].mxu1 %v10707_v39  ;;  %v8868_v39 = vld [vmem:[%s9164_s19 + $0x80] sm:$0x1]  ;;  %v10865_v10 = vrot.slane %v5663_v57, 5  ;;  %v5669_v21 = vrot.slane %v5667_v47, 4  ;;  %v5604_v17 = vsel %vm9189_vm2, %v5599_v41, %v10840_v7  ;;  %v10875_v60 = vsel %vm9563_vm5, %v4707_v40, %v4708_v8 }
 0x176   : > { %8325 = vmatprep.mubr.bf16.mxu1 %v10777_v34  ;;  %v4715_v6 = vrot.slane %v8868_v39, 5  ;;  %v8869_v34 = vld [vmem:[%s9164_s19 + $0x88] sm:$0xf]  ;;  %v5618_v15 = vsel %vm9189_vm2, %v5613_v33, %v10819_v0  ;;  %v10882_v30 = vsel %vm9563_vm5, %v7181_v1, %v4712_v18  ;;  %v7182_v20 = vrot.slane %v7166_v38, 9  ;;  %v7297_v33 = vld [vmem:[%s9164_s19 + $0x9c] sm:$0xf] }
 0x177   : > { %v4719_v56 = vrot.slane %v8869_v34, 5  ;;  %v5678_v7 = vshrl.u32 %v7291_v27, 16  ;;  %v5681_v8 = vshll.u32 %v7291_v27, 16  ;;  %v5628_v0 = vsel %vm9189_vm2, %v5623_v5, %v5627_v31  ;;  %v7298_v39 = vld [vmem:[%s9164_s19 + $0xa0] sm:$0xf] }
 0x178   : > { %v10890_v61 = vsel %vm9563_vm5, %v4714_v19, %v4715_v6  ;;  %v5642_v18 = vsel %vm9189_vm2, %v5637_v51, %v10822_v48  ;;  %v4722_v44 = vrot.slane %v10406_v23, 5  ;;  %v5652_v4 = vsel %vm9189_vm2, %v5647_v29, %v5651_v45  ;;  %v8871_v29 = vld [vmem:[%s9164_s19 + $0x98] sm:$0x1]  ;;  %v7293_v34 = vld [vmem:[%s9164_s19 + $0x8c] sm:$0x1] }
 0x179   : > { %v4721_v40 = vrot.slane %v4719_v56, 4  ;;  %v5670_v27 = vor.u32 %v5669_v21, %v10865_v10  ;;  %v5673_v16 = vshll.u32 %v7290_v9, 16  ;;  %v7314_v23 = vcombine.low %v5570_v58, %v5580_v52  ;;  %v7167_v58 = vld [vmem:[%s9164_s19 + $0x90] sm:$0xe]  ;;  %v7295_v52 = vld [vmem:[%s9164_s19 + $0x94] sm:$0xf] }
 0x17a   : > { %8274 = vmatmul.mubr.bf16.vlgmr.msra.gmra.mrb[0].mxu0 %v7206_v54  ;;  %v7292_v54 = vld [vmem:[%s9164_s19 + $0x88] sm:$0xf]  ;;  %v7315_v48 = vcombine.low %v5594_v49, %v5604_v17  ;;  %v5680_v62 = vrot.slane %v5678_v7, 4  ;;  %v5683_v37 = vrot.slane %v5681_v8, 5  ;;  %v10918_v13 = vcombine.low %v5618_v15, %v5628_v0  ;;  %v10953_v8 = vld [vmem:[%s9164_s19 + $0x9c] sm:$0xe] }
 0x17b   : > { %8277 = vmatprep.mubr.bf16.mxu0 %v7207_v26  ;;  %v5660_v26 = vor.u32 %v5659_v25, %v5656_v2  ;;  %v7212_v25 = vcombine.low %v10849_v22, %v10875_v60  ;;  %v5691_v2 = vshrl.u32 %v7292_v54, 16  ;;  %v7213_v3 = vcombine.low %v10882_v30, %v10890_v61  ;;  %v7307_v22 = vld [vmem:[%s9164_s19 + $0xc4] sm:$0xf]  ;;  %v7305_v30 = vld [vmem:[%s9164_s19 + $0xbc] sm:$0x1] }
 0x17c   : > { %v10922_v14 = vcombine.low %v5642_v18, %v5652_v4  ;;  %v10926_v35 = vsel %vm9563_vm5, %v7182_v20, %v4719_v56  ;;  %v10932_v57 = vsel %vm9563_vm5, %v4721_v40, %v4722_v44  ;;  %v5671_v49 = vrot.slane %v5670_v27, 4 }
 0x17d   : > { %8326 = vmatmul.mubr.bf16.gmra.mrb[36].mxu1 %v10782_v50  ;;  %v5687_v50 = vshll.u32 %v7292_v54, 16  ;;  %v5661_v47 = vrot.slane %v5660_v26, 4  ;;  %v5675_v41 = vrot.slane %v5673_v16, 5  ;;  %v11465_v1 = vcombine.low %v10721_v59, %v10743_v32  ;;  %v7296_v26 = vld [vmem:[%s9164_s19 + $0x98] sm:$0x1] }
 0x17e   : > { %8329 = vmatprep.mubr.bf16.mxu1 %v10787_v46  ;;  %v8870_v46 = vld [vmem:[%s9164_s19 + $0x94] sm:$0xf]  ;;  %v5693_v56 = vrot.slane %v5691_v2, 4  ;;  %v5702_v31 = vshrl.u32 %v7294_v28, 16  ;;  %v5705_v19 = vshll.u32 %v7294_v28, 16  ;;  %v11466_v6 = vcombine.low %v10750_v63, %v10757_v55 }
 0x17f   : > { %v4726_v43 = vrot.slane %v8870_v46, 5  ;;  %v10938_v5 = vrot.slane %v5687_v50, 5  ;;  %v7183_v38 = vrot.slane %v7167_v58, 9  ;;  %v4729_v45 = vrot.slane %v8871_v29, 5 }
 0x180   : > { %v5684_v21 = vor.u32 %v5683_v37, %v5680_v62  ;;  %v5711_v17 = vshll.u32 %v7295_v52, 16  ;;  %v5715_v59 = vshrl.u32 %v7295_v52, 16  ;;  %v5726_v32 = vshrl.u32 %v7297_v33, 16  ;;  %v7300_v37 = vld [vmem:[%s9164_s19 + $0xa8] sm:$0xf] }
 0x181   : > { %v4728_v51 = vrot.slane %v4726_v43, 4  ;;  %v5729_v15 = vshll.u32 %v7297_v33, 16  ;;  %v5666_v9 = vsel %vm9189_vm2, %v5661_v47, %v10865_v10  ;;  %v5676_v63 = vsel %vm9189_vm2, %v5671_v49, %v5675_v41  ;;  %v7301_v41 = vld [vmem:[%s9164_s19 + $0xac] sm:$0xf] }
 0x182   : > { %8278 = vmatmul.mubr.bf16.gmra.mrb[4].mxu0 %v11465_v1  ;;  %v5735_v55 = vshll.u32 %v7298_v39, 16  ;;  %v5739_v20 = vshrl.u32 %v7298_v39, 16  ;;  %v5694_v54 = vor.u32 %v5693_v56, %v10938_v5  ;;  %v5697_v7 = vshll.u32 %v7293_v34, 16 }
 0x183   : > { %8281 = vmatprep.mubr.bf16.mxu0 %v11466_v6  ;;  %v5704_v0 = vrot.slane %v5702_v31, 4  ;;  %v5707_v18 = vrot.slane %v5705_v19, 5  ;;  %v7214_v40 = vcombine.low %v10926_v35, %v10932_v57  ;;  %v10959_v10 = vsel %vm9563_vm5, %v7183_v38, %v4726_v43  ;;  %v10992_v31 = vld [vmem:[%s9164_s19 + $0xa4] sm:$0x1]  ;;  %v7303_v38 = vld [vmem:[%s9164_s19 + $0xb4] sm:$0xf] }
 0x184   : > { %v10963_v44 = vsel %vm9563_vm5, %v4728_v51, %v4729_v45  ;;  %v5685_v4 = vrot.slane %v5684_v21, 4  ;;  %v10966_v27 = vrot.slane %v5711_v17, 5  ;;  %v5717_v16 = vrot.slane %v5715_v59, 4  ;;  %v7304_v51 = vld [vmem:[%s9164_s19 + $0xb8] sm:$0xf] }
 0x185   : > { %8330 = vmatmul.mubr.bf16.gmra.mrb[40].mxu1 %v7314_v23  ;;  %v7299_v23 = vld [vmem:[%s9164_s19 + $0xa4] sm:$0x1]  ;;  %v5728_v50 = vrot.slane %v5726_v32, 4  ;;  %v5731_v2 = vrot.slane %v5729_v15, 5  ;;  %v7184_v46 = vrot.slane %v10953_v8, 9  ;;  %v10972_v43 = vrot.slane %v5735_v55, 5 }
 0x186   : > { %8333 = vmatprep.mubr.bf16.mxu1 %v7315_v48  ;;  %v10969_v48 = vcombine.low %v5666_v9, %v5676_v63  ;;  %v5741_v62 = vrot.slane %v5739_v20, 4  ;;  %v11467_v28 = vcombine.low %v10765_v53, %v10769_v12  ;;  %v5695_v58 = vrot.slane %v5694_v54, 4  ;;  %v10988_v53 = vld [vmem:[%s9164_s19 + $0xa0] sm:$0xf]  ;;  %v8874_v32 = vld [vmem:[%s9164_s19 + $0xac] sm:$0xf] }
 0x187   : > { %v5699_v52 = vrot.slane %v5697_v7, 5  ;;  %v5708_v47 = vor.u32 %v5707_v18, %v5704_v0  ;;  %v5721_v49 = vshll.u32 %v7296_v26, 16  ;;  %v11468_v33 = vcombine.low %v10805_v24, %v10813_v11  ;;  %v7169_v9 = vld [vmem:[%s9164_s19 + $0xa8] sm:$0xe] }
 0x188   : > { %v7215_v1 = vcombine.low %v10959_v10, %v10963_v44  ;;  %v5690_v56 = vsel %vm9189_vm2, %v5685_v4, %v10938_v5  ;;  %v4733_v12 = vrot.slane %v10988_v53, 5  ;;  %v4736_v19 = vrot.slane %v10992_v31, 5  ;;  %v7302_v4 = vld [vmem:[%s9164_s19 + $0xb0] sm:$0x1]  ;;  %v7170_v31 = vld [vmem:[%s9164_s19 + $0xb4] sm:$0xe] }
 0x189   : > { %v5718_v39 = vor.u32 %v5717_v16, %v10966_v27  ;;  %v5732_v24 = vor.u32 %v5731_v2, %v5728_v50  ;;  %v5745_v11 = vshll.u32 %v7299_v23, 16  ;;  %v5750_v6 = vshrl.u32 %v7300_v37, 16  ;;  %v7171_v10 = vld [vmem:[%s9164_s19 + $0xc0] sm:$0xe] }
 0x18a   : > { %8282 = vmatmul.mubr.bf16.gmra.mrb[8].mxu0 %v11467_v28  ;;  %v5742_v5 = vor.u32 %v5741_v62, %v10972_v43  ;;  %v5753_v29 = vshll.u32 %v7300_v37, 16  ;;  %v5759_v45 = vshll.u32 %v7301_v41, 16  ;;  %v5763_v34 = vshrl.u32 %v7301_v41, 16  ;;  %v8875_v37 = vld [vmem:[%s9164_s19 + $0xb0] sm:$0x1] }
 0x18b   : > { %8285 = vmatprep.mubr.bf16.mxu0 %v11468_v33  ;;  %v5700_v21 = vsel %vm9189_vm2, %v5695_v58, %v5699_v52  ;;  %v5709_v17 = vrot.slane %v5708_v47, 4  ;;  %v5723_v59 = vrot.slane %v5721_v49, 5  ;;  %v4740_v15 = vrot.slane %v8874_v32, 5  ;;  %v7306_v58 = vld [vmem:[%s9164_s19 + $0xc0] sm:$0xf] }
 0x18c   : > { %v5774_v63 = vshrl.u32 %v7303_v38, 16  ;;  %v5777_v55 = vshll.u32 %v7303_v38, 16  ;;  %v5787_v20 = vshrl.u32 %v7304_v51, 16  ;;  %v5719_v54 = vrot.slane %v5718_v39, 4 }
 0x18d   : > { %8334 = vmatmul.mubr.bf16.gmra.mrb[44].mxu1 %v10918_v13  ;;  %v5783_v13 = vshll.u32 %v7304_v51, 16  ;;  %v5733_v7 = vrot.slane %v5732_v24, 4  ;;  %v5747_v0 = vrot.slane %v5745_v11, 5  ;;  %v5752_v18 = vrot.slane %v5750_v6, 4 }
 0x18e   : > { %8337 = vmatprep.mubr.bf16.mxu1 %v10922_v14  ;;  %v5743_v14 = vrot.slane %v5742_v5, 4  ;;  %v5755_v26 = vrot.slane %v5753_v29, 5  ;;  %v11006_v16 = vrot.slane %v5759_v45, 5  ;;  %v5765_v23 = vrot.slane %v5763_v34, 4 }
 0x18f   : > { %v7319_v50 = vcombine.low %v5690_v56, %v5700_v21  ;;  %v4735_v2 = vrot.slane %v4733_v12, 4  ;;  %v7185_v62 = vrot.slane %v7169_v9, 9  ;;  %v4743_v28 = vrot.slane %v8875_v37, 5  ;;  %v8879_v37 = vld [vmem:[%s9164_s19 + $0xc8] sm:$0x1] }
 0x190   : > { %v5776_v52 = vrot.slane %v5774_v63, 4  ;;  %v5779_v47 = vrot.slane %v5777_v55, 5  ;;  %v11018_v49 = vrot.slane %v5783_v13, 5  ;;  %v5789_v41 = vrot.slane %v5787_v20, 4  ;;  %v7308_v20 = vld [vmem:[%s9164_s19 + $0xc8] sm:$0x1] }
 0x191   : > { %v5714_v60 = vsel %vm9189_vm2, %v5709_v17, %v10966_v27  ;;  %v4742_v33 = vrot.slane %v4740_v15, 4  ;;  %v5738_v56 = vsel %vm9189_vm2, %v5733_v7, %v10972_v43  ;;  %v5748_v61 = vsel %vm9189_vm2, %v5743_v14, %v5747_v0 }
 0x192   : > { %8286 = vmatmul.mubr.bf16.gmra.mrb[12].mxu0 %v7212_v25  ;;  %v5724_v25 = vsel %vm9189_vm2, %v5719_v54, %v5723_v59  ;;  %v5766_v39 = vor.u32 %v5765_v23, %v11006_v16  ;;  %v5769_v24 = vshll.u32 %v7302_v4, 16  ;;  %v5798_v27 = vshrl.u32 %v7306_v58, 16  ;;  %v8877_v54 = vld [vmem:[%s9164_s19 + $0xc4] sm:$0xf] }
 0x193   : > { %8289 = vmatprep.mubr.bf16.mxu0 %v7213_v3  ;;  %v5756_v3 = vor.u32 %v5755_v26, %v5752_v18  ;;  %v5801_v11 = vshll.u32 %v7306_v58, 16  ;;  %v5807_v6 = vshll.u32 %v7307_v22, 16  ;;  %v5811_v38 = vshrl.u32 %v7307_v22, 16  ;;  %v8878_v26 = vld [vmem:[%s9164_s19 + $0xbc] sm:$0x1] }
 0x194   : > { %v5780_v43 = vor.u32 %v5779_v47, %v5776_v52  ;;  %v5790_v51 = vor.u32 %v5789_v41, %v11018_v49  ;;  %v5793_v5 = vshll.u32 %v7305_v30, 16  ;;  %v4737_v29 = vsel %vm9563_vm5, %v4735_v2, %v4736_v19 }
 0x195   : > { %8338 = vmatmul.mubr.bf16.gmra.mrb[48].mxu1 %v10969_v48  ;;  %v4734_v48 = vsel %vm9563_vm5, %v7184_v46, %v4733_v12  ;;  %v7320_v45 = vcombine.low %v5714_v60, %v5724_v25  ;;  %v4741_v34 = vsel %vm9563_vm5, %v7185_v62, %v4740_v15  ;;  %v4744_v8 = vsel %vm9563_vm5, %v4742_v33, %v4743_v28  ;;  %v8876_v15 = vld [vmem:[%s9164_s19 + $0xb8] sm:$0xf]  ;;  %v8880_v25 = vld [vmem:[%s9164_s19 + $0xd0] sm:$0xf] }
 0x196   : > { %8341 = vmatprep.mubr.bf16.mxu1 %v7319_v50  ;;  %v7321_v53 = vcombine.low %v5738_v56, %v5748_v61  ;;  %v5757_v46 = vrot.slane %v5756_v3, 4  ;;  %v5767_v12 = vrot.slane %v5766_v39, 4  ;;  %v5771_v21 = vrot.slane %v5769_v24, 5  ;;  %v7172_v61 = vld [vmem:[%s9164_s19 + $0xcc] sm:$0xe] }
 0x197   : > { %v5800_v17 = vrot.slane %v5798_v27, 4  ;;  %v5803_v19 = vrot.slane %v5801_v11, 5  ;;  %v5809_v59 = vrot.slane %v5807_v6, 5  ;;  %v5813_v32 = vrot.slane %v5811_v38, 4  ;;  %v8881_v38 = vld [vmem:[%s9164_s19 + $0xd4] sm:$0x1] }
 0x198   : > { %v4747_v9 = vrot.slane %v8876_v15, 5  ;;  %v5781_v63 = vrot.slane %v5780_v43, 4  ;;  %v5791_v55 = vrot.slane %v5790_v51, 4  ;;  %v5795_v13 = vrot.slane %v5793_v5, 5  ;;  %s11148_s19 = sand.u32 1, %s9028_s22  }
 0x199   : > { %v4754_v35 = vrot.slane %v8877_v54, 5  ;;  %v7216_v57 = vcombine.low %v4734_v48, %v4737_v29  ;;  %v7186_v7 = vrot.slane %v7170_v31, 9  ;;  %v5762_v0 = vsel %vm9189_vm2, %v5757_v46, %v11006_v16  ;;  %s6640_s29 = sshll.u32 %s11148_s19, 7  ;;  %s6411_s15 = scalar_lea.sflag [#allocation3], %s11148_s19 }
 0x19a   : > { %8290 = vmatmul.mubr.bf16.gmra.mrb[16].mxu0 %v7214_v40  ;;  %v7217_v40 = vcombine.low %v4741_v34, %v4744_v8  ;;  %v5772_v44 = vsel %vm9189_vm2, %v5767_v12, %v5771_v21  ;;  %v5814_v18 = vor.u32 %v5813_v32, %v5809_v59  ;;  %v5817_v14 = vshll.u32 %v7308_v20, 16  ;;  %s11153_s28 = scalar_lea.vmem [#allocation6], %s6640_s29  ;;  %s11159_s9 = scalar_lea.vmem [#allocation2], %s6640_s29 }
 0x19b   : > { %8293 = vmatprep.mubr.bf16.mxu0 %v7215_v1  ;;  %v5804_v1 = vor.u32 %v5803_v19, %v5800_v17  ;;  %v4749_v4 = vrot.slane %v4747_v9, 4  ;;  %v4750_v23 = vrot.slane %v8878_v26, 5  ;;  %v5786_v50 = vsel %vm9189_vm2, %v5781_v63, %v11018_v49  ;;  %s6439_s11 = sshll.u32 %s11159_s9, 4  ;;  %s11286_s11 = int_to_ptr.vmem [resolvable:$true] %s6439_s11 }
 0x19c   : > { %v5796_v2 = vsel %vm9189_vm2, %v5791_v55, %v5795_v13  ;;  %v7187_v16 = vrot.slane %v7171_v10, 9  ;;  %v4756_v62 = vrot.slane %v4754_v35, 4  ;;  %v4757_v28 = vrot.slane %v8879_v37, 5  ;;  %s8882_s16 = scalar_lea.vmem %s11286_s11, 2048  ;;  %p8889_p0 = scmp.lt.s32.totalorder %s11286_s11, %s8887_s18 }
 0x19d   : > { %8342 = vmatmul.mubr.bf16.gmra.mrb[52].mxu1 %v7320_v45  ;;  %v7322_v58 = vcombine.low %v5762_v0, %v5772_v44  ;;  %v7323_v52 = vcombine.low %v5786_v50, %v5796_v2  ;;  %v5805_v47 = vrot.slane %v5804_v1, 4  ;;  %v5815_v41 = vrot.slane %v5814_v18, 4  ;;  %p8883_p11 = scmp.ne.s32.totalorder %s11286_s11, %s8882_s16  ;;  %p8890_p1 = scmp.lt.s32.totalorder %s8888_s20, %s8882_s16 }
 0x19e   : > { %8345 = vmatprep.mubr.bf16.mxu1 %v7321_v53  ;;  %v5819_v22 = vrot.slane %v5817_v14, 5  ;;  %v4748_v60 = vsel %vm9563_vm5, %v7186_v7, %v4747_v9  ;;  %v4751_v49 = vsel %vm9563_vm5, %v4749_v4, %v4750_v23  ;;  %v4761_v33 = vrot.slane %v8880_v25, 5 }
 0x19f   : > { %v4755_v56 = vsel %vm9563_vm5, %v7187_v16, %v4754_v35  ;;  %v4758_v30 = vsel %vm9563_vm5, %v4756_v62, %v4757_v28  ;;  %v7218_v3 = vcombine.low %v4748_v60, %v4751_v49  ;;  %v5810_v39 = vsel %vm9189_vm2, %v5805_v47, %v5809_v59  ;;  %p8884_p12 = pnand %p8883_p11, %p9119_p5  ;;  %p8891_p2 = por %p8890_p1, %p8889_p0 }
 0x1a0   : > { %v5820_v24 = vsel %vm9189_vm2, %v5815_v41, %v5819_v22  ;;  %v7219_v27 = vcombine.low %v4755_v56, %v4758_v30  ;;  %v7188_v11 = vrot.slane %v7172_v61, 9  ;;  %v4763_v6 = vrot.slane %v4761_v33, 4 }
 0x1a1   : > { %v4764_v48 = vrot.slane %v8881_v38, 5  ;;  %v7324_v43 = vcombine.low %v5810_v39, %v5820_v24  ;;  %p8885_p13 = pneg %p8884_p12 }
 0x1a2   : > { %8294 = vmatmul.mubr.bf16.gmra.mrb[20].mxu0 %v7216_v57  ;;  %v4762_v51 = vsel %vm9563_vm5, %v7188_v11, %v4761_v33 }
 0x1a3   : > { %8297 = vmatprep.mubr.bf16.mxu0 %v7217_v40  ;;  %v4765_v5 = vsel %vm9563_vm5, %v4763_v6, %v4764_v48  ;;  %p8892_p3 = pnand %p8891_p2, %p8885_p13 }
 0x1a4   : > { %v7220_v29 = vcombine.low %v4762_v51, %v4765_v5 }
 0x1a5   : > { %8346 = vmatmul.mubr.bf16.gmra.mrb[56].mxu1 %v7322_v58 }
 0x1a6   : > { %8349 = vmatprep.mubr.bf16.mxu1 %v7323_v52 }
 0x1aa   : > { %8298 = vmatmul.mubr.bf16.gmra.mrb[24].mxu0 %v7218_v3 }
 0x1ab   : > { %8301 = vmatprep.mubr.bf16.mxu0 %v7219_v27 }
 0x1ad   : > { %8350 = vmatmul.mubr.bf16.gmra.mrb[60].mxu1 %v7324_v43 }
 0x1b2   : > { %8302 = vmatmul.mubr.bf16.gmra.mrb[28].mxu0 %v7220_v29 }
 0x208   : > { %v8035_v45 = vpop.f32.mrb[0].mxu1 }
 0x209   : > { %v2038_v36 = vpop.f32.mrb[1].mxu1 }
 0x20a   : > { %v8036_v34 = vpop.f32.mrb[2].mxu1 }
 0x20b   : > { %v2041_v8 = vpop.f32.mrb[3].mxu1 }
 0x210   : > { %v11091_v53 = vpop.f32.mrb[4].mxu1 }
 0x211   : > { %v11093_v46 = vpop.f32.mrb[5].mxu1 }
 0x212   : > { %v11095_v12 = vpop.f32.mrb[6].mxu1 }
 0x213   : > { %v11097_v21 = vpop.f32.mrb[7].mxu1 }
 0x218   : > { %v11099_v31 = vpop.f32.mrb[8].mxu1 }
 0x219   : > { %v11101_v17 = vpop.f32.mrb[9].mxu1 }
 0x21a   : > { %v11103_v42 = vpop.f32.mrb[10].mxu1 }
 0x21b   : > { %v11105_v19 = vpop.f32.mrb[11].mxu1 }
 0x220   : > { %v11107_v59 = vpop.f32.mrb[12].mxu1 }
 0x221   : > { %v11109_v32 = vpop.f32.mrb[13].mxu1 }
 0x222   : > { %v11111_v15 = vpop.f32.mrb[14].mxu1 }
 0x223   : > { %v11113_v9 = vpop.f32.mrb[15].mxu1 }
 0x228   : > { %v11115_v63 = vpop.f32.mrb[16].mxu1 }
 0x229   : > { %v11117_v55 = vpop.f32.mrb[17].mxu1 }
 0x22a   : > { %v11119_v13 = vpop.f32.mrb[18].mxu1 }
 0x22b   : > { %v11121_v20 = vpop.f32.mrb[19].mxu1 }
 0x230   : > { %v11123_v54 = vpop.f32.mrb[20].mxu1 }
 0x231   : > { %v11125_v35 = vpop.f32.mrb[21].mxu1 }
 0x232   : > { %v11127_v57 = vpop.f32.mrb[22].mxu1 }
 0x233   : > { %v11129_v40 = vpop.f32.mrb[23].mxu1 }
 0x238   : > { %v11131_v7 = vpop.f32.mrb[24].mxu1 }
 0x239   : > { %v11133_v0 = vpop.f32.mrb[25].mxu1 }
 0x23a   : > { %v11135_v10 = vpop.f32.mrb[26].mxu1 }
 0x23b   : > { %v11137_v44 = vpop.f32.mrb[27].mxu1 }
 0x240   : > { %v11139_v1 = vpop.f32.mrb[28].mxu1 }
 0x241   : > { %v11141_v18 = vpop.f32.mrb[29].mxu1 }
 0x242   : > { %v11143_v14 = vpop.f32.mrb[30].mxu1 }
 0x243   : > { %v11145_v4 = vpop.f32.mrb[31].mxu1 }
 0x248   : > { %v8323_v26 = vpop.f32.mrb[32].mxu1 }
 0x249   : > { %v5983_v23 = vpop.f32.mrb[33].mxu1 }
 0x24a   : > { %v8324_v50 = vpop.f32.mrb[34].mxu1 }
 0x24b   : > { %v6111_v2 = vpack.c.bf16 %v8324_v50, %v8323_v26  ;;  %v5986_v16 = vpop.f32.mrb[35].mxu1 }
 0x24c   : > { %v6110_v62 = vpack.c.bf16 %v5986_v16, %v5983_v23 }
 0x24d   : > { %v8275_v37 = vpop.f32.mrb[0].mxu0  ;;  %7618 = vst [vmem:[%s11153_s28 + $0x8] sm:$0xff] %v6111_v2   ;;  %v6272_v52 = vunpack.c.l.bf16 %v6111_v2  ;;  %v6273_v3 = vunpack.c.h.bf16 %v6111_v2 }
 0x24e   : > { %v8353_v28 = vadd.f32 %v8275_v37, %v8035_v45  ;;  %v4929_v58 = vpop.f32.mrb[1].mxu0  ;;  %7527 = vst [vmem:[%s11153_s28] sm:$0xff] %v6110_v62   ;;  %v6270_v47 = vunpack.c.l.bf16 %v6110_v62  ;;  %v6271_v41 = vunpack.c.h.bf16 %v6110_v62 }
 0x24f   : > { %v8354_v22 = vadd.f32 %v4929_v58, %v2038_v36  ;;  %v8276_v60 = vpop.f32.mrb[2].mxu0  ;;  %v6341_v11 = vmul.f32 %v6272_v52, %v6272_v52 }
 0x250   : > { %v8355_v49 = vadd.f32 %v8276_v60, %v8036_v34  ;;  %v4932_v25 = vpop.f32.mrb[3].mxu0  ;;  %v6302_v33 = vadd.f32 %v6271_v41, %v6270_v47  ;;  %v6339_v56 = vmul.f32 %v6270_v47, %v6270_v47  ;;  %v6340_v30 = vmul.f32 %v6271_v41, %v6271_v41  ;;  %v8327_v61 = vpop.f32.mrb[36].mxu1 }
 0x251   : > { %v8356_v39 = vadd.f32 %v4932_v25, %v2041_v8  ;;  %v5999_v24 = vpop.f32.mrb[37].mxu1  ;;  %v6342_v34 = vmul.f32 %v6273_v3, %v6273_v3 }
 0x252   : > { %v5089_v27 = vpack.c.bf16 %v8355_v49, %v8353_v28  ;;  %v6303_v6 = vadd.f32 %v6302_v33, %v6272_v52  ;;  %v6371_v38 = vadd.f32 %v6340_v30, %v6339_v56  ;;  %v8328_v48 = vpop.f32.mrb[38].mxu1 }
 0x253   : > { %v5088_v43 = vpack.c.bf16 %v8356_v39, %v8354_v22  ;;  %v6113_v51 = vpack.c.bf16 %v8328_v48, %v8327_v61  ;;  %v6002_v5 = vpop.f32.mrb[39].mxu1 }
 0x254   : > { %7603 = vst [vmem:[%s11159_s9 + $0x8] sm:$0xff] %v5089_v27   ;;  %v5250_v29 = vunpack.c.l.bf16 %v5089_v27  ;;  %v6372_v45 = vadd.f32 %v6371_v38, %v6341_v11  ;;  %v6112_v36 = vpack.c.bf16 %v6002_v5, %v5999_v24  ;;  %v5251_v50 = vunpack.c.h.bf16 %v5089_v27 }
 0x255   : > { %7447 = vst [vmem:[%s11159_s9] sm:$0xff] %v5088_v43   ;;  %v5248_v8 = vunpack.c.l.bf16 %v5088_v43  ;;  %v5249_v26 = vunpack.c.h.bf16 %v5088_v43  ;;  %v8279_v23 = vpop.f32.mrb[4].mxu0  ;;  %7620 = vst [vmem:[%s11153_s28 + $0x18] sm:$0xff] %v6113_v51   ;;  %v6276_v62 = vunpack.c.l.bf16 %v6113_v51  ;;  %v6277_v49 = vunpack.c.h.bf16 %v6113_v51 }
 0x256   : > { %v8357_v2 = vadd.f32 %v8279_v23, %v11091_v53  ;;  %v4945_v16 = vpop.f32.mrb[5].mxu0  ;;  %7619 = vst [vmem:[%s11153_s28 + $0x10] sm:$0xff] %v6112_v36   ;;  %v6274_v37 = vunpack.c.l.bf16 %v6112_v36  ;;  %v5319_v22 = vmul.f32 %v5250_v29, %v5250_v29  ;;  %v6275_v33 = vunpack.c.h.bf16 %v6112_v36 }
 0x257   : > { %v5280_v28 = vadd.f32 %v5249_v26, %v5248_v8  ;;  %v5317_v58 = vmul.f32 %v5248_v8, %v5248_v8  ;;  %v5318_v52 = vmul.f32 %v5249_v26, %v5249_v26  ;;  %v8358_v47 = vadd.f32 %v4945_v16, %v11093_v46  ;;  %v8280_v41 = vpop.f32.mrb[6].mxu0 }
 0x258   : > { %v8359_v60 = vadd.f32 %v8280_v41, %v11095_v12  ;;  %v4948_v25 = vpop.f32.mrb[7].mxu0  ;;  %v8331_v56 = vpop.f32.mrb[40].mxu1  ;;  %v6304_v39 = vadd.f32 %v6303_v6, %v6273_v3  ;;  %v5320_v27 = vmul.f32 %v5251_v50, %v5251_v50  ;;  %v6343_v38 = vmul.f32 %v6274_v37, %v6274_v37 }
 0x259   : > { %v5281_v30 = vadd.f32 %v5280_v28, %v5250_v29  ;;  %v5349_v53 = vadd.f32 %v5318_v52, %v5317_v58  ;;  %v8360_v61 = vadd.f32 %v4948_v25, %v11097_v21  ;;  %v6015_v24 = vpop.f32.mrb[41].mxu1  ;;  %v6373_v46 = vadd.f32 %v6372_v45, %v6342_v34 }
 0x25a   : > { %v5091_v11 = vpack.c.bf16 %v8359_v60, %v8357_v2  ;;  %v8332_v48 = vpop.f32.mrb[42].mxu1  ;;  %v6305_v51 = vadd.f32 %v6304_v39, %v6274_v37  ;;  %v6344_v29 = vmul.f32 %v6275_v33, %v6275_v33  ;;  %v6345_v45 = vmul.f32 %v6276_v62, %v6276_v62 }
 0x25b   : > { %v5350_v43 = vadd.f32 %v5349_v53, %v5319_v22  ;;  %v5090_v5 = vpack.c.bf16 %v8360_v61, %v8358_v47  ;;  %v5282_v12 = vadd.f32 %v5281_v30, %v5251_v50  ;;  %v6018_v8 = vpop.f32.mrb[43].mxu1  ;;  %v6374_v26 = vadd.f32 %v6373_v46, %v6343_v38 }
 0x25c   : > { %7605 = vst [vmem:[%s11159_s9 + $0x18] sm:$0xff] %v5091_v11   ;;  %v5254_v36 = vunpack.c.l.bf16 %v5091_v11  ;;  %v6115_v23 = vpack.c.bf16 %v8332_v48, %v8331_v56  ;;  %v6306_v16 = vadd.f32 %v6305_v51, %v6275_v33  ;;  %v5255_v28 = vunpack.c.h.bf16 %v5091_v11 }
 0x25d   : > { %7604 = vst [vmem:[%s11159_s9 + $0x10] sm:$0xff] %v5090_v5   ;;  %v5252_v21 = vunpack.c.l.bf16 %v5090_v5  ;;  %v5253_v3 = vunpack.c.h.bf16 %v5090_v5  ;;  %v5351_v6 = vadd.f32 %v5350_v43, %v5320_v27  ;;  %v8283_v2 = vpop.f32.mrb[8].mxu0  ;;  %v6375_v34 = vadd.f32 %v6374_v26, %v6344_v29 }
 0x25e   : > { %v8361_v58 = vadd.f32 %v8283_v2, %v11099_v31  ;;  %v4961_v50 = vpop.f32.mrb[9].mxu0  ;;  %7622 = vst [vmem:[%s11153_s28 + $0x28] sm:$0xff] %v6115_v23   ;;  %v6346_v37 = vmul.f32 %v6277_v49, %v6277_v49  ;;  %v6307_v41 = vadd.f32 %v6306_v16, %v6276_v62  ;;  %v5323_v60 = vmul.f32 %v5254_v36, %v5254_v36 }
 0x25f   : > { %v5283_v52 = vadd.f32 %v5282_v12, %v5252_v21  ;;  %v5321_v47 = vmul.f32 %v5252_v21, %v5252_v21  ;;  %v8284_v22 = vpop.f32.mrb[10].mxu0  ;;  %v6376_v25 = vadd.f32 %v6375_v34, %v6345_v45  ;;  %v8362_v56 = vadd.f32 %v4961_v50, %v11101_v17 }
 0x260   : > { %v8363_v30 = vadd.f32 %v8284_v22, %v11103_v42  ;;  %v4964_v33 = vpop.f32.mrb[11].mxu0  ;;  %v8335_v53 = vpop.f32.mrb[44].mxu1  ;;  %v5322_v39 = vmul.f32 %v5253_v3, %v5253_v3  ;;  %v5324_v38 = vmul.f32 %v5255_v28, %v5255_v28  ;;  %v6114_v62 = vpack.c.bf16 %v6018_v8, %v6015_v24 }
 0x261   : > { %v5284_v61 = vadd.f32 %v5283_v52, %v5253_v3  ;;  %v5352_v27 = vadd.f32 %v5351_v6, %v5321_v47  ;;  %v8364_v31 = vadd.f32 %v4964_v33, %v11105_v19  ;;  %v6031_v11 = vpop.f32.mrb[45].mxu1  ;;  %v6308_v48 = vadd.f32 %v6307_v41, %v6277_v49 }
 0x262   : > { %v5093_v46 = vpack.c.bf16 %v8363_v30, %v8361_v58  ;;  %v8336_v43 = vpop.f32.mrb[46].mxu1  ;;  %v6280_v12 = vunpack.c.l.bf16 %v6115_v23  ;;  %v11177_v26 = vunpack.c.h.bf16 %v6115_v23  ;;  %7621 = vst [vmem:[%s11153_s28 + $0x20] sm:$0xff] %v6114_v62   ;;  %v6278_v21 = vunpack.c.l.bf16 %v6114_v62 }
 0x263   : > { %v5285_v5 = vadd.f32 %v5284_v61, %v5254_v36  ;;  %v5353_v17 = vadd.f32 %v5352_v27, %v5322_v39  ;;  %v5092_v42 = vpack.c.bf16 %v8364_v31, %v8362_v56  ;;  %v6034_v51 = vpop.f32.mrb[47].mxu1  ;;  %v6279_v3 = vunpack.c.h.bf16 %v6114_v62 }
 0x264   : > { %7607 = vst [vmem:[%s11159_s9 + $0x28] sm:$0xff] %v5093_v46   ;;  %v5258_v29 = vunpack.c.l.bf16 %v5093_v46  ;;  %v5259_v49 = vunpack.c.h.bf16 %v5093_v46  ;;  %v6309_v36 = vadd.f32 %v6308_v48, %v6278_v21  ;;  %v6347_v45 = vmul.f32 %v6278_v21, %v6278_v21 }
 0x265   : > { %v5354_v19 = vadd.f32 %v5353_v17, %v5323_v60  ;;  %7606 = vst [vmem:[%s11159_s9 + $0x20] sm:$0xff] %v5092_v42   ;;  %v5256_v6 = vunpack.c.l.bf16 %v5092_v42  ;;  %v5257_v16 = vunpack.c.h.bf16 %v5092_v42  ;;  %v5286_v2 = vadd.f32 %v5285_v5, %v5255_v28  ;;  %v8287_v24 = vpop.f32.mrb[12].mxu0 }
 0x266   : > { %v5327_v8 = vmul.f32 %v5258_v29, %v5258_v29  ;;  %v4977_v34 = vpop.f32.mrb[13].mxu0  ;;  %v6310_v41 = vadd.f32 %v6309_v36, %v6279_v3  ;;  %v6348_v22 = vmul.f32 %v6279_v3, %v6279_v3  ;;  %v6377_v56 = vadd.f32 %v6376_v25, %v6346_v37 }
 0x267   : > { %v5287_v58 = vadd.f32 %v5286_v2, %v5256_v6  ;;  %v5325_v50 = vmul.f32 %v5256_v6, %v5256_v6  ;;  %v5326_v52 = vmul.f32 %v5257_v16, %v5257_v16  ;;  %v5355_v47 = vadd.f32 %v5354_v19, %v5324_v38  ;;  %v8288_v23 = vpop.f32.mrb[14].mxu0 }
 0x268   : > { %v8365_v60 = vadd.f32 %v8287_v24, %v11107_v59  ;;  %v4980_v30 = vpop.f32.mrb[15].mxu0  ;;  %v8339_v33 = vpop.f32.mrb[48].mxu1  ;;  %v8366_v39 = vadd.f32 %v4977_v34, %v11109_v32  ;;  %v8367_v27 = vadd.f32 %v8288_v23, %v11111_v15  ;;  %v6311_v46 = vadd.f32 %v6310_v41, %v6280_v12 }
 0x269   : > { %v5288_v61 = vadd.f32 %v5287_v58, %v5257_v16  ;;  %v5356_v28 = vadd.f32 %v5355_v47, %v5325_v50  ;;  %v11184_v31 = vpop.f32.mrb[49].mxu1  ;;  %v6378_v62 = vadd.f32 %v6377_v56, %v6347_v45  ;;  %v6117_v38 = vpack.c.bf16 %v8336_v43, %v8335_v53 }
 0x26a   : > { %v8368_v48 = vadd.f32 %v4980_v30, %v11113_v9  ;;  %v8340_v37 = vpop.f32.mrb[50].mxu1  ;;  %v5095_v5 = vpack.c.bf16 %v8367_v27, %v8365_v60  ;;  %v6116_v17 = vpack.c.bf16 %v6034_v51, %v6031_v11  ;;  %v6349_v32 = vmul.f32 %v6280_v12, %v6280_v12 }
 0x26b   : > { %v5289_v59 = vadd.f32 %v5288_v61, %v5258_v29  ;;  %v5357_v25 = vadd.f32 %v5356_v28, %v5326_v52  ;;  %v11187_v42 = vpop.f32.mrb[51].mxu1  ;;  %v6350_v15 = vmul.f32 %v11177_v26, %v11177_v26  ;;  %v6379_v21 = vadd.f32 %v6378_v62, %v6348_v22  ;;  %7624 = vst [vmem:[%s11153_s28 + $0x38] sm:$0xff] %v6117_v38  }
 0x26c   : > { %v5094_v3 = vpack.c.bf16 %v8368_v48, %v8366_v39  ;;  %v5328_v19 = vmul.f32 %v5259_v49, %v5259_v49  ;;  %7609 = vst [vmem:[%s11159_s9 + $0x38] sm:$0xff] %v5095_v5   ;;  %v5262_v9 = vunpack.c.l.bf16 %v5095_v5  ;;  %7623 = vst [vmem:[%s11153_s28 + $0x30] sm:$0xff] %v6116_v17   ;;  %v6284_v16 = vunpack.c.l.bf16 %v6117_v38 }
 0x26d   : > { %v5358_v53 = vadd.f32 %v5357_v25, %v5327_v8  ;;  %v5290_v43 = vadd.f32 %v5289_v59, %v5259_v49  ;;  %v8291_v29 = vpop.f32.mrb[16].mxu0  ;;  %v6380_v6 = vadd.f32 %v6379_v21, %v6349_v32  ;;  %v11194_v11 = vunpack.c.h.bf16 %v6117_v38 }
 0x26e   : > { %7608 = vst [vmem:[%s11159_s9 + $0x30] sm:$0xff] %v5094_v3   ;;  %v5260_v51 = vunpack.c.l.bf16 %v5094_v3  ;;  %v4993_v12 = vpop.f32.mrb[17].mxu0  ;;  %v5263_v2 = vunpack.c.h.bf16 %v5095_v5  ;;  %v5331_v24 = vmul.f32 %v5262_v9, %v5262_v9  ;;  %v5261_v36 = vunpack.c.h.bf16 %v5094_v3 }
 0x26f   : > { %v5359_v45 = vadd.f32 %v5358_v53, %v5328_v19  ;;  %v8292_v34 = vpop.f32.mrb[18].mxu0  ;;  %v6282_v8 = vunpack.c.l.bf16 %v6116_v17  ;;  %v6283_v52 = vunpack.c.h.bf16 %v6116_v17  ;;  %v6312_v41 = vadd.f32 %v6311_v46, %v11177_v26 }
 0x270   : > { %v5291_v58 = vadd.f32 %v5290_v43, %v5260_v51  ;;  %v5329_v50 = vmul.f32 %v5260_v51, %v5260_v51  ;;  %v4996_v47 = vpop.f32.mrb[19].mxu0  ;;  %v11197_v49 = vpop.f32.mrb[52].mxu1  ;;  %v5330_v23 = vmul.f32 %v5261_v36, %v5261_v36  ;;  %v6381_v22 = vadd.f32 %v6380_v6, %v6350_v15 }
 0x271   : > { %v8369_v56 = vadd.f32 %v8291_v29, %v11115_v63  ;;  %v11201_v60 = vpop.f32.mrb[53].mxu1  ;;  %v6351_v28 = vmul.f32 %v6282_v8, %v6282_v8  ;;  %v6352_v39 = vmul.f32 %v6283_v52, %v6283_v52  ;;  %v6313_v62 = vadd.f32 %v6312_v41, %v6282_v8 }
 0x272   : > { %v5292_v30 = vadd.f32 %v5291_v58, %v5261_v36  ;;  %v5360_v61 = vadd.f32 %v5359_v45, %v5329_v50  ;;  %v8344_v27 = vpop.f32.mrb[54].mxu1  ;;  %v8370_v38 = vadd.f32 %v4993_v12, %v11117_v55  ;;  %v8371_v48 = vadd.f32 %v8292_v34, %v11119_v13 }
 0x273   : > { %v6119_v59 = vpack.c.bf16 %v8340_v37, %v8339_v33  ;;  %v11205_v25 = vpop.f32.mrb[55].mxu1  ;;  %v6382_v63 = vadd.f32 %v6381_v22, %v6351_v28  ;;  %v8372_v5 = vadd.f32 %v4996_v47, %v11121_v20  ;;  %v6353_v17 = vmul.f32 %v6284_v16, %v6284_v16 }
 0x274   : > { %v5293_v26 = vadd.f32 %v5292_v30, %v5262_v9  ;;  %v5361_v46 = vadd.f32 %v5360_v61, %v5330_v23  ;;  %v6314_v32 = vadd.f32 %v6313_v62, %v6283_v52  ;;  %v5097_v15 = vpack.c.bf16 %v8371_v48, %v8369_v56 }
 0x275   : > { %7626 = vst [vmem:[%s11153_s28 + $0x48] sm:$0xff] %v6119_v59   ;;  %v8295_v21 = vpop.f32.mrb[20].mxu0  ;;  %v6383_v19 = vadd.f32 %v6382_v63, %v6352_v39  ;;  %v5096_v55 = vpack.c.bf16 %v8372_v5, %v8370_v38  ;;  %v5332_v33 = vmul.f32 %v5263_v2, %v5263_v2  ;;  %v6354_v37 = vmul.f32 %v11194_v11, %v11194_v11 }
 0x276   : > { %v5362_v3 = vadd.f32 %v5361_v46, %v5331_v24  ;;  %v5294_v53 = vadd.f32 %v5293_v26, %v5263_v2  ;;  %v5009_v13 = vpop.f32.mrb[21].mxu0  ;;  %v6315_v9 = vadd.f32 %v6314_v32, %v6284_v16  ;;  %7611 = vst [vmem:[%s11159_s9 + $0x48] sm:$0xff] %v5097_v15   ;;  %v6288_v43 = vunpack.c.l.bf16 %v6119_v59 }
 0x277   : > { %v8296_v29 = vpop.f32.mrb[22].mxu0  ;;  %v6384_v20 = vadd.f32 %v6383_v19, %v6353_v17  ;;  %v11212_v6 = vunpack.c.h.bf16 %v6119_v59  ;;  %7610 = vst [vmem:[%s11159_s9 + $0x40] sm:$0xff] %v5096_v55   ;;  %v5264_v51 = vunpack.c.l.bf16 %v5096_v55  ;;  %v5265_v12 = vunpack.c.h.bf16 %v5096_v55 }
 0x278   : > { %v5012_v24 = vpop.f32.mrb[23].mxu0  ;;  %v11215_v36 = vpop.f32.mrb[56].mxu1  ;;  %v5266_v45 = vunpack.c.l.bf16 %v5097_v15  ;;  %v5267_v34 = vunpack.c.h.bf16 %v5097_v15  ;;  %v5363_v2 = vadd.f32 %v5362_v3, %v5332_v33  ;;  %v6118_v58 = vpack.c.bf16 %v11187_v42, %v11184_v31 }
 0x279   : > { %v11219_v16 = vpop.f32.mrb[57].mxu1  ;;  %v5295_v50 = vadd.f32 %v5294_v53, %v5264_v51  ;;  %v5333_v8 = vmul.f32 %v5264_v51, %v5264_v51  ;;  %v5334_v52 = vmul.f32 %v5265_v12, %v5265_v12  ;;  %v6316_v47 = vadd.f32 %v6315_v9, %v11194_v11 }
 0x27a   : > { %v11222_v23 = vpop.f32.mrb[58].mxu1  ;;  %7625 = vst [vmem:[%s11153_s28 + $0x40] sm:$0xff] %v6118_v58   ;;  %v6286_v41 = vunpack.c.l.bf16 %v6118_v58  ;;  %v6287_v22 = vunpack.c.h.bf16 %v6118_v58  ;;  %v6385_v56 = vadd.f32 %v6384_v20, %v6354_v37  ;;  %v8373_v30 = vadd.f32 %v8295_v21, %v11123_v54 }
 0x27b   : > { %v11226_v61 = vpop.f32.mrb[59].mxu1  ;;  %v5296_v28 = vadd.f32 %v5295_v50, %v5265_v12  ;;  %v5364_v39 = vadd.f32 %v5363_v2, %v5333_v8  ;;  %v8374_v31 = vadd.f32 %v5009_v13, %v11125_v35  ;;  %v8375_v42 = vadd.f32 %v8296_v29, %v11127_v57 }
 0x27c   : > { %v5335_v62 = vmul.f32 %v5266_v45, %v5266_v45  ;;  %v6317_v38 = vadd.f32 %v6316_v47, %v6286_v41  ;;  %v6355_v11 = vmul.f32 %v6286_v41, %v6286_v41  ;;  %v6121_v48 = vpack.c.bf16 %v8344_v27, %v11197_v49 }
 0x27d   : > { %v8299_v59 = vpop.f32.mrb[24].mxu0  ;;  %v5297_v26 = vadd.f32 %v5296_v28, %v5266_v45  ;;  %v5365_v46 = vadd.f32 %v5364_v39, %v5334_v52  ;;  %v5099_v63 = vpack.c.bf16 %v8375_v42, %v8373_v30  ;;  %v8376_v54 = vadd.f32 %v5012_v24, %v11129_v40 }
 0x27e   : > { %v5025_v5 = vpop.f32.mrb[25].mxu0  ;;  %v6357_v17 = vmul.f32 %v6288_v43, %v6288_v43  ;;  %v6318_v32 = vadd.f32 %v6317_v38, %v6287_v22  ;;  %v6356_v15 = vmul.f32 %v6287_v22, %v6287_v22  ;;  %v6386_v35 = vadd.f32 %v6385_v56, %v6355_v11  ;;  %7628 = vst [vmem:[%s11153_s28 + $0x58] sm:$0xff] %v6121_v48  }
 0x27f   : > { %v8300_v57 = vpop.f32.mrb[26].mxu0  ;;  %v5336_v21 = vmul.f32 %v5267_v34, %v5267_v34  ;;  %v6358_v3 = vmul.f32 %v11212_v6, %v11212_v6  ;;  %v5366_v49 = vadd.f32 %v5365_v46, %v5335_v62  ;;  %7613 = vst [vmem:[%s11159_s9 + $0x58] sm:$0xff] %v5099_v63   ;;  %v5098_v27 = vpack.c.bf16 %v8376_v54, %v8374_v31 }
 0x280   : > { %v5028_v19 = vpop.f32.mrb[27].mxu0  ;;  %v11236_v55 = vpop.f32.mrb[60].mxu1  ;;  %v6319_v53 = vadd.f32 %v6318_v32, %v6288_v43  ;;  %v6387_v40 = vadd.f32 %v6386_v35, %v6356_v15  ;;  %v6292_v13 = vunpack.c.l.bf16 %v6121_v48  ;;  %v6293_v33 = vunpack.c.h.bf16 %v6121_v48 }
 0x281   : > { %v11238_v37 = vpop.f32.mrb[61].mxu1  ;;  %v5270_v9 = vunpack.c.l.bf16 %v5099_v63  ;;  %v5271_v29 = vunpack.c.h.bf16 %v5099_v63  ;;  %7612 = vst [vmem:[%s11159_s9 + $0x50] sm:$0xff] %v5098_v27   ;;  %v5268_v20 = vunpack.c.l.bf16 %v5098_v27  ;;  %v5269_v51 = vunpack.c.h.bf16 %v5098_v27 }
 0x282   : > { %v11241_v12 = vpop.f32.mrb[62].mxu1  ;;  %v6388_v24 = vadd.f32 %v6387_v40, %v6357_v17  ;;  %v5298_v45 = vadd.f32 %v5297_v26, %v5267_v34  ;;  %v5367_v2 = vadd.f32 %v5366_v49, %v5336_v21  ;;  %v6120_v58 = vpack.c.bf16 %v11205_v25, %v11201_v60 }
 0x283   : > { %v11245_v43 = vpop.f32.mrb[63].mxu1  ;;  %v5337_v50 = vmul.f32 %v5268_v20, %v5268_v20  ;;  %v5338_v8 = vmul.f32 %v5269_v51, %v5269_v51  ;;  %v6320_v52 = vadd.f32 %v6319_v53, %v11212_v6  ;;  %v8377_v47 = vadd.f32 %v8299_v59, %v11131_v7 }
 0x284   : > { %v5299_v41 = vadd.f32 %v5298_v45, %v5268_v20  ;;  %7627 = vst [vmem:[%s11153_s28 + $0x50] sm:$0xff] %v6120_v58   ;;  %v6290_v22 = vunpack.c.l.bf16 %v6120_v58  ;;  %v6291_v56 = vunpack.c.h.bf16 %v6120_v58  ;;  %v6389_v30 = vadd.f32 %v6388_v24, %v6358_v3 }
 0x285   : > { %v8303_v28 = vpop.f32.mrb[28].mxu0  ;;  %v5368_v34 = vadd.f32 %v5367_v2, %v5337_v50  ;;  %v8378_v39 = vadd.f32 %v5025_v5, %v11133_v0  ;;  %v8379_v60 = vadd.f32 %v8300_v57, %v11135_v10  ;;  %v6123_v25 = vpack.c.bf16 %v11222_v23, %v11215_v36 }
 0x286   : > { %v5041_v31 = vpop.f32.mrb[29].mxu0  ;;  %v5300_v42 = vadd.f32 %v5299_v41, %v5269_v51  ;;  %v6321_v6 = vadd.f32 %v6320_v52, %v6290_v22  ;;  %v6359_v62 = vmul.f32 %v6290_v22, %v6290_v22  ;;  %v5339_v38 = vmul.f32 %v5270_v9, %v5270_v9 }
 0x287   : > { %v8304_v7 = vpop.f32.mrb[30].mxu0  ;;  %v5369_v11 = vadd.f32 %v5368_v34, %v5338_v8  ;;  %v6360_v48 = vmul.f32 %v6291_v56, %v6291_v56  ;;  %v5101_v59 = vpack.c.bf16 %v8379_v60, %v8377_v47  ;;  %7630 = vst [vmem:[%s11153_s28 + $0x68] sm:$0xff] %v6123_v25   ;;  %v8380_v10 = vadd.f32 %v5028_v19, %v11137_v44 }
 0x288   : > { %v5044_v26 = vpop.f32.mrb[31].mxu0  ;;  %v5301_v46 = vadd.f32 %v5300_v42, %v5270_v9  ;;  %v6322_v63 = vadd.f32 %v6321_v6, %v6291_v56  ;;  %v6390_v0 = vadd.f32 %v6389_v30, %v6359_v62  ;;  %v5340_v54 = vmul.f32 %v5271_v29, %v5271_v29 }
 0x289   : > { %v6361_v36 = vmul.f32 %v6292_v13, %v6292_v13  ;;  %v6362_v23 = vmul.f32 %v6293_v33, %v6293_v33  ;;  %v5370_v5 = vadd.f32 %v5369_v11, %v5339_v38  ;;  %7615 = vst [vmem:[%s11159_s9 + $0x68] sm:$0xff] %v5101_v59   ;;  %v6296_v15 = vunpack.c.l.bf16 %v6123_v25 }
 0x28a   : > { %v6323_v17 = vadd.f32 %v6322_v63, %v6292_v13  ;;  %v6391_v32 = vadd.f32 %v6390_v0, %v6360_v48  ;;  %v5100_v35 = vpack.c.bf16 %v8380_v10, %v8378_v39  ;;  %v5274_v57 = vunpack.c.l.bf16 %v5101_v59 }
 0x28b   : > { %v5275_v21 = vunpack.c.h.bf16 %v5101_v59  ;;  %v5302_v3 = vadd.f32 %v5301_v46, %v5271_v29  ;;  %v5371_v49 = vadd.f32 %v5370_v5, %v5340_v54  ;;  %v6122_v44 = vpack.c.bf16 %v11226_v61, %v11219_v16 }
 0x28c   : > { %v6392_v27 = vadd.f32 %v6391_v32, %v6361_v36  ;;  %7614 = vst [vmem:[%s11159_s9 + $0x60] sm:$0xff] %v5100_v35   ;;  %v5272_v53 = vunpack.c.l.bf16 %v5100_v35  ;;  %v5273_v40 = vunpack.c.h.bf16 %v5100_v35  ;;  %v6324_v19 = vadd.f32 %v6323_v17, %v6293_v33 }
 0x28d   : > { %v8381_v9 = vadd.f32 %v8303_v28, %v11139_v1  ;;  %v8382_v13 = vadd.f32 %v5041_v31, %v11141_v18  ;;  %v8383_v20 = vadd.f32 %v8304_v7, %v11143_v14  ;;  %7629 = vst [vmem:[%s11153_s28 + $0x60] sm:$0xff] %v6122_v44   ;;  %v6294_v45 = vunpack.c.l.bf16 %v6122_v44 }
 0x28e   : > { %v5303_v51 = vadd.f32 %v5302_v3, %v5272_v53  ;;  %v5341_v24 = vmul.f32 %v5272_v53, %v5272_v53  ;;  %v5342_v29 = vmul.f32 %v5273_v40, %v5273_v40  ;;  %v6295_v2 = vunpack.c.h.bf16 %v6122_v44 }
 0x28f   : > { %v6393_v58 = vadd.f32 %v6392_v27, %v6362_v23  ;;  %v11264_v50 = vpack.c.bf16 %v8383_v20, %v8381_v9  ;;  %v11268_v16 = vpack.c.bf16 %v11241_v12, %v11236_v55  ;;  %v6325_v14 = vadd.f32 %v6324_v19, %v6294_v45 }
 0x290   : > { %v5304_v1 = vadd.f32 %v5303_v51, %v5273_v40  ;;  %v5372_v18 = vadd.f32 %v5371_v49, %v5341_v24  ;;  %v6363_v61 = vmul.f32 %v6294_v45, %v6294_v45  ;;  %v5343_v33 = vmul.f32 %v5274_v57, %v5274_v57 }
 0x291   : > { %v6297_v8 = vunpack.c.h.bf16 %v6123_v25  ;;  %v6364_v52 = vmul.f32 %v6295_v2, %v6295_v2  ;;  %7617 = vst [vmem:[%s11159_s9 + $0x78] sm:$0xff] %v11264_v50   ;;  %7632 = vst [vmem:[%s11153_s28 + $0x78] sm:$0xff] %v11268_v16   ;;  %v6326_v22 = vadd.f32 %v6325_v14, %v6295_v2  ;;  %v5344_v55 = vmul.f32 %v5275_v21, %v5275_v21 }
 0x292   : > { %v5305_v47 = vadd.f32 %v5304_v1, %v5274_v57  ;;  %v5373_v41 = vadd.f32 %v5372_v18, %v5342_v29  ;;  %v6394_v56 = vadd.f32 %v6393_v58, %v6363_v61  ;;  %v6365_v12 = vmul.f32 %v6296_v15, %v6296_v15 }
 0x293   : > { %v6327_v28 = vadd.f32 %v6326_v22, %v6296_v15  ;;  %v8384_v39 = vadd.f32 %v5044_v26, %v11145_v4  ;;  %v6366_v60 = vmul.f32 %v6297_v8, %v6297_v8  ;;  %v6124_v31 = vpack.c.bf16 %v11245_v43, %v11238_v37 }
 0x294   : > { %v5374_v30 = vadd.f32 %v5373_v41, %v5343_v33  ;;  %v6395_v34 = vadd.f32 %v6394_v56, %v6364_v52  ;;  %v5306_v25 = vadd.f32 %v5305_v47, %v5275_v21  ;;  %v6300_v48 = vunpack.c.l.bf16 %v11268_v16 }
 0x295   : > { %v5102_v6 = vpack.c.bf16 %v8384_v39, %v8382_v13  ;;  %v6328_v7 = vadd.f32 %v6327_v28, %v6297_v8  ;;  %7631 = vst [vmem:[%s11153_s28 + $0x70] sm:$0xff] %v6124_v31   ;;  %v6298_v4 = vunpack.c.l.bf16 %v6124_v31  ;;  %v6299_v38 = vunpack.c.h.bf16 %v6124_v31 }
 0x296   : > { %v6396_v42 = vadd.f32 %v6395_v34, %v6365_v12  ;;  %v5375_v62 = vadd.f32 %v5374_v30, %v5344_v55 }
 0x297   : > { %7616 = vst [vmem:[%s11159_s9 + $0x70] sm:$0xff] %v5102_v6   ;;  %v5276_v37 = vunpack.c.l.bf16 %v5102_v6  ;;  %v5277_v43 = vunpack.c.h.bf16 %v5102_v6  ;;  %v6329_v59 = vadd.f32 %v6328_v7, %v6298_v4  ;;  %v6367_v26 = vmul.f32 %v6298_v4, %v6298_v4 }
 0x298   : > { %v6397_v11 = vadd.f32 %v6396_v42, %v6366_v60 }
 0x299   : > { %8895 = shalt.err (!%p8892_p3)
}
 0x29a   : > { %s8896_s29 = scalar_lea.hbm %s11284_s14, 2048  ;;  %s8900_s13 = scalar_lea.hbm %s11443_s3, 4096 }
 0x29b   : > { %p8897_p4 = scmp.ne.s32.totalorder %s11284_s14, %s8896_s29  ;;  %p8901_p9 = scmp.lt.u32.totalorder %s11284_s14, %s11443_s3 }
 0x29c   : > { %p8902_p10 = scmp.lt.u32.totalorder %s8900_s13, %s8896_s29  ;;  %p8904_p12 = scmp.lt.u32.totalorder %s8896_s29, %s11284_s14 }
 0x29d   : > { %p8898_p7 = pnand %p8897_p4, %p9119_p5 }
 0x29e   : > { %p8903_p11 = por %p8902_p10, %p8901_p9 }
 0x29f   : > { %p8899_p8 = pneg %p8898_p7 }
 0x2a0   : > { %p8905_p13 = por %p8904_p12, %p8903_p11 }
 0x2a2   : > { %p8906_p0 = pnand %p8905_p13, %p8899_p8 }
 0x2a4   : > { %8909 = shalt.err (!%p8906_p0)
}
 0x2a5   : > { %s11448_s16 = smov 64   ;;  %s11449_s20 = smov 4   ;;  %v5278_v46 = vunpack.c.l.bf16 %v11264_v50  ;;  %v5307_v63 = vadd.f32 %v5306_v25, %v5276_v37  ;;  %v5345_v0 = vmul.f32 %v5276_v37, %v5276_v37  ;;  %v6301_v10 = vunpack.c.h.bf16 %v11268_v16 }
 0x2a6   : > { %8610 = dma.vmem_to_hbm [thread:$0]  (%p9119_p5), %s11286_s11, 2048, %s11284_s14, %s6411_s15, %s11448_s16, %s11448_s16, %s11449_s20   ;;  %v6330_v54 = vadd.f32 %v6329_v59, %v6299_v38  ;;  %v6368_v36 = vmul.f32 %v6299_v38, %v6299_v38  ;;  %v6398_v23 = vadd.f32 %v6397_v11, %v6367_v26  ;;  %v5279_v5 = vunpack.c.h.bf16 %v11264_v50 }
 0x2a7   : > { %v5308_v17 = vadd.f32 %v5307_v63, %v5277_v43  ;;  %v5346_v32 = vmul.f32 %v5277_v43, %v5277_v43  ;;  %v5376_v15 = vadd.f32 %v5375_v62, %v5345_v0  ;;  %v6369_v35 = vmul.f32 %v6300_v48, %v6300_v48  ;;  %s6641_s11 = sshll.u32 %s11148_s19, 1  ;;  %s7371_s15 = sshll.u32 %s9100_s25, 5 }
 0x2a8   : > { %v6331_v57 = vadd.f32 %v6330_v54, %v6300_v48  ;;  %v6399_v21 = vadd.f32 %v6398_v23, %v6368_v36  ;;  %v5347_v3 = vmul.f32 %v5278_v46, %v5278_v46  ;;  %v6370_v53 = vmul.f32 %v6301_v10, %v6301_v10  ;;  %s272_s29 = scalar_lea.vmem [#allocation7], %s6641_s11  ;;  %s258_s12 = scalar_lea.vmem [#allocation4], %s6641_s11 }
 0x2a9   : > { %v5309_v49 = vadd.f32 %v5308_v17, %v5278_v46  ;;  %v5377_v27 = vadd.f32 %v5376_v15, %v5346_v32  ;;  %v5348_v19 = vmul.f32 %v5279_v5, %v5279_v5  ;;  %s6484_s9 = sshll.u32 %s272_s29, 4  ;;  %vm5386_vm6 = vcmask 1040384   ;;  %s6455_s13 = sshll.u32 %s258_s12, 4  ;;  %s11330_s9 = int_to_ptr.vmem [resolvable:$true] %s6484_s9  ;;  %s11337_s13 = int_to_ptr.vmem [resolvable:$true] %s6455_s13 }
 0x2aa   : > { %v6332_v40 = vadd.f32 %v6331_v57, %v6301_v10  ;;  %v6400_v44 = vadd.f32 %v6399_v21, %v6369_v35  ;;  %s6468_s17 = sshll.u32 %s11153_s28, 4  ;;  %s11328_s16 = scalar_lea.hbm %s11446_s6, %s7371_s15  ;;  %s11346_s17 = int_to_ptr.vmem [resolvable:$true] %s6468_s17 }
 0x2ab   : > { %v5310_v9 = vadd.f32 %v5309_v49, %v5279_v5  ;;  %v5378_v13 = vadd.f32 %v5377_v27, %v5347_v3  ;;  %s11335_s11 = scalar_lea.hbm %s11444_s4, %s7371_s15  ;;  %s11344_s26 = scalar_lea.hbm %s11445_s5, %s7441_s10 }
 0x2ac   : > { %v6333_v20 = vrot.slane %v6332_v40, 4  ;;  %v6401_v51 = vadd.f32 %v6400_v44, %v6370_v53  ;;  %s6426_s20 = scalar_lea.sflag [#allocation8], %s11148_s19  ;;  %s8910_s14 = scalar_lea.vmem %s11330_s9, 32 }
 0x2ad   : > { %v5311_v24 = vrot.slane %v5310_v9, 4  ;;  %v5379_v29 = vadd.f32 %v5378_v13, %v5348_v19  ;;  %p8911_p1 = scmp.ne.s32.totalorder %s11330_s9, %s8910_s14  ;;  %s9041_s15 = smov [#allocation7]  }
 0x2ae   : > { %v6334_v45 = vadd.f32 %v6333_v20, %v6332_v40  ;;  %v6402_v2 = vrot.slane %v6401_v51, 4  ;;  %s8914_s18 = sshll.u32 %s9041_s15, 4  ;;  %s8915_s18 = int_to_ptr.vmem [resolvable:$false] %s8914_s18 }
 0x2af   : > { %v5312_v58 = vadd.f32 %v5311_v24, %v5310_v9  ;;  %v5380_v50 = vrot.slane %v5379_v29, 4  ;;  %p8912_p2 = pnand %p8911_p1, %p9119_p5  ;;  %s8916_s1 = scalar_lea.vmem %s8915_s18, 64 }
 0x2b0   : > { %v6335_v16 = vrot.slane %v6334_v45, 2  ;;  %v6403_v1 = vadd.f32 %v6402_v2, %v6401_v51  ;;  %p8917_p4 = scmp.lt.s32.totalorder %s11330_s9, %s8915_s18  ;;  %p8918_p7 = scmp.lt.s32.totalorder %s8916_s1, %s8910_s14 }
 0x2b1   : > { %v5313_v18 = vrot.slane %v5312_v58, 2  ;;  %v5381_v14 = vadd.f32 %v5380_v50, %v5379_v29  ;;  %p8913_p3 = pneg %p8912_p2 }
 0x2b2   : > { %v6336_v61 = vadd.f32 %v6335_v16, %v6334_v45  ;;  %v6404_v33 = vrot.slane %v6403_v1, 2  ;;  %p8919_p8 = por %p8918_p7, %p8917_p4 }
 0x2b3   : > { %v5314_v8 = vadd.f32 %v5313_v18, %v5312_v58  ;;  %v5382_v52 = vrot.slane %v5381_v14, 2 }
 0x2b4   : > { %v6337_v47 = vrot.slane %v6336_v61, 1  ;;  %v6405_v41 = vadd.f32 %v6404_v33, %v6403_v1  ;;  %p8920_p9 = pnand %p8919_p8, %p8913_p3 }
 0x2b5   : > { %v5315_v22 = vrot.slane %v5314_v8, 1  ;;  %v5383_v56 = vadd.f32 %v5382_v52, %v5381_v14 }
 0x2b6   : > { %v6406_v55 = vrot.slane %v6405_v41, 1  ;;  %v6338_v30 = vadd.f32 %v6337_v47, %v6336_v61 }
 0x2b7   : > { %v5384_v12 = vrot.slane %v5383_v56, 1  ;;  %v5316_v34 = vadd.f32 %v5315_v22, %v5314_v8 }
 0x2b8   : > { %v6407_v28 = vadd.f32 %v6406_v55, %v6405_v41 }
 0x2b9   : > { %v5385_v39 = vadd.f32 %v5384_v12, %v5383_v56 }
 0x2ba   : > { %v6408_v60 = vsel %vm5386_vm6, %v6338_v30, %v6407_v28 }
 0x2bb   : > { %v5387_v25 = vsel %vm5386_vm6, %v5316_v34, %v5385_v39  ;;  %6409 = vst [vmem:[%s272_s29] sm:$0x3] %v6408_v60 }
 0x2bc   : > { %5388 = vst [vmem:[%s258_s12] sm:$0x3] %v5387_v25 }
 0x2bd   : > { %8923 = shalt.err (!%p8920_p9)
}
 0x2be   : > { %s8924_s0 = scalar_lea.hbm %s11328_s16, 32  ;;  %s8928_s29 = scalar_lea.hbm %s11446_s6, 64 }
 0x2bf   : > { %p8925_p10 = scmp.ne.s32.totalorder %s11328_s16, %s8924_s0  ;;  %p8929_p13 = scmp.lt.u32.totalorder %s11328_s16, %s11446_s6 }
 0x2c0   : > { %p8930_p0 = scmp.lt.u32.totalorder %s8928_s29, %s8924_s0  ;;  %p8932_p2 = scmp.lt.u32.totalorder %s8924_s0, %s11328_s16 }
 0x2c1   : > { %p8926_p11 = pnand %p8925_p10, %p9119_p5 }
 0x2c2   : > { %p8931_p1 = por %p8930_p0, %p8929_p13 }
 0x2c3   : > { %p8927_p12 = pneg %p8926_p11 }
 0x2c4   : > { %p8933_p3 = por %p8932_p2, %p8931_p1 }
 0x2c6   : > { %p8934_p4 = pnand %p8933_p3, %p8927_p12 }
 0x2c8   : > { %8937 = shalt.err (!%p8934_p4)
}
 0x2c9   : > { %8613 = dma.vmem_to_hbm [thread:$0]  (%p9119_p5), %s11330_s9, 32, %s11328_s16, %s6426_s20  }
 0x2ca   : > { %s11469_s1 = sand.u32 1, %s9100_s25   ;;  %s8938_s15 = scalar_lea.vmem %s11337_s13, 32 }
 0x2cb   : > { %s11372_s14 = scalar_lea.sflag [#allocation5], %s11469_s1  ;;  %p8939_p7 = scmp.ne.s32.totalorder %s11337_s13, %s8938_s15 }
 0x2cc   : > { %s9042_s18 = smov [#allocation4]  }
 0x2cd   : > { %p8940_p8 = pnand %p8939_p7, %p9119_p5  ;;  %s8942_s0 = sshll.u32 %s9042_s18, 4  ;;  %s8943_s0 = int_to_ptr.vmem [resolvable:$false] %s8942_s0 }
 0x2ce   : > { %s8944_s19 = scalar_lea.vmem %s8943_s0, 64  ;;  %p8945_p10 = scmp.lt.s32.totalorder %s11337_s13, %s8943_s0 }
 0x2cf   : > { %p8941_p9 = pneg %p8940_p8  ;;  %p8946_p11 = scmp.lt.s32.totalorder %s8944_s19, %s8938_s15 }
 0x2d1   : > { %p8947_p12 = por %p8946_p11, %p8945_p10 }
 0x2d3   : > { %p8948_p13 = pnand %p8947_p12, %p8941_p9 }
 0x2d5   : > { %8951 = shalt.err (!%p8948_p13)
}
 0x2d6   : > { %s8952_s25 = scalar_lea.hbm %s11335_s11, 32  ;;  %s8956_s20 = scalar_lea.hbm %s11444_s4, 64 }
 0x2d7   : > { %p8953_p0 = scmp.ne.s32.totalorder %s11335_s11, %s8952_s25  ;;  %p8957_p3 = scmp.lt.u32.totalorder %s11335_s11, %s11444_s4 }
 0x2d8   : > { %p8958_p4 = scmp.lt.u32.totalorder %s8956_s20, %s8952_s25  ;;  %p8960_p8 = scmp.lt.u32.totalorder %s8952_s25, %s11335_s11 }
 0x2d9   : > { %p8954_p1 = pnand %p8953_p0, %p9119_p5 }
 0x2da   : > { %p8959_p7 = por %p8958_p4, %p8957_p3 }
 0x2db   : > { %p8955_p2 = pneg %p8954_p1 }
 0x2dc   : > { %p8961_p9 = por %p8960_p8, %p8959_p7 }
 0x2de   : > { %p8962_p10 = pnand %p8961_p9, %p8955_p2 }
 0x2e0   : > { %8965 = shalt.err (!%p8962_p10)
}
 0x2e1   : > { %8611 = dma.vmem_to_hbm [thread:$0]  (%p9119_p5), %s11337_s13, 32, %s11335_s11, %s11372_s14  }
 0x2e2   : > { %s8966_s12 = scalar_lea.vmem %s11346_s17, 2048  ;;  %s9043_s28 = smov [#allocation6]  }
 0x2e3   : > { %p8967_p11 = scmp.ne.s32.totalorder %s11346_s17, %s8966_s12  ;;  %s8970_s1 = sshll.u32 %s9043_s28, 4  ;;  %s8971_s1 = int_to_ptr.vmem [resolvable:$false] %s8970_s1 }
 0x2e4   : > { %s8972_s15 = scalar_lea.vmem %s8971_s1, 4096  ;;  %p8973_p0 = scmp.lt.s32.totalorder %s11346_s17, %s8971_s1 }
 0x2e5   : > { %p8968_p12 = pnand %p8967_p11, %p9119_p5  ;;  %p8974_p1 = scmp.lt.s32.totalorder %s8972_s15, %s8966_s12 }
 0x2e7   : > { %p8969_p13 = pneg %p8968_p12  ;;  %p8975_p2 = por %p8974_p1, %p8973_p0 }
 0x2e9   : > { %p8976_p3 = pnand %p8975_p2, %p8969_p13 }
 0x2eb   : > { %8979 = shalt.err (!%p8976_p3)
}
 0x2ec   : > { %s8980_s13 = scalar_lea.hbm %s11344_s26, 2048  ;;  %s8984_s0 = scalar_lea.hbm %s11445_s5, 4096 }
 0x2ed   : > { %p8981_p4 = scmp.ne.s32.totalorder %s11344_s26, %s8980_s13  ;;  %p8985_p9 = scmp.lt.u32.totalorder %s11344_s26, %s11445_s5 }
 0x2ee   : > { %p8986_p10 = scmp.lt.u32.totalorder %s8984_s0, %s8980_s13  ;;  %p8988_p12 = scmp.lt.u32.totalorder %s8980_s13, %s11344_s26 }
 0x2ef   : > { %p8982_p7 = pnand %p8981_p4, %p9119_p5 }
 0x2f0   : > { %p8987_p11 = por %p8986_p10, %p8985_p9 }
 0x2f1   : > { %p8983_p8 = pneg %p8982_p7 }
 0x2f2   : > { %p8989_p13 = por %p8988_p12, %p8987_p11 }
 0x2f4   : > { %p8990_p0 = pnand %p8989_p13, %p8983_p8 }
 0x2f6   : > { %8993 = shalt.err (!%p8990_p0)
}
 0x2f7   : > { %s11470_s16 = smov 4   ;;  %s11471_s9 = smov 64  }
 0x2f8   : > { %8612 = dma.vmem_to_hbm [thread:$0]  (%p9119_p5), %s11346_s17, 2048, %s11344_s26, %s11372_s14, %s11471_s9, %s11471_s9, %s11470_s16  }
 0x2f9 PF: > { %p8631_p1 = scmp.ge.s32.totalorder %s9036_s24, 2  ;;  %s6496_s20 = sand.u32 1, %s9024_s21  }
 0x2fa   : > { %s6497_s10 = scalar_lea.sflag [#allocation3], %s6496_s20 }
 0x2fb   : > { %p8619_p2 = pnand %p8631_p1, %p9123_p6 }
 0x2fd   : > { %9011 = dma.done.wait (!%p8619_p2), %s6497_s10, 2048  }
 0x2fe   : > { %9013 = vsyncadd (!%p8619_p2), %s6497_s10, 4294965248  ;;  %s11472_s7 = sadd.s32 4294967294, %s9036_s24  }
 0x2ff   : > { %s6505_s29 = sand.u32 1, %s11472_s7  }
 0x300   : > { %s6506_s12 = scalar_lea.sflag [#allocation5], %s6505_s29 }
 0x301   : > { %9015 = dma.done.wait (!%p8619_p2), %s6506_s12, 2080  }
 0x302   : > { %9017 = vsyncadd (!%p8619_p2), %s6506_s12, 4294965216  ;;  %s6524_s28 = scalar_lea.sflag [#allocation8], %s6496_s20 }
 0x303   : > { %9019 = dma.done.wait (!%p8619_p2), %s6524_s28, 32  }
 0x304   : > { %9021 = vsyncadd (!%p8619_p2), %s6524_s28, 4294967264  ;;  %p23_p5 = scmp.ge.s32.totalorder %s9104_s27, 4   ;;  %s11473_s21 = smov %s9028_s22 }
 0x305   : > { %s11474_s22 = smov %s9032_s23  ;;  %s11475_s23 = smov %s9117_s30 }
 0x306   : > { %s11476_s24 = smov %s9104_s27  ;;  %25 = sbr.rel (!%p23_p5) target bundleno = 10 (0xa), region = 126 }
 0x30d   :  { %6529 = vsyncpa [#allocation3], 1 }
 0x30e   :  { %6531 = vsyncpa [#allocation3 + $0x1], 1 }
 0x30f   :  { %6532 = vsyncpa [#allocation5], 1 }
 0x310   :  { %6534 = vsyncpa [#allocation5 + $0x1], 1 }
 0x311   :  { %6535 = vsyncpa [#allocation8], 1 }
 0x312   :  { %6537 = vsyncpa [#allocation8 + $0x1], 1 }

</bundles_post_ra>
